<compile_context>
chip_gen: v5e
topology: v5e:2x2
jax: 0.10.0
libtpu: 0.0.40
codegen_flags: <defaults>
</compile_context>

<pallas_src>
import jax
import jax.numpy as jnp
from jax.experimental import pallas as pl
from jax.experimental.pallas import tpu as pltpu

BN_EPS = 1e-3                      # the module passes eps=0.001 to every BatchNorm

_VMEM = pl.BlockSpec(memory_space=pltpu.MemorySpace.VMEM)


# ------------------------------ kernel helpers ------------------------------

def _lane_group_mean4(v):
    """[1, 4n] -> [1, n]: mean of the 4 aligned n-lane groups."""
    n = v.shape[1] // 4
    return (v[:, 0:n] + v[:, n:2 * n] + v[:, 2 * n:3 * n] + v[:, 3 * n:4 * n]) * 0.25


def _lane_tile4(v):
    """[1, n] -> [1, 4n]: repeat along lanes."""
    return jnp.concatenate([v, v, v, v], axis=-1)


def _slab_max4(a):
    """Elementwise max over the 4 equal leading row-slabs (one 2x2 pool window)."""
    m = a.shape[0] // 4
    return jnp.maximum(jnp.maximum(a[0 * m:1 * m], a[1 * m:2 * m]),
                       jnp.maximum(a[2 * m:3 * m], a[3 * m:4 * m]))


def _bn_relu(z, gamma, beta):
    """Training-mode BatchNorm (biased batch var, eps=1e-3) + ReLU, f32 stats."""
    mean = jnp.mean(z, axis=0, keepdims=True)
    zc = z - mean
    var = jnp.mean(zc * zc, axis=0, keepdims=True)
    scale = gamma * jax.lax.rsqrt(var + BN_EPS)
    return jnp.maximum(zc * scale + beta, 0.0)


# --------------------------- fused Pallas kernel ----------------------------

def _fused_forward_kernel(p1_ref, w1_ref, g1_ref, be1_ref,
                          w2_ref, g2_ref, be2_ref,
                          w3_ref, g3_ref, be3_ref,
                          w4_ref, g4_ref, be4_ref,
                          o_ref):
    f32, bf16 = jnp.float32, jnp.bfloat16

    # ---- Conv2d(1,64,k=3,s=3) as ONE block-diagonal GEMM -------------------
    # p1: [64B, 64]  per row 4 patches (one per conv2 tap (kh,kw)), each 9->16
    # w1: [64, 256]  block-diagonal; lane L = kh*128 + kw*64 + c
    # z1[row=(dh,dw,eh,ew,ph2,pw2,b), L] = conv1[b, c, 8ph2+4eh+2kh+dh,
    #                                               8pw2+4ew+2kw+dw]
    z1 = jnp.dot(p1_ref[...], w1_ref[...], preferred_element_type=f32)   # [64B,256]

    # ---- BatchNorm2d(64) + ReLU: channel c lives in 4 aligned 64-lane groups
    mean_c = _lane_group_mean4(jnp.mean(z1, axis=0, keepdims=True))      # [1,64]
    zc = z1 - _lane_tile4(mean_c)
    var_c = _lane_group_mean4(jnp.mean(zc * zc, axis=0, keepdims=True))  # [1,64]
    scale = g1_ref[...] * _lane_tile4(jax.lax.rsqrt(var_c + BN_EPS))     # [1,256]
    a1 = jnp.maximum(zc * scale + be1_ref[...], 0.0)                     # [64B,256]

    # ---- MaxPool2d(2,2): (dh, dw) are the 2 outermost row bits -> slab max
    pool1 = _slab_max4(a1).astype(bf16)                # [16B, 256], lanes=(kh,kw,c)

    # ---- Conv2d(64,128,k=2,s=2) as ONE K=256 GEMM (lanes already (kh,kw,c))
    z2 = jnp.dot(pool1, w2_ref[...], preferred_element_type=f32)         # [16B,128]
    a2 = _bn_relu(z2, g2_ref[...], be2_ref[...])

    # ---- MaxPool2d(2,2): (eh, ew) outermost row bits -> slab max
    pool2 = _slab_max4(a2)                              # [4B, 128], rows=(ph2,pw2,b)

    # ---- Linear(512,256) as ONE K=512 GEMM: lane-concat of the 4 (ph2,pw2)
    #      position slabs IS the NCHW out.view(B,512) contraction.
    bsz = pool2.shape[0] // 4
    flat = jnp.concatenate([pool2[0:bsz], pool2[bsz:2 * bsz],
                            pool2[2 * bsz:3 * bsz], pool2[3 * bsz:4 * bsz]],
                           axis=-1).astype(bf16)        # [B, 512]
    h = jnp.dot(flat, w3_ref[...], preferred_element_type=f32)           # [B,256]
    a3 = _bn_relu(h, g3_ref[...], be3_ref[...])

    # ---- Linear(256,7) + BatchNorm1d(7) + ReLU ------------------------------
    z4 = jnp.dot(a3.astype(bf16), w4_ref[...], preferred_element_type=f32)
    o_ref[...] = _bn_relu(z4, g4_ref[...], be4_ref[...])                 # [B,7]


# ----------------------------- host-side packing ----------------------------

def _pack_input(x_nchw):
    """x [B,1,48,48] -> conv1 block-patch matrix [64B, 64] bf16 (NO gather).

    H = 24*ph2 + 12*eh + 6*kh + 3*dh + r  (conv1 output row oh1 = 8ph2+4eh+2kh+dh)
    so the slab-friendly row order (dh,dw,eh,ew,ph2,pw2,b) and the per-row
    (kh,kw,r,s) patch blocks are a pure reshape+transpose of the H/W axes.
    """
    B = x_nchw.shape[0]
    x = x_nchw.reshape(B, 48, 48).astype(jnp.float32)
    t = x.reshape(B, 2, 2, 2, 2, 3, 2, 2, 2, 2, 3)   # b,(ph2,eh,kh,dh,r),(pw2,ew,kw,dw,s)
    t = jnp.transpose(t, (4, 9, 2, 7, 1, 6, 0, 3, 8, 5, 10))  # dh,dw,eh,ew,ph2,pw2,b,kh,kw,r,s
    t = t.reshape(64 * B, 2, 2, 9)
    t = jnp.pad(t, ((0, 0), (0, 0), (0, 0), (0, 7)))          # 9 -> 16 per tap block
    return t.reshape(64 * B, 64).astype(jnp.bfloat16)


def pack_params(params):
    """One-time repack of PyTorch-layout params into kernel matmul layouts."""
    f32, bf16 = jnp.float32, jnp.bfloat16

    # conv1 [64,1,3,3] -> block-diagonal [64, 256]; block t=(kh*2+kw), lane group t.
    w1 = jnp.pad(params["w1"].reshape(64, 9).T, ((0, 7), (0, 0)))        # [16, 64]
    w1blk = jnp.einsum("tu,kc->tkuc", jnp.eye(4, dtype=f32), w1)
    w1blk = w1blk.reshape(64, 256).astype(bf16)

    # conv2 [128,64,2,2] -> [256, 128] with K = kh*128 + kw*64 + c
    w2k = jnp.transpose(params["w2"], (2, 3, 1, 0)).reshape(256, 128).astype(bf16)

    # fc1 [256,512] (k = c*4 + ph2*2 + pw2) -> [512, 256] with K = (ph2,pw2)*128 + c
    w3k = jnp.transpose(params["w3"].reshape(256, 128, 2, 2),
                        (2, 3, 1, 0)).reshape(512, 256).astype(bf16)

    # fc2 [7,256] -> [256, 7]
    w4k = params["w4"].T.astype(bf16)

    def row(v):
        return v.reshape(1, -1).astype(f32)

    # NOTE: conv/linear biases b1..b4 are folded out: a per-channel constant
    # added immediately before a training-mode BatchNorm is exactly cancelled
    # by the batch-mean subtraction, so they never enter the kernel.
    return dict(
        w1=w1blk,
        g1=jnp.tile(row(params["g1"]), (1, 4)),       # pre-tiled to 256 lanes
        be1=jnp.tile(row(params["be1"]), (1, 4)),
        w2=w2k, g2=row(params["g2"]), be2=row(params["be2"]),
        w3=w3k, g3=row(params["g3"]), be3=row(params["be3"]),
        w4=w4k, g4=row(params["g4"]), be4=row(params["be4"]),
    )


def conv_nn_forward(x_nchw, packed):
    B = x_nchw.shape[0]
    assert x_nchw.shape[1:] == (1, 48, 48), "architecture implies 1x48x48 input"

    p1 = _pack_input(x_nchw)
    ins = (p1, packed["w1"], packed["g1"], packed["be1"],
           packed["w2"], packed["g2"], packed["be2"],
           packed["w3"], packed["g3"], packed["be3"],
           packed["w4"], packed["g4"], packed["be4"])

    flops = 2 * B * (64 * 64 * 256 + 16 * 256 * 128 + 512 * 256 + 256 * 7)
    bytes_accessed = sum(int(a.size) * a.dtype.itemsize for a in ins) + B * 7 * 4

    # Working set at B=8 is ~3 MiB -> fits every generation's default scoped
    # VMEM; see module-level TODO for the large-batch / v7x plan.
    return pl.pallas_call(
        _fused_forward_kernel,
        out_shape=jax.ShapeDtypeStruct((B, 7), jnp.float32),
        in_specs=[_VMEM] * len(ins),
        out_specs=_VMEM,
        cost_estimate=pl.CostEstimate(flops=flops, transcendentals=455,
                                      bytes_accessed=bytes_accessed),
    )(*ins)


# ------------------------------ parameters ----------------------------------

def init_params(key):
    ks = jax.random.split(key, 16)

    def dense(k, shape, fan_in):
        return jax.random.normal(k, shape, jnp.float32) / jnp.sqrt(jnp.float32(fan_in))

    def bn(kg, kb, n):
        g = 1.0 + 0.1 * jax.random.normal(kg, (n,), jnp.float32)
        b = 0.1 * jax.random.normal(kb, (n,), jnp.float32)
        return g, b

    p = {}
    p["w1"] = dense(ks[0], (64, 1, 3, 3), 9)        # Conv2d(1, 64, 3, stride=3)
    p["b1"] = 0.1 * jax.random.normal(ks[1], (64,), jnp.float32)
    p["g1"], p["be1"] = bn(ks[2], ks[3], 64)
    p["w2"] = dense(ks[4], (128, 64, 2, 2), 256)    # Conv2d(64, 128, 2, stride=2)
    p["b2"] = 0.1 * jax.random.normal(ks[5], (128,), jnp.float32)
    p["g2"], p["be2"] = bn(ks[6], ks[7], 128)
    p["w3"] = dense(ks[8], (256, 512), 512)         # Linear(512, 256)
    p["b3"] = 0.1 * jax.random.normal(ks[9], (256,), jnp.float32)
    p["g3"], p["be3"] = bn(ks[10], ks[11], 256)
    p["w4"] = dense(ks[12], (7, 256), 256)          # Linear(256, 7)
    p["b4"] = 0.1 * jax.random.normal(ks[13], (7,), jnp.float32)
    p["g4"], p["be4"] = bn(ks[14], ks[15], 7)
    return p


# --------------------------- pure-JAX reference -----------------------------

def _bn_relu_ref(z, gamma, beta, axes):
    mean = jnp.mean(z, axis=axes, keepdims=True)
    var = jnp.mean(jnp.square(z - mean), axis=axes, keepdims=True)
    return jnp.maximum((z - mean) * jax.lax.rsqrt(var + BN_EPS) * gamma + beta, 0.0)


def reference_forward(x_nchw, params):
    """Straight NCHW reference (includes the biases the kernel folds out),
    with the same bf16-operand / f32-accumulate matmul precision."""
    f32, bf16 = jnp.float32, jnp.bfloat16
    B = x_nchw.shape[0]
    x = x_nchw.reshape(B, 48, 48).astype(f32)

    # Conv2d(1,64,3,stride=3) + BN2d + ReLU
    p = x.reshape(B, 16, 3, 16, 3).transpose(0, 1, 3, 2, 4).reshape(B, 16, 16, 9)
    z1 = jnp.einsum("bhwk,ck->bchw", p.astype(bf16),
                    params["w1"].reshape(64, 9).astype(bf16),
                    preferred_element_type=f32) + params["b1"][None, :, None, None]
    a1 = _bn_relu_ref(z1, params["g1"][None, :, None, None],
                      params["be1"][None, :, None, None], axes=(0, 2, 3))
    p1 = a1.reshape(B, 64, 8, 2, 8, 2).max(axis=(3, 5))              # MaxPool 2x2

    # Conv2d(64,128,2,stride=2) + BN2d + ReLU
    pc = p1.reshape(B, 64, 4, 2, 4, 2).transpose(0, 2, 4, 1, 3, 5).reshape(B, 4, 4, 256)
    z2 = jnp.einsum("bhwk,ck->bchw", pc.astype(bf16),
                    params["w2"].reshape(128, 256).astype(bf16),
                    preferred_element_type=f32) + params["b2"][None, :, None, None]
    a2 = _bn_relu_ref(z2, params["g2"][None, :, None, None],
                      params["be2"][None, :, None, None], axes=(0, 2, 3))
    p2 = a2.reshape(B, 128, 2, 2, 2, 2).max(axis=(3, 5))             # MaxPool 2x2

    flat = p2.reshape(B, 512)                                        # NCHW view
    h = jnp.dot(flat.astype(bf16), params["w3"].T.astype(bf16),
                preferred_element_type=f32) + params["b3"]
    a3 = _bn_relu_ref(h, params["g3"][None, :], params["be3"][None, :], axes=(0,))
    z4 = jnp.dot(a3.astype(bf16), params["w4"].T.astype(bf16),
                 preferred_element_type=f32) + params["b4"]
    return _bn_relu_ref(z4, params["g4"][None, :], params["be4"][None, :], axes=(0,))


# ---------------------------------- main ------------------------------------

if __name__ == "__main__":
    key = jax.random.PRNGKey(0)
    pkey, xkey = jax.random.split(key)
    params = init_params(pkey)

    # One-time parameter packing (hoisted out of the per-call path).
    packed = pack_params(params)

    # Architecture forces 1x48x48 input (view(B, 512) = 128*2*2); small batch.
    x = jax.random.normal(xkey, (8, 1, 48, 48), jnp.float32)

    fwd = jax.jit(conv_nn_forward)
    out = jax.block_until_ready(fwd(x, packed))

    assert out.shape == (8, 7) and out.dtype == jnp.float32
    assert bool(jnp.all(jnp.isfinite(out)))
    assert bool(jnp.all(out >= 0.0))                 # final ReLU

    ref = jax.block_until_ready(jax.jit(reference_forward)(x, params))
    err = float(jnp.max(jnp.abs(out - ref)))
    assert err < 5e-2, f"kernel/reference mismatch: max abs diff = {err}"

    print("KERNEL_OK")
</pallas_src>

<mosaic_0001>
module attributes {stable_mosaic.version = 11 : i64} {
  func.func @_fused_forward_kernel(%arg0: memref<512x64xbf16, #tpu.memory_space<vmem>>, %arg1: memref<64x256xbf16, #tpu.memory_space<vmem>>, %arg2: memref<1x256xf32, #tpu.memory_space<vmem>>, %arg3: memref<1x256xf32, #tpu.memory_space<vmem>>, %arg4: memref<256x128xbf16, #tpu.memory_space<vmem>>, %arg5: memref<1x128xf32, #tpu.memory_space<vmem>>, %arg6: memref<1x128xf32, #tpu.memory_space<vmem>>, %arg7: memref<512x256xbf16, #tpu.memory_space<vmem>>, %arg8: memref<1x256xf32, #tpu.memory_space<vmem>>, %arg9: memref<1x256xf32, #tpu.memory_space<vmem>>, %arg10: memref<256x7xbf16, #tpu.memory_space<vmem>>, %arg11: memref<1x7xf32, #tpu.memory_space<vmem>>, %arg12: memref<1x7xf32, #tpu.memory_space<vmem>>, %arg13: memref<8x7xf32, #tpu.memory_space<vmem>>) attributes {dimension_semantics = [], scalar_prefetch = 0 : i64, scratch_operands = 0 : i64, tpu.core_type = #tpu.core_type<tc>} {
    %c0 = arith.constant 0 : index
    %c0_0 = arith.constant 0 : index
    %0 = vector.load %arg0[%c0, %c0_0] : memref<512x64xbf16, #tpu.memory_space<vmem>>, vector<512x64xbf16>
    %c0_1 = arith.constant 0 : index
    %c0_2 = arith.constant 0 : index
    %1 = vector.load %arg1[%c0_1, %c0_2] : memref<64x256xbf16, #tpu.memory_space<vmem>>, vector<64x256xbf16>
    %cst = arith.constant dense<0.000000e+00> : vector<512x256xf32>
    %2 = tpu.matmul %0, %1, %cst {dimension_numbers = #tpu.dot_dimension_numbers<[1], [0], [0], [1], [0, 0, 1, 1], [], []>} : vector<512x64xbf16>, vector<64x256xbf16>, vector<512x256xf32> -> vector<512x256xf32>
    %cst_3 = arith.constant dense<0.000000e+00> : vector<256xf32>
    %3 = vector.multi_reduction <add>, %2, %cst_3 [0] : vector<512x256xf32> to vector<256xf32>
    %4 = vector.shape_cast %3 : vector<256xf32> to vector<1x256xf32>
    %cst_4 = arith.constant 5.120000e+02 : f32
    %5 = vector.broadcast %cst_4 : f32 to vector<1x256xf32>
    %6 = arith.divf %4, %5 : vector<1x256xf32>
    %7 = vector.extract_strided_slice %6 {offsets = [0, 0], sizes = [1, 64], strides = [1, 1]} : vector<1x256xf32> to vector<1x64xf32>
    %8 = vector.extract_strided_slice %6 {offsets = [0, 64], sizes = [1, 64], strides = [1, 1]} : vector<1x256xf32> to vector<1x64xf32>
    %9 = arith.addf %7, %8 : vector<1x64xf32>
    %10 = vector.extract_strided_slice %6 {offsets = [0, 128], sizes = [1, 64], strides = [1, 1]} : vector<1x256xf32> to vector<1x64xf32>
    %11 = arith.addf %9, %10 : vector<1x64xf32>
    %12 = vector.extract_strided_slice %6 {offsets = [0, 192], sizes = [1, 64], strides = [1, 1]} : vector<1x256xf32> to vector<1x64xf32>
    %13 = arith.addf %11, %12 : vector<1x64xf32>
    %cst_5 = arith.constant 2.500000e-01 : f32
    %14 = vector.broadcast %cst_5 : f32 to vector<1x64xf32>
    %15 = arith.mulf %13, %14 : vector<1x64xf32>
    %16 = tpu.concatenate %15, %15, %15, %15 in 1 : vector<1x64xf32>, vector<1x64xf32>, vector<1x64xf32>, vector<1x64xf32> -> vector<1x256xf32>
    %17 = vector.broadcast %16 : vector<1x256xf32> to vector<512x256xf32>
    %18 = arith.subf %2, %17 : vector<512x256xf32>
    %19 = arith.mulf %18, %18 : vector<512x256xf32>
    %cst_6 = arith.constant dense<0.000000e+00> : vector<256xf32>
    %20 = vector.multi_reduction <add>, %19, %cst_6 [0] : vector<512x256xf32> to vector<256xf32>
    %21 = vector.shape_cast %20 : vector<256xf32> to vector<1x256xf32>
    %cst_7 = arith.constant 5.120000e+02 : f32
    %22 = vector.broadcast %cst_7 : f32 to vector<1x256xf32>
    %23 = arith.divf %21, %22 : vector<1x256xf32>
    %24 = vector.extract_strided_slice %23 {offsets = [0, 0], sizes = [1, 64], strides = [1, 1]} : vector<1x256xf32> to vector<1x64xf32>
    %25 = vector.extract_strided_slice %23 {offsets = [0, 64], sizes = [1, 64], strides = [1, 1]} : vector<1x256xf32> to vector<1x64xf32>
    %26 = arith.addf %24, %25 : vector<1x64xf32>
    %27 = vector.extract_strided_slice %23 {offsets = [0, 128], sizes = [1, 64], strides = [1, 1]} : vector<1x256xf32> to vector<1x64xf32>
    %28 = arith.addf %26, %27 : vector<1x64xf32>
    %29 = vector.extract_strided_slice %23 {offsets = [0, 192], sizes = [1, 64], strides = [1, 1]} : vector<1x256xf32> to vector<1x64xf32>
    %30 = arith.addf %28, %29 : vector<1x64xf32>
    %cst_8 = arith.constant 2.500000e-01 : f32
    %31 = vector.broadcast %cst_8 : f32 to vector<1x64xf32>
    %32 = arith.mulf %30, %31 : vector<1x64xf32>
    %c0_9 = arith.constant 0 : index
    %c0_10 = arith.constant 0 : index
    %33 = vector.load %arg2[%c0_9, %c0_10] : memref<1x256xf32, #tpu.memory_space<vmem>>, vector<1x256xf32>
    %cst_11 = arith.constant 1.000000e-03 : f32
    %34 = vector.broadcast %cst_11 : f32 to vector<1x64xf32>
    %35 = arith.addf %32, %34 : vector<1x64xf32>
    %36 = math.rsqrt %35 : vector<1x64xf32>
    %37 = tpu.concatenate %36, %36, %36, %36 in 1 : vector<1x64xf32>, vector<1x64xf32>, vector<1x64xf32>, vector<1x64xf32> -> vector<1x256xf32>
    %38 = arith.mulf %33, %37 : vector<1x256xf32>
    %39 = vector.broadcast %38 : vector<1x256xf32> to vector<512x256xf32>
    %40 = arith.mulf %18, %39 : vector<512x256xf32>
    %c0_12 = arith.constant 0 : index
    %c0_13 = arith.constant 0 : index
    %41 = vector.load %arg3[%c0_12, %c0_13] : memref<1x256xf32, #tpu.memory_space<vmem>>, vector<1x256xf32>
    %42 = vector.broadcast %41 : vector<1x256xf32> to vector<512x256xf32>
    %43 = arith.addf %40, %42 : vector<512x256xf32>
    %cst_14 = arith.constant 0.000000e+00 : f32
    %44 = vector.broadcast %cst_14 : f32 to vector<512x256xf32>
    %45 = arith.maximumf %43, %44 : vector<512x256xf32>
    %46 = vector.extract_strided_slice %45 {offsets = [0, 0], sizes = [128, 256], strides = [1, 1]} : vector<512x256xf32> to vector<128x256xf32>
    %47 = vector.extract_strided_slice %45 {offsets = [128, 0], sizes = [128, 256], strides = [1, 1]} : vector<512x256xf32> to vector<128x256xf32>
    %48 = arith.maximumf %46, %47 : vector<128x256xf32>
    %49 = vector.extract_strided_slice %45 {offsets = [256, 0], sizes = [128, 256], strides = [1, 1]} : vector<512x256xf32> to vector<128x256xf32>
    %50 = vector.extract_strided_slice %45 {offsets = [384, 0], sizes = [128, 256], strides = [1, 1]} : vector<512x256xf32> to vector<128x256xf32>
    %51 = arith.maximumf %49, %50 : vector<128x256xf32>
    %52 = arith.maximumf %48, %51 : vector<128x256xf32>
    %53 = arith.truncf %52 : vector<128x256xf32> to vector<128x256xbf16>
    %c0_15 = arith.constant 0 : index
    %c0_16 = arith.constant 0 : index
    %54 = vector.load %arg4[%c0_15, %c0_16] : memref<256x128xbf16, #tpu.memory_space<vmem>>, vector<256x128xbf16>
    %cst_17 = arith.constant dense<0.000000e+00> : vector<128x128xf32>
    %55 = tpu.matmul %53, %54, %cst_17 {dimension_numbers = #tpu.dot_dimension_numbers<[1], [0], [0], [1], [0, 0, 1, 1], [], []>} : vector<128x256xbf16>, vector<256x128xbf16>, vector<128x128xf32> -> vector<128x128xf32>
    %c0_18 = arith.constant 0 : index
    %c0_19 = arith.constant 0 : index
    %56 = vector.load %arg5[%c0_18, %c0_19] : memref<1x128xf32, #tpu.memory_space<vmem>>, vector<1x128xf32>
    %c0_20 = arith.constant 0 : index
    %c0_21 = arith.constant 0 : index
    %57 = vector.load %arg6[%c0_20, %c0_21] : memref<1x128xf32, #tpu.memory_space<vmem>>, vector<1x128xf32>
    %cst_22 = arith.constant dense<0.000000e+00> : vector<128xf32>
    %58 = vector.multi_reduction <add>, %55, %cst_22 [0] : vector<128x128xf32> to vector<128xf32>
    %59 = vector.shape_cast %58 : vector<128xf32> to vector<1x128xf32>
    %cst_23 = arith.constant 1.280000e+02 : f32
    %60 = vector.broadcast %cst_23 : f32 to vector<1x128xf32>
    %61 = arith.divf %59, %60 : vector<1x128xf32>
    %62 = vector.broadcast %61 : vector<1x128xf32> to vector<128x128xf32>
    %63 = arith.subf %55, %62 : vector<128x128xf32>
    %64 = arith.mulf %63, %63 : vector<128x128xf32>
    %cst_24 = arith.constant dense<0.000000e+00> : vector<128xf32>
    %65 = vector.multi_reduction <add>, %64, %cst_24 [0] : vector<128x128xf32> to vector<128xf32>
    %66 = vector.shape_cast %65 : vector<128xf32> to vector<1x128xf32>
    %cst_25 = arith.constant 1.280000e+02 : f32
    %67 = vector.broadcast %cst_25 : f32 to vector<1x128xf32>
    %68 = arith.divf %66, %67 : vector<1x128xf32>
    %cst_26 = arith.constant 1.000000e-03 : f32
    %69 = vector.broadcast %cst_26 : f32 to vector<1x128xf32>
    %70 = arith.addf %68, %69 : vector<1x128xf32>
    %71 = math.rsqrt %70 : vector<1x128xf32>
    %72 = arith.mulf %56, %71 : vector<1x128xf32>
    %73 = vector.broadcast %72 : vector<1x128xf32> to vector<128x128xf32>
    %74 = arith.mulf %63, %73 : vector<128x128xf32>
    %75 = vector.broadcast %57 : vector<1x128xf32> to vector<128x128xf32>
    %76 = arith.addf %74, %75 : vector<128x128xf32>
    %cst_27 = arith.constant 0.000000e+00 : f32
    %77 = vector.broadcast %cst_27 : f32 to vector<128x128xf32>
    %78 = arith.maximumf %76, %77 : vector<128x128xf32>
    %79 = vector.extract_strided_slice %78 {offsets = [0, 0], sizes = [32, 128], strides = [1, 1]} : vector<128x128xf32> to vector<32x128xf32>
    %80 = vector.extract_strided_slice %78 {offsets = [32, 0], sizes = [32, 128], strides = [1, 1]} : vector<128x128xf32> to vector<32x128xf32>
    %81 = arith.maximumf %79, %80 : vector<32x128xf32>
    %82 = vector.extract_strided_slice %78 {offsets = [64, 0], sizes = [32, 128], strides = [1, 1]} : vector<128x128xf32> to vector<32x128xf32>
    %83 = vector.extract_strided_slice %78 {offsets = [96, 0], sizes = [32, 128], strides = [1, 1]} : vector<128x128xf32> to vector<32x128xf32>
    %84 = arith.maximumf %82, %83 : vector<32x128xf32>
    %85 = arith.maximumf %81, %84 : vector<32x128xf32>
    %86 = vector.extract_strided_slice %85 {offsets = [0, 0], sizes = [8, 128], strides = [1, 1]} : vector<32x128xf32> to vector<8x128xf32>
    %87 = vector.extract_strided_slice %85 {offsets = [8, 0], sizes = [8, 128], strides = [1, 1]} : vector<32x128xf32> to vector<8x128xf32>
    %88 = vector.extract_strided_slice %85 {offsets = [16, 0], sizes = [8, 128], strides = [1, 1]} : vector<32x128xf32> to vector<8x128xf32>
    %89 = vector.extract_strided_slice %85 {offsets = [24, 0], sizes = [8, 128], strides = [1, 1]} : vector<32x128xf32> to vector<8x128xf32>
    %90 = tpu.concatenate %86, %87, %88, %89 in 1 : vector<8x128xf32>, vector<8x128xf32>, vector<8x128xf32>, vector<8x128xf32> -> vector<8x512xf32>
    %91 = arith.truncf %90 : vector<8x512xf32> to vector<8x512xbf16>
    %c0_28 = arith.constant 0 : index
    %c0_29 = arith.constant 0 : index
    %92 = vector.load %arg7[%c0_28, %c0_29] : memref<512x256xbf16, #tpu.memory_space<vmem>>, vector<512x256xbf16>
    %cst_30 = arith.constant dense<0.000000e+00> : vector<8x256xf32>
    %93 = tpu.matmul %91, %92, %cst_30 {dimension_numbers = #tpu.dot_dimension_numbers<[1], [0], [0], [1], [0, 0, 1, 1], [], []>} : vector<8x512xbf16>, vector<512x256xbf16>, vector<8x256xf32> -> vector<8x256xf32>
    %c0_31 = arith.constant 0 : index
    %c0_32 = arith.constant 0 : index
    %94 = vector.load %arg8[%c0_31, %c0_32] : memref<1x256xf32, #tpu.memory_space<vmem>>, vector<1x256xf32>
    %c0_33 = arith.constant 0 : index
    %c0_34 = arith.constant 0 : index
    %95 = vector.load %arg9[%c0_33, %c0_34] : memref<1x256xf32, #tpu.memory_space<vmem>>, vector<1x256xf32>
    %cst_35 = arith.constant dense<0.000000e+00> : vector<256xf32>
    %96 = vector.multi_reduction <add>, %93, %cst_35 [0] : vector<8x256xf32> to vector<256xf32>
    %97 = vector.shape_cast %96 : vector<256xf32> to vector<1x256xf32>
    %cst_36 = arith.constant 8.000000e+00 : f32
    %98 = vector.broadcast %cst_36 : f32 to vector<1x256xf32>
    %99 = arith.divf %97, %98 : vector<1x256xf32>
    %100 = vector.broadcast %99 : vector<1x256xf32> to vector<8x256xf32>
    %101 = arith.subf %93, %100 : vector<8x256xf32>
    %102 = arith.mulf %101, %101 : vector<8x256xf32>
    %cst_37 = arith.constant dense<0.000000e+00> : vector<256xf32>
    %103 = vector.multi_reduction <add>, %102, %cst_37 [0] : vector<8x256xf32> to vector<256xf32>
    %104 = vector.shape_cast %103 : vector<256xf32> to vector<1x256xf32>
    %cst_38 = arith.constant 8.000000e+00 : f32
    %105 = vector.broadcast %cst_38 : f32 to vector<1x256xf32>
    %106 = arith.divf %104, %105 : vector<1x256xf32>
    %cst_39 = arith.constant 1.000000e-03 : f32
    %107 = vector.broadcast %cst_39 : f32 to vector<1x256xf32>
    %108 = arith.addf %106, %107 : vector<1x256xf32>
    %109 = math.rsqrt %108 : vector<1x256xf32>
    %110 = arith.mulf %94, %109 : vector<1x256xf32>
    %111 = vector.broadcast %110 : vector<1x256xf32> to vector<8x256xf32>
    %112 = arith.mulf %101, %111 : vector<8x256xf32>
    %113 = vector.broadcast %95 : vector<1x256xf32> to vector<8x256xf32>
    %114 = arith.addf %112, %113 : vector<8x256xf32>
    %cst_40 = arith.constant 0.000000e+00 : f32
    %115 = vector.broadcast %cst_40 : f32 to vector<8x256xf32>
    %116 = arith.maximumf %114, %115 : vector<8x256xf32>
    %117 = arith.truncf %116 : vector<8x256xf32> to vector<8x256xbf16>
    %c0_41 = arith.constant 0 : index
    %c0_42 = arith.constant 0 : index
    %118 = vector.load %arg10[%c0_41, %c0_42] : memref<256x7xbf16, #tpu.memory_space<vmem>>, vector<256x7xbf16>
    %cst_43 = arith.constant dense<0.000000e+00> : vector<8x7xf32>
    %119 = tpu.matmul %117, %118, %cst_43 {dimension_numbers = #tpu.dot_dimension_numbers<[1], [0], [0], [1], [0, 0, 1, 1], [], []>} : vector<8x256xbf16>, vector<256x7xbf16>, vector<8x7xf32> -> vector<8x7xf32>
    %c0_44 = arith.constant 0 : index
    %c0_45 = arith.constant 0 : index
    %120 = vector.load %arg11[%c0_44, %c0_45] : memref<1x7xf32, #tpu.memory_space<vmem>>, vector<1x7xf32>
    %c0_46 = arith.constant 0 : index
    %c0_47 = arith.constant 0 : index
    %121 = vector.load %arg12[%c0_46, %c0_47] : memref<1x7xf32, #tpu.memory_space<vmem>>, vector<1x7xf32>
    %cst_48 = arith.constant dense<0.000000e+00> : vector<7xf32>
    %122 = vector.multi_reduction <add>, %119, %cst_48 [0] : vector<8x7xf32> to vector<7xf32>
    %123 = vector.shape_cast %122 : vector<7xf32> to vector<1x7xf32>
    %cst_49 = arith.constant 8.000000e+00 : f32
    %124 = vector.broadcast %cst_49 : f32 to vector<1x7xf32>
    %125 = arith.divf %123, %124 : vector<1x7xf32>
    %126 = vector.broadcast %125 : vector<1x7xf32> to vector<8x7xf32>
    %127 = arith.subf %119, %126 : vector<8x7xf32>
    %128 = arith.mulf %127, %127 : vector<8x7xf32>
    %cst_50 = arith.constant dense<0.000000e+00> : vector<7xf32>
    %129 = vector.multi_reduction <add>, %128, %cst_50 [0] : vector<8x7xf32> to vector<7xf32>
    %130 = vector.shape_cast %129 : vector<7xf32> to vector<1x7xf32>
    %cst_51 = arith.constant 8.000000e+00 : f32
    %131 = vector.broadcast %cst_51 : f32 to vector<1x7xf32>
    %132 = arith.divf %130, %131 : vector<1x7xf32>
    %cst_52 = arith.constant 1.000000e-03 : f32
    %133 = vector.broadcast %cst_52 : f32 to vector<1x7xf32>
    %134 = arith.addf %132, %133 : vector<1x7xf32>
    %135 = math.rsqrt %134 : vector<1x7xf32>
    %136 = arith.mulf %120, %135 : vector<1x7xf32>
    %137 = vector.broadcast %136 : vector<1x7xf32> to vector<8x7xf32>
    %138 = arith.mulf %127, %137 : vector<8x7xf32>
    %139 = vector.broadcast %121 : vector<1x7xf32> to vector<8x7xf32>
    %140 = arith.addf %138, %139 : vector<8x7xf32>
    %cst_53 = arith.constant 0.000000e+00 : f32
    %141 = vector.broadcast %cst_53 : f32 to vector<8x7xf32>
    %142 = arith.maximumf %140, %141 : vector<8x7xf32>
    %c0_54 = arith.constant 0 : index
    %c0_55 = arith.constant 0 : index
    %143 = vector.load %arg13[%c0_54, %c0_55] : memref<8x7xf32, #tpu.memory_space<vmem>>, vector<8x7xf32>
    tpu.vector_store %arg13[%c0_54, %c0_55], %142 {strides = array<i32>} : memref<8x7xf32, #tpu.memory_space<vmem>>, vector<8x7xf32>,
    return
  }
}

</mosaic_0001>

<bundles_post_ra>
// kernel: conv_nn_forward.1
= control target key start
LH: loop header
LB: loop body
LE: loop exit
PB: predicated region body
PF: predicated region fallthrough
CT: control target
= control target key end

     0   :  { %s7226_s0 = inlined_call_operand.vmem [shape: bf16[512,64], index: 0, kind: input, shape index: {}]   ;;  %s7227_s1 = inlined_call_operand.vmem [shape: bf16[64,256], index: 1, kind: input, shape index: {}]   ;;  %s7228_s2 = inlined_call_operand.vmem [shape: f32[1,256], index: 2, kind: input, shape index: {}]   ;;  %s7229_s3 = inlined_call_operand.vmem [shape: f32[1,256], index: 3, kind: input, shape index: {}]   ;;  %s7230_s4 = inlined_call_operand.vmem [shape: bf16[256,128], index: 4, kind: input, shape index: {}]   ;;  %s7231_s5 = inlined_call_operand.vmem [shape: f32[1,128], index: 5, kind: input, shape index: {}]   ;;  %s7232_s6 = inlined_call_operand.vmem [shape: f32[1,128], index: 6, kind: input, shape index: {}]   ;;  %s7233_s7 = inlined_call_operand.vmem [shape: bf16[512,256], index: 7, kind: input, shape index: {}]   ;;  %s7234_s8 = inlined_call_operand.vmem [shape: f32[1,256], index: 8, kind: input, shape index: {}]   ;;  %s7235_s9 = inlined_call_operand.vmem [shape: f32[1,256], index: 9, kind: input, shape index: {}]   ;;  %s7236_s10 = inlined_call_operand.vmem [shape: bf16[256,7], index: 10, kind: input, shape index: {}]   ;;  %s7237_s11 = inlined_call_operand.vmem [shape: f32[1,7], index: 11, kind: input, shape index: {}]   ;;  %s7238_s12 = inlined_call_operand.vmem [shape: f32[1,7], index: 12, kind: input, shape index: {}]   ;;  %s7239_s13 = inlined_call_operand.hbm [shape: f32[8,7], index: 13, kind: output, shape index: {}]  }
   0x1   :  { %v3191_v0 = vld [vmem:[%s7227_s1 + $0x30] sm:$0xf]  ;;  %v3684_v1 = vld [vmem:[%s7227_s1 + $0x34] sm:$0xf0]  ;;  %v3683_v2 = vld [vmem:[%s7227_s1 + $0x34] sm:$0xf] }
   0x2   :  { %v3192_v3 = vor.u32 %v3684_v1, %v3191_v0  ;;  %v3193_v4 = vld [vmem:[%s7227_s1 + $0x38] sm:$0xf0]  ;;  %v3183_v5 = vld [vmem:[%s7227_s1 + $0x20] sm:$0xf]  ;;  %v3682_v6 = vld [vmem:[%s7227_s1 + $0x24] sm:$0xf0] }
   0x3   :  { %v3196_v7 = vor.u32 %v3683_v2, %v3193_v4  ;;  %v3681_v8 = vld [vmem:[%s7227_s1 + $0x24] sm:$0xf]  ;;  %v3185_v9 = vld [vmem:[%s7227_s1 + $0x28] sm:$0xf0]  ;;  %v3184_v10 = vor.u32 %v3682_v6, %v3183_v5  ;;  %v3175_v12 = vld [vmem:[%s7227_s1 + $0x10] sm:$0xf] }
   0x4   :  { %419 = vmatpush.bf16.msra.mxu0 %v3192_v3  ;;  %3781 = vmatpush.bf16.msra.mxu2 %v3192_v3  ;;  %v3188_v11 = vor.u32 %v3681_v8, %v3185_v9  ;;  %v3680_v13 = vld [vmem:[%s7227_s1 + $0x14] sm:$0xf0]  ;;  %v3679_v14 = vld [vmem:[%s7227_s1 + $0x14] sm:$0xf]  ;;  %v3177_v15 = vld [vmem:[%s7227_s1 + $0x18] sm:$0xf0] }
   0x5   :  { %588 = vmatpush.bf16.msra.mxu1 %v3196_v7  ;;  %3785 = vmatpush.bf16.msra.mxu3 %v3196_v7 }
   0x6   :  { %18 = vsyncpa [#allocation3], 0  ;;  %v3176_v16 = vor.u32 %v3680_v13, %v3175_v12  ;;  %v3180_v17 = vor.u32 %v3679_v14, %v3177_v15  ;;  %v3167_v18 = vld [vmem:[%s7227_s1] sm:$0xf]  ;;  %v3678_v19 = vld [vmem:[%s7227_s1 + $0x4] sm:$0xf0] }
   0x7   :  { %v3677_v20 = vld [vmem:[%s7227_s1 + $0x4] sm:$0xf]  ;;  %v3169_v21 = vld [vmem:[%s7227_s1 + $0x8] sm:$0xf0]  ;;  %v3168_v22 = vor.u32 %v3678_v19, %v3167_v18  ;;  %vm318_vm0 = vcmask 523264   ;;  %v3647_v26 = vld [vmem:[%s7226_s0 + $0x10] sm:$0xff] }
   0x8   :  { %420 = vmatpush.bf16.msra.mxu0 %v3184_v10  ;;  %3782 = vmatpush.bf16.msra.mxu2 %v3184_v10  ;;  %v3172_v23 = vor.u32 %v3677_v20, %v3169_v21  ;;  %v3645_v24 = vld [vmem:[%s7226_s0] sm:$0xff]  ;;  %v3646_v25 = vld [vmem:[%s7226_s0 + $0x8] sm:$0xff]  ;;  %v3648_v27 = vld [vmem:[%s7226_s0 + $0x18] sm:$0xff]  ;;  %vm1345_vm5 = vcmask 1040384   ;;  %s3028_s27 = sshll.u32 %s7239_s13, 4  ;;  %s3029_s27 = int_to_ptr.hbm [resolvable:$true] %s3028_s27 }
   0x9   :  { %589 = vmatpush.bf16.msra.mxu1 %v3188_v11  ;;  %3786 = vmatpush.bf16.msra.mxu3 %v3188_v11  ;;  %v3649_v28 = vld [vmem:[%s7226_s0 + $0x20] sm:$0xff]  ;;  %v3650_v29 = vld [vmem:[%s7226_s0 + $0x28] sm:$0xff]  ;;  %v3651_v30 = vld [vmem:[%s7226_s0 + $0x30] sm:$0xff] }
   0xa   :  { %v3652_v31 = vld [vmem:[%s7226_s0 + $0x38] sm:$0xff]  ;;  %v3653_v32 = vld [vmem:[%s7226_s0 + $0x40] sm:$0xff]  ;;  %v3654_v37 = vld [vmem:[%s7226_s0 + $0x48] sm:$0xff] }
   0xb   :  { %v3655_v42 = vld [vmem:[%s7226_s0 + $0x50] sm:$0xff]  ;;  %v3656_v47 = vld [vmem:[%s7226_s0 + $0x58] sm:$0xff]  ;;  %v3657_v52 = vld [vmem:[%s7226_s0 + $0x60] sm:$0xff] }
   0xc   :  { %421 = vmatpush.bf16.msra.mxu0 %v3176_v16  ;;  %3783 = vmatpush.bf16.msra.mxu2 %v3176_v16  ;;  %v3658_v57 = vld [vmem:[%s7226_s0 + $0x68] sm:$0xff]  ;;  %v3659_v62 = vld [vmem:[%s7226_s0 + $0x70] sm:$0xff]  ;;  %v3660_v3 = vld [vmem:[%s7226_s0 + $0x78] sm:$0xff] }
   0xd   :  { %590 = vmatpush.bf16.msra.mxu1 %v3180_v17  ;;  %3787 = vmatpush.bf16.msra.mxu3 %v3180_v17  ;;  %v3661_v8 = vld [vmem:[%s7226_s0 + $0x80] sm:$0xff]  ;;  %v3662_v13 = vld [vmem:[%s7226_s0 + $0x88] sm:$0xff]  ;;  %v3663_v19 = vld [vmem:[%s7226_s0 + $0x90] sm:$0xff] }
   0xe   :  { %v3670_v15 = vld [vmem:[%s7226_s0 + $0xc8] sm:$0xff]  ;;  %v3671_v21 = vld [vmem:[%s7226_s0 + $0xd0] sm:$0xff] }
  0x10   :  { %422 = vmatpush.bf16.msra.mxu0 %v3168_v22  ;;  %3784 = vmatpush.bf16.msra.mxu2 %v3168_v22 }
  0x11   :  { %591 = vmatpush.bf16.msra.mxu1 %v3172_v23  ;;  %3788 = vmatpush.bf16.msra.mxu3 %v3172_v23 }
  0x13   :  { %3197 = vmatmul.msk.bf16.vlgmr.msra.gmra.mxu0 %vm318_vm0, %v3645_v24  ;;  %3222 = vmatmul.msk.bf16.vlgmr.msra.gmra.mxu2 %vm318_vm0, %v3670_v15 }
  0x14   :  { %3229 = vmatmul.msk.bf16.vlgmr.msra.gmra.mxu1 %vm318_vm0, %v3645_v24  ;;  %3254 = vmatmul.msk.bf16.vlgmr.msra.gmra.mxu3 %vm318_vm0, %v3670_v15 }
  0x23   :  { %3198 = vmatmul.msk.bf16.gmra.mxu0 %vm318_vm0, %v3646_v25  ;;  %3223 = vmatmul.msk.bf16.gmra.mxu2 %vm318_vm0, %v3671_v21 }
  0x24   :  { %3230 = vmatmul.msk.bf16.gmra.mxu1 %vm318_vm0, %v3646_v25  ;;  %3255 = vmatmul.msk.bf16.gmra.mxu3 %vm318_vm0, %v3671_v21  ;;  %v3664_v25 = vld [vmem:[%s7226_s0 + $0x98] sm:$0xff] }
  0x33   :  { %3199 = vmatmul.msk.bf16.gmra.mxu0 %vm318_vm0, %v3647_v26 }
  0x34   :  { %3231 = vmatmul.msk.bf16.gmra.mxu1 %vm318_vm0, %v3647_v26 }
  0x43   :  { %3200 = vmatmul.msk.bf16.gmra.mxu0 %vm318_vm0, %v3648_v27 }
  0x44   :  { %3232 = vmatmul.msk.bf16.gmra.mxu1 %vm318_vm0, %v3648_v27  ;;  %v3672_v27 = vld [vmem:[%s7226_s0 + $0xd8] sm:$0xff] }
  0x45   :  { %3224 = vmatmul.msk.bf16.gmra.mxu2 %vm318_vm0, %v3672_v27  ;;  %3256 = vmatmul.msk.bf16.gmra.mxu3 %vm318_vm0, %v3672_v27 }
  0x53   :  { %3201 = vmatmul.msk.bf16.gmra.mxu0 %vm318_vm0, %v3649_v28 }
  0x54   :  { %3233 = vmatmul.msk.bf16.gmra.mxu1 %vm318_vm0, %v3649_v28 }
  0x63   :  { %3202 = vmatmul.msk.bf16.gmra.mxu0 %vm318_vm0, %v3650_v29 }
  0x64   :  { %3234 = vmatmul.msk.bf16.gmra.mxu1 %vm318_vm0, %v3650_v29 }
  0x73   :  { %3203 = vmatmul.msk.bf16.gmra.mxu0 %vm318_vm0, %v3651_v30 }
  0x74   :  { %3235 = vmatmul.msk.bf16.gmra.mxu1 %vm318_vm0, %v3651_v30 }
  0x83   :  { %3204 = vmatmul.msk.bf16.gmra.mxu0 %vm318_vm0, %v3652_v31 }
  0x84   :  { %3236 = vmatmul.msk.bf16.gmra.mxu1 %vm318_vm0, %v3652_v31  ;;  %v3665_v31 = vld [vmem:[%s7226_s0 + $0xa0] sm:$0xff] }
  0x90   :  { %v4004_v33 = vpop.f32.mrf.mxu0 }
  0x91   :  { %7466 = vst [vmem:[#allocation5_spill] sm:$0xff] %v4004_v33  ;;  %v4006_v34 = vpop.f32.mrf.mxu1 }
  0x92   :  { %7467 = vst [vmem:[#allocation6_spill] sm:$0xff] %v4006_v34 }
  0x93   :  { %3205 = vmatmul.msk.bf16.gmra.mxu0 %vm318_vm0, %v3653_v32 }
  0x94   :  { %3237 = vmatmul.msk.bf16.gmra.mxu1 %vm318_vm0, %v3653_v32 }
  0x98   :  { %v4010_v35 = vpop.f32.mrf.mxu0 }
  0x99   :  { %7468 = vst [vmem:[#allocation7_spill] sm:$0xff] %v4010_v35  ;;  %v4012_v36 = vpop.f32.mrf.mxu1 }
  0x9a   :  { %7469 = vst [vmem:[#allocation8_spill] sm:$0xff] %v4012_v36 }
  0xa0   :  { %v4017_v38 = vpop.f32.mrf.mxu0 }
  0xa1   :  { %7470 = vst [vmem:[#allocation9_spill] sm:$0xff] %v4017_v38  ;;  %v4019_v39 = vpop.f32.mrf.mxu1 }
  0xa3   :  { %3206 = vmatmul.msk.bf16.gmra.mxu0 %vm318_vm0, %v3654_v37 }
  0xa4   :  { %3238 = vmatmul.msk.bf16.gmra.mxu1 %vm318_vm0, %v3654_v37  ;;  %v3673_v37 = vld [vmem:[%s7226_s0 + $0xe0] sm:$0xff] }
  0xa5   :  { %3225 = vmatmul.msk.bf16.gmra.mxu2 %vm318_vm0, %v3673_v37  ;;  %3257 = vmatmul.msk.bf16.gmra.mxu3 %vm318_vm0, %v3673_v37 }
  0xa8   :  { %v4023_v40 = vpop.f32.mrf.mxu0 }
  0xa9   :  { %7471 = vst [vmem:[#allocation10_spill] sm:$0xff] %v4023_v40  ;;  %v4025_v41 = vpop.f32.mrf.mxu1 }
  0xb0   :  { %v4030_v43 = vpop.f32.mrf.mxu0 }
  0xb1   :  { %7472 = vst [vmem:[#allocation11_spill] sm:$0xff] %v4030_v43  ;;  %v4032_v44 = vpop.f32.mrf.mxu1 }
  0xb3   :  { %3207 = vmatmul.msk.bf16.gmra.mxu0 %vm318_vm0, %v3655_v42 }
  0xb4   :  { %3239 = vmatmul.msk.bf16.gmra.mxu1 %vm318_vm0, %v3655_v42 }
  0xb8   :  { %v4036_v45 = vpop.f32.mrf.mxu0 }
  0xb9   :  { %7473 = vst [vmem:[#allocation12_spill] sm:$0xff] %v4036_v45  ;;  %v4038_v46 = vpop.f32.mrf.mxu1 }
  0xc0   :  { %v4043_v48 = vpop.f32.mrf.mxu0 }
  0xc1   :  { %7474 = vst [vmem:[#allocation13_spill] sm:$0xff] %v4043_v48  ;;  %v4045_v49 = vpop.f32.mrf.mxu1 }
  0xc3   :  { %3208 = vmatmul.msk.bf16.gmra.mxu0 %vm318_vm0, %v3656_v47 }
  0xc4   :  { %3240 = vmatmul.msk.bf16.gmra.mxu1 %vm318_vm0, %v3656_v47 }
  0xc8   :  { %v4049_v50 = vpop.f32.mrf.mxu0 }
  0xc9   :  { %7475 = vst [vmem:[#allocation14_spill] sm:$0xff] %v4049_v50  ;;  %v4051_v51 = vpop.f32.mrf.mxu1 }
  0xd0   :  { %v4056_v53 = vpop.f32.mrf.mxu0 }
  0xd1   :  { %7476 = vst [vmem:[#allocation15_spill] sm:$0xff] %v4056_v53  ;;  %v4058_v54 = vpop.f32.mrf.mxu1 }
  0xd3   :  { %3209 = vmatmul.msk.bf16.gmra.mxu0 %vm318_vm0, %v3657_v52 }
  0xd4   :  { %3241 = vmatmul.msk.bf16.gmra.mxu1 %vm318_vm0, %v3657_v52 }
  0xd8   :  { %v4062_v55 = vpop.f32.mrf.mxu0 }
  0xd9   :  { %7477 = vst [vmem:[#allocation16_spill] sm:$0xff] %v4062_v55  ;;  %v4064_v56 = vpop.f32.mrf.mxu1 }
  0xe0   :  { %v4069_v58 = vpop.f32.mrf.mxu0 }
  0xe1   :  { %7478 = vst [vmem:[#allocation17_spill] sm:$0xff] %v4069_v58  ;;  %v4071_v59 = vpop.f32.mrf.mxu1 }
  0xe3   :  { %3210 = vmatmul.msk.bf16.gmra.mxu0 %vm318_vm0, %v3658_v57 }
  0xe4   :  { %3242 = vmatmul.msk.bf16.gmra.mxu1 %vm318_vm0, %v3658_v57  ;;  %v3666_v57 = vld [vmem:[%s7226_s0 + $0xa8] sm:$0xff] }
  0xe8   :  { %v4075_v60 = vpop.f32.mrf.mxu0 }
  0xe9   :  { %7479 = vst [vmem:[#allocation18_spill] sm:$0xff] %v4075_v60  ;;  %v4077_v61 = vpop.f32.mrf.mxu1 }
  0xf0   :  { %v4082_v63 = vpop.f32.mrf.mxu0 }
  0xf1   :  { %7480 = vst [vmem:[#allocation19_spill] sm:$0xff] %v4082_v63  ;;  %v4084_v0 = vpop.f32.mrf.mxu1 }
  0xf3   :  { %3211 = vmatmul.msk.bf16.gmra.mxu0 %vm318_vm0, %v3659_v62 }
  0xf4   :  { %3243 = vmatmul.msk.bf16.gmra.mxu1 %vm318_vm0, %v3659_v62 }
  0xf8   :  { %v4088_v1 = vpop.f32.mrf.mxu0 }
  0xf9   :  { %7481 = vst [vmem:[#allocation20_spill] sm:$0xff] %v4088_v1  ;;  %v4090_v2 = vpop.f32.mrf.mxu1 }
 0x100   :  { %v4095_v4 = vpop.f32.mrf.mxu0 }
 0x101   :  { %7482 = vst [vmem:[#allocation21_spill] sm:$0xff] %v4095_v4  ;;  %v4097_v5 = vpop.f32.mrf.mxu1 }
 0x102   :  { %7483 = vst [vmem:[#allocation22_spill] sm:$0xff] %v4097_v5 }
 0x103   :  { %3212 = vmatmul.msk.bf16.gmra.mxu0 %vm318_vm0, %v3660_v3 }
 0x104   :  { %3244 = vmatmul.msk.bf16.gmra.mxu1 %vm318_vm0, %v3660_v3  ;;  %v3674_v3 = vld [vmem:[%s7226_s0 + $0xe8] sm:$0xff] }
 0x105   :  { %3226 = vmatmul.msk.bf16.gmra.mxu2 %vm318_vm0, %v3674_v3  ;;  %3258 = vmatmul.msk.bf16.gmra.mxu3 %vm318_vm0, %v3674_v3 }
 0x108   :  { %v4101_v6 = vpop.f32.mrf.mxu0 }
 0x109   :  { %7484 = vst [vmem:[#allocation23_spill] sm:$0xff] %v4101_v6  ;;  %v4103_v7 = vpop.f32.mrf.mxu1 }
 0x10a   :  { %7485 = vst [vmem:[#allocation24_spill] sm:$0xff] %v4103_v7 }
 0x110   :  { %v4108_v9 = vpop.f32.mrf.mxu0 }
 0x111   :  { %7486 = vst [vmem:[#allocation25_spill] sm:$0xff] %v4108_v9  ;;  %v4110_v10 = vpop.f32.mrf.mxu1 }
 0x112   :  { %7487 = vst [vmem:[#allocation26_spill] sm:$0xff] %v4110_v10 }
 0x113   :  { %3213 = vmatmul.msk.bf16.gmra.mxu0 %vm318_vm0, %v3661_v8 }
 0x114   :  { %3245 = vmatmul.msk.bf16.gmra.mxu1 %vm318_vm0, %v3661_v8 }
 0x118   :  { %v4114_v11 = vpop.f32.mrf.mxu0 }
 0x119   :  { %7488 = vst [vmem:[#allocation27_spill] sm:$0xff] %v4114_v11  ;;  %v4116_v12 = vpop.f32.mrf.mxu1 }
 0x11a   :  { %7489 = vst [vmem:[#allocation28_spill] sm:$0xff] %v4116_v12 }
 0x120   :  { %v4121_v14 = vpop.f32.mrf.mxu0 }
 0x121   :  { %7490 = vst [vmem:[#allocation29_spill] sm:$0xff] %v4121_v14  ;;  %v4126_v16 = vpop.f32.mrf.mxu1 }
 0x122   :  { %7491 = vst [vmem:[#allocation30_spill] sm:$0xff] %v4126_v16 }
 0x123   :  { %3214 = vmatmul.msk.bf16.gmra.mxu0 %vm318_vm0, %v3662_v13 }
 0x124   :  { %3246 = vmatmul.msk.bf16.gmra.mxu1 %vm318_vm0, %v3662_v13 }
 0x128   :  { %v4132_v17 = vpop.f32.mrf.mxu0 }
 0x129   :  { %7492 = vst [vmem:[#allocation31_spill] sm:$0xff] %v4132_v17  ;;  %v4134_v18 = vpop.f32.mrf.mxu1 }
 0x12a   :  { %7493 = vst [vmem:[#allocation32_spill] sm:$0xff] %v4134_v18 }
 0x130   :  { %v4139_v20 = vpop.f32.mrf.mxu0 }
 0x131   :  { %7494 = vst [vmem:[#allocation33_spill] sm:$0xff] %v4139_v20  ;;  %v4144_v22 = vpop.f32.mrf.mxu1 }
 0x132   :  { %7495 = vst [vmem:[#allocation34_spill] sm:$0xff] %v4144_v22 }
 0x133   :  { %3215 = vmatmul.msk.bf16.gmra.mxu0 %vm318_vm0, %v3663_v19 }
 0x134   :  { %3247 = vmatmul.msk.bf16.gmra.mxu1 %vm318_vm0, %v3663_v19  ;;  %v3667_v19 = vld [vmem:[%s7226_s0 + $0xb0] sm:$0xff] }
 0x138   :  { %v4150_v23 = vpop.f32.mrf.mxu0 }
 0x139   :  { %7496 = vst [vmem:[#allocation35_spill] sm:$0xff] %v4150_v23  ;;  %v4152_v24 = vpop.f32.mrf.mxu1 }
 0x13a   :  { %7497 = vst [vmem:[#allocation36_spill] sm:$0xff] %v4152_v24 }
 0x140   :  { %v4157_v26 = vpop.f32.mrf.mxu0 }
 0x141   :  { %7498 = vst [vmem:[#allocation37_spill] sm:$0xff] %v4157_v26  ;;  %v4162_v28 = vpop.f32.mrf.mxu1 }
 0x142   :  { %7499 = vst [vmem:[#allocation38_spill] sm:$0xff] %v4162_v28 }
 0x143   :  { %3216 = vmatmul.msk.bf16.gmra.mxu0 %vm318_vm0, %v3664_v25 }
 0x144   :  { %3248 = vmatmul.msk.bf16.gmra.mxu1 %vm318_vm0, %v3664_v25  ;;  %v3675_v25 = vld [vmem:[%s7226_s0 + $0xf0] sm:$0xff] }
 0x145   :  { %3227 = vmatmul.msk.bf16.gmra.mxu2 %vm318_vm0, %v3675_v25  ;;  %3259 = vmatmul.msk.bf16.gmra.mxu3 %vm318_vm0, %v3675_v25 }
 0x148   :  { %v4168_v29 = vpop.f32.mrf.mxu0 }
 0x149   :  { %7500 = vst [vmem:[#allocation39_spill] sm:$0xff] %v4168_v29  ;;  %v4170_v30 = vpop.f32.mrf.mxu1 }
 0x14a   :  { %7501 = vst [vmem:[#allocation40_spill] sm:$0xff] %v4170_v30 }
 0x150   :  { %v4175_v32 = vpop.f32.mrf.mxu0 }
 0x151   :  { %7502 = vst [vmem:[#allocation41_spill] sm:$0xff] %v4175_v32  ;;  %v4180_v42 = vpop.f32.mrf.mxu1 }
 0x152   :  { %7503 = vst [vmem:[#allocation42_spill] sm:$0xff] %v4180_v42 }
 0x153   :  { %3217 = vmatmul.msk.bf16.gmra.mxu0 %vm318_vm0, %v3665_v31 }
 0x154   :  { %3249 = vmatmul.msk.bf16.gmra.mxu1 %vm318_vm0, %v3665_v31 }
 0x158   :  { %v4186_v47 = vpop.f32.mrf.mxu0 }
 0x159   :  { %7504 = vst [vmem:[#allocation43_spill] sm:$0xff] %v4186_v47  ;;  %v4188_v52 = vpop.f32.mrf.mxu1 }
 0x15a   :  { %7505 = vst [vmem:[#allocation44_spill] sm:$0xff] %v4188_v52 }
 0x160   :  { %v4193_v62 = vpop.f32.mrf.mxu0 }
 0x161   :  { %7506 = vst [vmem:[#allocation45_spill] sm:$0xff] %v4193_v62  ;;  %v4198_v8 = vpop.f32.mrf.mxu1 }
 0x162   :  { %7507 = vst [vmem:[#allocation46_spill] sm:$0xff] %v4198_v8  ;;  %v4271_v8 = vpop.f32.mrf.mxu2 }
 0x163   :  { %3218 = vmatmul.msk.bf16.gmra.mxu0 %vm318_vm0, %v3666_v57  ;;  %7529 = vst [vmem:[#allocation68_spill] sm:$0xff] %v4271_v8 }
 0x164   :  { %3250 = vmatmul.msk.bf16.gmra.mxu1 %vm318_vm0, %v3666_v57  ;;  %v3668_v57 = vld [vmem:[%s7226_s0 + $0xb8] sm:$0xff] }
 0x168   :  { %v4204_v13 = vpop.f32.mrf.mxu0 }
 0x169   :  { %7508 = vst [vmem:[#allocation47_spill] sm:$0xff] %v4204_v13  ;;  %v4206_v15 = vpop.f32.mrf.mxu1 }
 0x16a   :  { %7509 = vst [vmem:[#allocation48_spill] sm:$0xff] %v4206_v15 }
 0x170   :  { %v4211_v21 = vpop.f32.mrf.mxu0 }
 0x171   :  { %7510 = vst [vmem:[#allocation49_spill] sm:$0xff] %v4211_v21  ;;  %v4216_v27 = vpop.f32.mrf.mxu1 }
 0x172   :  { %7511 = vst [vmem:[#allocation50_spill] sm:$0xff] %v4216_v27  ;;  %v3676_v27 = vld [vmem:[%s7226_s0 + $0xf8] sm:$0xff] }
 0x173   :  { %3219 = vmatmul.msk.bf16.gmra.mxu0 %vm318_vm0, %v3667_v19  ;;  %3228 = vmatmul.msk.bf16.gmra.mxu2 %vm318_vm0, %v3676_v27 }
 0x174   :  { %3251 = vmatmul.msk.bf16.gmra.mxu1 %vm318_vm0, %v3667_v19  ;;  %3260 = vmatmul.msk.bf16.gmra.mxu3 %vm318_vm0, %v3676_v27 }
 0x178   :  { %v4222_v31 = vpop.f32.mrf.mxu0 }
 0x179   :  { %7512 = vst [vmem:[#allocation51_spill] sm:$0xff] %v4222_v31  ;;  %v4224_v37 = vpop.f32.mrf.mxu1 }
 0x17a   :  { %7513 = vst [vmem:[#allocation52_spill] sm:$0xff] %v4224_v37 }
 0x180   :  { %v4229_v3 = vpop.f32.mrf.mxu0 }
 0x181   :  { %7514 = vst [vmem:[#allocation53_spill] sm:$0xff] %v4229_v3  ;;  %v4234_v21 = vpop.f32.mrf.mxu1  ;;  %v3669_v3 = vld [vmem:[%s7226_s0 + $0xc0] sm:$0xff]  ;;  %s3839_s0 = smov 64  }
 0x182   :  { %7515 = vst [vmem:[#allocation54_spill] sm:$0xff] %v4234_v21 }
 0x183   :  { %3220 = vmatmul.msk.bf16.gmra.mxu0 %vm318_vm0, %v3668_v57 }
 0x184   :  { %3252 = vmatmul.msk.bf16.gmra.mxu1 %vm318_vm0, %v3668_v57 }
 0x188   :  { %v4240_v19 = vpop.f32.mrf.mxu0 }
 0x189   :  { %7516 = vst [vmem:[#allocation55_spill] sm:$0xff] %v4240_v19  ;;  %v4242_v25 = vpop.f32.mrf.mxu1 }
 0x18a   :  { %7517 = vst [vmem:[#allocation56_spill] sm:$0xff] %v4242_v25 }
 0x190   :  { %v4247_v37 = vpop.f32.mrf.mxu0 }
 0x191   :  { %7518 = vst [vmem:[#allocation57_spill] sm:$0xff] %v4247_v37  ;;  %v4249_v31 = vpop.f32.mrf.mxu1 }
 0x192   :  { %7519 = vst [vmem:[#allocation58_spill] sm:$0xff] %v4249_v31  ;;  %v4269_v31 = vpop.f32.mrf.mxu3 }
 0x193   :  { %3221 = vmatmul.msk.bf16.gmra.mxu0 %vm318_vm0, %v3669_v3  ;;  %7528 = vst [vmem:[#allocation67_spill] sm:$0xff] %v4269_v31 }
 0x194   :  { %3253 = vmatmul.msk.bf16.gmra.mxu1 %vm318_vm0, %v3669_v3 }
 0x198   :  { %v4253_v27 = vpop.f32.mrf.mxu0 }
 0x199   :  { %7520 = vst [vmem:[#allocation59_spill] sm:$0xff] %v4253_v27  ;;  %v4255_v21 = vpop.f32.mrf.mxu1 }
 0x19a   :  { %7521 = vst [vmem:[#allocation60_spill] sm:$0xff] %v4255_v21  ;;  %v753_v21 = vadd.f32 %v4010_v35, %v4004_v33 }
 0x1a0   :  { %v4257_v57 = vpop.f32.mrf.mxu0 }
 0x1a1   :  { %7522 = vst [vmem:[#allocation61_spill] sm:$0xff] %v4257_v57  ;;  %v4259_v19 = vpop.f32.mrf.mxu1 }
 0x1a2   :  { %7523 = vst [vmem:[#allocation62_spill] sm:$0xff] %v4259_v19  ;;  %v4282_v19 = vpop.f32.mrf.mxu3 }
 0x1a8   :  { %v4261_v25 = vpop.f32.mrf.mxu0 }
 0x1a9   :  { %7524 = vst [vmem:[#allocation63_spill] sm:$0xff] %v4261_v25  ;;  %v4263_v15 = vpop.f32.mrf.mxu1  ;;  %v822_v25 = vadd.f32 %v4012_v36, %v4006_v34 }
 0x1aa   :  { %7525 = vst [vmem:[#allocation64_spill] sm:$0xff] %v4263_v15  ;;  %v754_v15 = vadd.f32 %v753_v21, %v4017_v38 }
 0x1ac   :  { %v755_v31 = vadd.f32 %v754_v15, %v4023_v40  ;;  %v4300_v40 = vpop.f32.mrf.mxu3 }
 0x1b0   :  { %v4265_v13 = vpop.f32.mrf.mxu0 }
 0x1b1   :  { %7526 = vst [vmem:[#allocation65_spill] sm:$0xff] %v4265_v13  ;;  %v4267_v37 = vpop.f32.mrf.mxu1  ;;  %v4285_v13 = vpop.f32.mrf.mxu2 }
 0x1b2   :  { %7527 = vst [vmem:[#allocation66_spill] sm:$0xff] %v4267_v37  ;;  %v823_v37 = vadd.f32 %v822_v25, %v4019_v39 }
 0x1b3   :  { %7531 = vst [vmem:[#allocation70_spill] sm:$0xff] %v4285_v13 }
 0x1b4   :  { %v824_v8 = vadd.f32 %v823_v37, %v4025_v41 }
 0x1b6   :  { %v825_v35 = vadd.f32 %v824_v8, %v4032_v44 }
 0x1b8   :  { %v4273_v3 = vpop.f32.mrf.mxu0  ;;  %v826_v21 = vadd.f32 %v825_v35, %v4038_v46 }
 0x1b9   :  { %7530 = vst [vmem:[#allocation69_spill] sm:$0xff] %v4273_v3  ;;  %v4277_v57 = vpop.f32.mrf.mxu1  ;;  %v756_v3 = vadd.f32 %v755_v31, %v4030_v43  ;;  %v4303_v37 = vpop.f32.mrf.mxu2 }
 0x1ba   :  { %v827_v38 = vadd.f32 %v826_v21, %v4045_v49  ;;  %7533 = vst [vmem:[#allocation72_spill] sm:$0xff] %v4303_v37 }
 0x1bb   :  { %v757_v36 = vadd.f32 %v756_v3, %v4036_v45 }
 0x1bc   :  { %v828_v31 = vadd.f32 %v827_v38, %v4051_v51 }
 0x1bd   :  { %v758_v25 = vadd.f32 %v757_v36, %v4043_v48 }
 0x1be   :  { %v829_v3 = vadd.f32 %v828_v31, %v4058_v54 }
 0x1bf   :  { %v759_v15 = vadd.f32 %v758_v25, %v4049_v50 }
 0x1c0   :  { %v4291_v33 = vpop.f32.mrf.mxu0  ;;  %v830_v36 = vadd.f32 %v829_v3, %v4064_v56 }
 0x1c1   :  { %7532 = vst [vmem:[#allocation71_spill] sm:$0xff] %v4291_v33  ;;  %v4294_v34 = vpop.f32.mrf.mxu1  ;;  %v760_v8 = vadd.f32 %v759_v15, %v4056_v53  ;;  %v4318_v53 = vpop.f32.mrf.mxu3 }
 0x1c2   :  { %v831_v25 = vadd.f32 %v830_v36, %v4071_v59 }
 0x1c3   :  { %v761_v35 = vadd.f32 %v760_v8, %v4062_v55  ;;  %v4323_v8 = vpop.f32.mrf.mxu2 }
 0x1c4   :  { %v832_v50 = vadd.f32 %v831_v25, %v4077_v61  ;;  %7536 = vst [vmem:[#allocation75_spill] sm:$0xff] %v4323_v8 }
 0x1c5   :  { %v762_v21 = vadd.f32 %v761_v35, %v4069_v58 }
 0x1c6   :  { %v833_v31 = vadd.f32 %v832_v50, %v4084_v0 }
 0x1c7   :  { %v763_v38 = vadd.f32 %v762_v21, %v4075_v60 }
 0x1c8   :  { %v4307_v45 = vpop.f32.mrf.mxu0  ;;  %v834_v35 = vadd.f32 %v833_v31, %v4090_v2 }
 0x1c9   :  { %7534 = vst [vmem:[#allocation73_spill] sm:$0xff] %v4307_v45  ;;  %v4310_v43 = vpop.f32.mrf.mxu1  ;;  %v764_v15 = vadd.f32 %v763_v38, %v4082_v63  ;;  %v4340_v58 = vpop.f32.mrf.mxu3 }
 0x1ca   :  { %v835_v21 = vadd.f32 %v834_v35, %v4097_v5 }
 0x1cb   :  { %v765_v3 = vadd.f32 %v764_v15, %v4088_v1 }
 0x1cc   :  { %v836_v38 = vadd.f32 %v835_v21, %v4103_v7  ;;  %v7567_v7 = vld [vmem:[#allocation69_spill] sm:$0xff] }
 0x1cd   :  { %v766_v36 = vadd.f32 %v765_v3, %v4095_v4  ;;  %v4343_v3 = vpop.f32.mrf.mxu2  ;;  %v7543_v4 = vld [vmem:[#allocation47_spill] sm:$0xff] }
 0x1ce   :  { %v837_v63 = vadd.f32 %v836_v38, %v4110_v10  ;;  %7538 = vst [vmem:[#allocation77_spill] sm:$0xff] %v4343_v3 }
 0x1cf   :  { %v767_v25 = vadd.f32 %v766_v36, %v4101_v6 }
 0x1d0   :  { %v4321_v48 = vpop.f32.mrf.mxu0  ;;  %v838_v31 = vadd.f32 %v837_v63, %v4116_v12 }
 0x1d1   :  { %7535 = vst [vmem:[#allocation74_spill] sm:$0xff] %v4321_v48  ;;  %v4326_v55 = vpop.f32.mrf.mxu1  ;;  %v768_v50 = vadd.f32 %v767_v25, %v4108_v9 }
 0x1d2   :  { %v839_v36 = vadd.f32 %v838_v31, %v4126_v16 }
 0x1d3   :  { %v769_v15 = vadd.f32 %v768_v50, %v4114_v11 }
 0x1d4   :  { %v840_v25 = vadd.f32 %v839_v36, %v4134_v18  ;;  %v7555_v18 = vld [vmem:[#allocation57_spill] sm:$0xff] }
 0x1d5   :  { %v770_v35 = vadd.f32 %v769_v15, %v4121_v14  ;;  %v4358_v14 = vpop.f32.mrf.mxu3 }
 0x1d6   :  { %v841_v50 = vadd.f32 %v840_v25, %v4144_v22 }
 0x1d7   :  { %v771_v21 = vadd.f32 %v770_v35, %v4132_v17  ;;  %v4361_v35 = vpop.f32.mrf.mxu2 }
 0x1d8   :  { %v4335_v60 = vpop.f32.mrf.mxu0  ;;  %v842_v63 = vadd.f32 %v841_v50, %v4152_v24  ;;  %7540 = vst [vmem:[#allocation79_spill] sm:$0xff] %v4361_v35  ;;  %v7553_v24 = vld [vmem:[#allocation55_spill] sm:$0xff] }
 0x1d9   :  { %7537 = vst [vmem:[#allocation76_spill] sm:$0xff] %v4335_v60  ;;  %v4338_v1 = vpop.f32.mrf.mxu1  ;;  %v772_v38 = vadd.f32 %v771_v21, %v4139_v20 }
 0x1da   :  { %v843_v31 = vadd.f32 %v842_v63, %v4162_v28  ;;  %v7549_v28 = vld [vmem:[#allocation51_spill] sm:$0xff] }
 0x1db   :  { %v773_v9 = vadd.f32 %v772_v38, %v4150_v23 }
 0x1dc   :  { %v844_v21 = vadd.f32 %v843_v31, %v4170_v30  ;;  %v7544_v31 = vld [vmem:[#allocation48_spill] sm:$0xff]  ;;  %v7547_v30 = vld [vmem:[#allocation50_spill] sm:$0xff] }
 0x1dd   :  { %v774_v15 = vadd.f32 %v773_v9, %v4157_v26  ;;  %v7542_v26 = vld [vmem:[#allocation46_spill] sm:$0xff] }
 0x1de   :  { %v845_v38 = vadd.f32 %v844_v21, %v4180_v42  ;;  %v7546_v21 = vld [vmem:[#allocation49_spill] sm:$0xff] }
 0x1df   :  { %v775_v36 = vadd.f32 %v774_v15, %v4168_v29  ;;  %v4376_v29 = vpop.f32.mrf.mxu3 }
 0x1e0   :  { %v4351_v11 = vpop.f32.mrf.mxu0  ;;  %v846_v9 = vadd.f32 %v845_v38, %v4188_v52 }
 0x1e1   :  { %7539 = vst [vmem:[#allocation78_spill] sm:$0xff] %v4351_v11  ;;  %v4354_v6 = vpop.f32.mrf.mxu1  ;;  %v776_v25 = vadd.f32 %v775_v36, %v4175_v32  ;;  %v4379_v32 = vpop.f32.mrf.mxu2 }
 0x1e2   :  { %v847_v17 = vadd.f32 %v846_v9, %v7542_v26  ;;  %7545 = vst [vmem:[#allocation81_spill] sm:$0xff] %v4379_v32 }
 0x1e3   :  { %v777_v50 = vadd.f32 %v776_v25, %v4186_v47 }
 0x1e4   :  { %v848_v36 = vadd.f32 %v847_v17, %v7544_v31  ;;  %v7554_v31 = vld [vmem:[#allocation56_spill] sm:$0xff] }
 0x1e5   :  { %v778_v63 = vadd.f32 %v777_v50, %v4193_v62  ;;  %v7550_v50 = vld [vmem:[#allocation52_spill] sm:$0xff]  ;;  %v7551_v62 = vld [vmem:[#allocation53_spill] sm:$0xff] }
 0x1e6   :  { %v849_v25 = vadd.f32 %v848_v36, %v7547_v30  ;;  %v7556_v36 = vld [vmem:[#allocation58_spill] sm:$0xff] }
 0x1e7   :  { %v779_v15 = vadd.f32 %v778_v63, %v7543_v4  ;;  %v7552_v4 = vld [vmem:[#allocation54_spill] sm:$0xff] }
 0x1e8   :  { %v4367_v23 = vpop.f32.mrf.mxu0  ;;  %v850_v9 = vadd.f32 %v849_v25, %v7550_v50  ;;  %v7564_v50 = vld [vmem:[#allocation65_spill] sm:$0xff] }
 0x1e9   :  { %7541 = vst [vmem:[#allocation80_spill] sm:$0xff] %v4367_v23  ;;  %v4370_v20 = vpop.f32.mrf.mxu1  ;;  %v780_v42 = vadd.f32 %v779_v15, %v7546_v21  ;;  %v4394_v21 = vpop.f32.mrf.mxu3 }
 0x1ea   :  { %v851_v26 = vadd.f32 %v850_v9, %v7552_v4 }
 0x1eb   :  { %v781_v38 = vadd.f32 %v780_v42, %v7549_v28  ;;  %v4399_v42 = vpop.f32.mrf.mxu2 }
 0x1ec   :  { %v852_v22 = vadd.f32 %v851_v26, %v7554_v31  ;;  %7558 = vst [vmem:[#allocation84_spill] sm:$0xff] %v4399_v42  ;;  %v7562_v31 = vld [vmem:[#allocation63_spill] sm:$0xff] }
 0x1ed   :  { %v782_v63 = vadd.f32 %v781_v38, %v7551_v62  ;;  %v7559_v38 = vld [vmem:[#allocation60_spill] sm:$0xff]  ;;  %v7560_v62 = vld [vmem:[#allocation61_spill] sm:$0xff] }
 0x1ee   :  { %v853_v30 = vadd.f32 %v852_v22, %v7556_v36  ;;  %v7565_v36 = vld [vmem:[#allocation66_spill] sm:$0xff] }
 0x1ef   :  { %v783_v17 = vadd.f32 %v782_v63, %v7553_v24  ;;  %v7561_v24 = vld [vmem:[#allocation62_spill] sm:$0xff] }
 0x1f0   :  { %v4383_v47 = vpop.f32.mrf.mxu0  ;;  %v854_v9 = vadd.f32 %v853_v30, %v7559_v38 }
 0x1f1   :  { %7548 = vst [vmem:[#allocation82_spill] sm:$0xff] %v4383_v47  ;;  %v4386_v52 = vpop.f32.mrf.mxu1  ;;  %v784_v15 = vadd.f32 %v783_v17, %v7555_v18  ;;  %v7563_v18 = vld [vmem:[#allocation64_spill] sm:$0xff]  ;;  %v4416_v5 = vpop.f32.mrf.mxu3 }
 0x1f2   :  { %v855_v26 = vadd.f32 %v854_v9, %v7561_v24 }
 0x1f3   :  { %v785_v25 = vadd.f32 %v784_v15, %v4253_v27 }
 0x1f4   :  { %v856_v4 = vadd.f32 %v855_v26, %v7563_v18 }
 0x1f5   :  { %v786_v63 = vadd.f32 %v785_v25, %v7560_v62  ;;  %v4419_v25 = vpop.f32.mrf.mxu2 }
 0x1f6   :  { %v857_v12 = vadd.f32 %v856_v4, %v7565_v36  ;;  %7568 = vst [vmem:[#allocation61_spill] sm:$0xff] %v4419_v25 }
 0x1f7   :  { %v787_v17 = vadd.f32 %v786_v63, %v7562_v31 }
 0x1f8   :  { %v4397_v16 = vpop.f32.mrf.mxu0  ;;  %v858_v30 = vadd.f32 %v857_v12, %v4277_v57 }
 0x1f9   :  { %7557 = vst [vmem:[#allocation83_spill] sm:$0xff] %v4397_v16  ;;  %v4402_v28 = vpop.f32.mrf.mxu1  ;;  %v788_v22 = vadd.f32 %v787_v17, %v7564_v50 }
 0x1fa   :  { %v859_v63 = vadd.f32 %v858_v30, %v4294_v34 }
 0x1fb   :  { %v789_v15 = vadd.f32 %v788_v22, %v7567_v7 }
 0x1fc   :  { %v860_v4 = vadd.f32 %v859_v63, %v4310_v43 }
 0x1fd   :  { %v790_v9 = vadd.f32 %v789_v15, %v4291_v33  ;;  %v4434_v33 = vpop.f32.mrf.mxu3 }
 0x1fe   :  { %v861_v22 = vadd.f32 %v860_v4, %v4326_v55 }
 0x1ff   :  { %v791_v26 = vadd.f32 %v790_v9, %v4307_v45  ;;  %v4437_v9 = vpop.f32.mrf.mxu2 }
 0x200   :  { %v4411_v10 = vpop.f32.mrf.mxu0  ;;  %v862_v12 = vadd.f32 %v861_v22, %v4338_v1  ;;  %7570 = vst [vmem:[#allocation64_spill] sm:$0xff] %v4437_v9 }
 0x201   :  { %7566 = vst [vmem:[#allocation60_spill] sm:$0xff] %v4411_v10  ;;  %v4414_v27 = vpop.f32.mrf.mxu1  ;;  %v792_v17 = vadd.f32 %v791_v26, %v4321_v48 }
 0x202   :  { %v863_v30 = vadd.f32 %v862_v12, %v4354_v6 }
 0x203   :  { %v793_v50 = vadd.f32 %v792_v17, %v4335_v60 }
 0x204   :  { %v864_v26 = vadd.f32 %v863_v30, %v4370_v20 }
 0x205   :  { %v794_v15 = vadd.f32 %v793_v50, %v4351_v11 }
 0x206   :  { %v865_v17 = vadd.f32 %v864_v26, %v4386_v52 }
 0x207   :  { %v795_v63 = vadd.f32 %v794_v15, %v4367_v23  ;;  %v4452_v23 = vpop.f32.mrf.mxu3 }
 0x208   :  { %v4427_v7 = vpop.f32.mrf.mxu0  ;;  %v866_v50 = vadd.f32 %v865_v17, %v4402_v28 }
 0x209   :  { %7569 = vst [vmem:[#allocation62_spill] sm:$0xff] %v4427_v7  ;;  %v4430_v31 = vpop.f32.mrf.mxu1  ;;  %v796_v4 = vadd.f32 %v795_v63, %v4383_v47  ;;  %v4455_v63 = vpop.f32.mrf.mxu2 }
 0x20a   :  { %v867_v11 = vadd.f32 %v866_v50, %v4414_v27  ;;  %7573 = vst [vmem:[#allocation86_spill] sm:$0xff] %v4455_v63  ;;  %v7574_v50 = vld [vmem:[#allocation68_spill] sm:$0xff] }
 0x20b   :  { %v797_v22 = vadd.f32 %v796_v4, %v4397_v16 }
 0x20c   :  { %v868_v30 = vadd.f32 %v867_v11, %v4430_v31 }
 0x20d   :  { %v798_v12 = vadd.f32 %v797_v22, %v4411_v10 }
 0x20f   :  { %v799_v15 = vadd.f32 %v798_v12, %v4427_v7  ;;  %v7575_v7 = vld [vmem:[#allocation67_spill] sm:$0xff] }
 0x210   :  { %v4443_v60 = vpop.f32.mrf.mxu0 }
 0x211   :  { %7571 = vst [vmem:[#allocation66_spill] sm:$0xff] %v4443_v60  ;;  %v4446_v48 = vpop.f32.mrf.mxu1  ;;  %v800_v26 = vadd.f32 %v799_v15, %v4443_v60  ;;  %v4470_v60 = vpop.f32.mrf.mxu3 }
 0x212   :  { %7572 = vst [vmem:[#allocation85_spill] sm:$0xff] %v4446_v48  ;;  %v869_v4 = vadd.f32 %v868_v30, %v4446_v48  ;;  %v4473_v48 = vpop.f32.mrf.mxu2 }
 0x213   :  { %7576 = vst [vmem:[#allocation67_spill] sm:$0xff] %v4470_v60 }
 0x214   :  { %7577 = vst [vmem:[#allocation87_spill] sm:$0xff] %v4473_v48 }
 0x218   :  { %v4459_v16 = vpop.f32.mrf.mxu0 }
 0x219   :  { %v801_v17 = vadd.f32 %v800_v26, %v4459_v16  ;;  %v4462_v47 = vpop.f32.mrf.mxu1 }
 0x21a   :  { %v870_v22 = vadd.f32 %v869_v4, %v4462_v47 }
 0x21b   :  { %v802_v12 = vadd.f32 %v801_v17, %v7574_v50  ;;  %v4484_v50 = vpop.f32.mrf.mxu3 }
 0x21c   :  { %v871_v10 = vadd.f32 %v870_v22, %v7575_v7 }
 0x21d   :  { %v803_v11 = vadd.f32 %v802_v12, %v4285_v13 }
 0x21e   :  { %v872_v45 = vadd.f32 %v871_v10, %v4282_v19 }
 0x21f   :  { %v804_v15 = vadd.f32 %v803_v11, %v4303_v37  ;;  %v3838_v37 = vmov 512.0  }
 0x220   :  { %v873_v30 = vadd.f32 %v872_v45, %v4300_v40  ;;  %3796 = vrcp.f32 %v3838_v37 }
 0x221   :  { %v805_v26 = vadd.f32 %v804_v15, %v4323_v8 }
 0x222   :  { %v874_v4 = vadd.f32 %v873_v30, %v4318_v53  ;;  %v4487_v30 = vpop.f32.mrf.mxu2 }
 0x223   :  { %v806_v17 = vadd.f32 %v805_v26, %v4343_v3  ;;  %7578 = vst [vmem:[#allocation88_spill] sm:$0xff] %v4487_v30 }
 0x224   :  { %v875_v22 = vadd.f32 %v874_v4, %v4340_v58 }
 0x225   :  { %v807_v12 = vadd.f32 %v806_v17, %v4361_v35  ;;  %v4498_v35 = vpop.f32.mrf.mxu3 }
 0x226   :  { %v876_v10 = vadd.f32 %v875_v22, %v4358_v14  ;;  %v3797_v17 = vpop.eup %3796 }
 0x227   :  { %v808_v11 = vadd.f32 %v807_v12, %v4379_v32  ;;  %vm896_vm1 = vweird.f32 %v3797_v17 }
 0x228   :  { %v877_v45 = vadd.f32 %v876_v10, %v4376_v29 }
 0x229   :  { %v809_v13 = vadd.f32 %v808_v11, %v4399_v42  ;;  %v892_v11 = vmul.f32 512.0, %v3797_v17 }
 0x22a   :  { %v878_v15 = vadd.f32 %v877_v45, %v4394_v21 }
 0x22b   :  { %v810_v26 = vadd.f32 %v809_v13, %v4419_v25  ;;  %v4500_v13 = vpop.f32.mrf.mxu2 }
 0x22c   :  { %v879_v4 = vadd.f32 %v878_v15, %v4416_v5 }
 0x22d   :  { %v811_v22 = vadd.f32 %v810_v26, %v4437_v9  ;;  %v893_v26 = vsub.f32 1.0, %v892_v11 }
 0x22e   :  { %v880_v12 = vadd.f32 %v879_v4, %v4434_v33 }
 0x22f   :  { %v812_v37 = vadd.f32 %v811_v22, %v4455_v63  ;;  %v894_v9 = vmul.f32 %v3797_v17, %v893_v26 }
 0x230   :  { %v881_v10 = vadd.f32 %v880_v12, %v4452_v23 }
 0x231   :  { %v813_v42 = vadd.f32 %v812_v37, %v4473_v48  ;;  %v895_v3 = vadd.f32 %v3797_v17, %v894_v9 }
 0x232   :  { %v882_v45 = vadd.f32 %v881_v10, %v4470_v60 }
 0x233   :  { %v814_v32 = vadd.f32 %v813_v42, %v4487_v30  ;;  %v4505_v60 = vsel %vm896_vm1, %v3797_v17, %v895_v3  ;;  %vm2980_vm1 = vcmask 56320  }
 0x234   :  { %v883_v15 = vadd.f32 %v882_v45, %v4484_v50 }
 0x235   :  { %v815_v4 = vadd.f32 %v814_v32, %v4500_v13 }
 0x236   :  { %v884_v22 = vadd.f32 %v883_v15, %v4498_v35 }
 0x237   :  { %v816_v63 = vrot.slane %v815_v4, 4 }
 0x238   :  { %v885_v12 = vrot.slane %v884_v22, 4 }
 0x239   :  { %v817_v25 = vadd.f32 %v816_v63, %v815_v4 }
 0x23a   :  { %v886_v37 = vadd.f32 %v885_v12, %v884_v22  ;;  %v7579_v12 = vld [vmem:[#allocation6_spill] sm:$0xff] }
 0x23b   :  { %v818_v48 = vrot.slane %v817_v25, 2 }
 0x23c   :  { %v887_v10 = vrot.slane %v886_v37, 2 }
 0x23d   :  { %v819_v42 = vadd.f32 %v818_v48, %v817_v25 }
 0x23e   :  { %v888_v30 = vadd.f32 %v887_v10, %v886_v37  ;;  %v7580_v37 = vld [vmem:[#allocation8_spill] sm:$0xff] }
 0x23f   :  { %v820_v8 = vrot.slane %v819_v42, 1 }
 0x240   :  { %v889_v32 = vrot.slane %v888_v30, 1 }
 0x241   :  { %v821_v45 = vadd.f32 %v820_v8, %v819_v42 }
 0x242   :  { %v890_v15 = vadd.f32 %v889_v32, %v888_v30 }
 0x243   :  { %v898_v11 = vmul.f32 %v4505_v60, %v821_v45 }
 0x244   :  { %v899_v63 = vmul.f32 %v4505_v60, %v890_v15 }
 0x245   :  { %901 = vrot.lane.b32.xlu0 %v898_v11, %s3839_s0 }
 0x24d   :  { %907 = vrot.lane.b32.xlu0 %v899_v63, %s3839_s0 }
 0x2b7   :  { %v902_v26 = vpop.permute.xlu0 %901 }
 0x2b8   :  { %v904_v9 = vadd.f32 %v902_v26, %v898_v11 }
 0x2ba   :  { %v905_v48 = vadd.f32 %v904_v9, %v899_v63 }
 0x2bf   :  { %v908_v25 = vpop.permute.xlu0 %907 }
 0x2c0   :  { %v910_v4 = vadd.f32 %v908_v25, %v905_v48 }
 0x2c2   :  { %v911_v22 = vmul.f32 0.25, %v910_v4 }
 0x2c4   :  { %913 = vrot.lane.b32.xlu1 %v911_v22, %s3839_s0 }
 0x336   :  { %v914_v8 = vpop.permute.xlu1 %913 }
 0x337   :  { %v916_v3 = vsel %vm318_vm0, %v911_v22, %v914_v8 }
 0x338   :  { %v4513_v17 = vperm.slane %v916_v3, 0 }
 0x33a   :  { %v4517_v30 = vsub.f32 %v7579_v12, %v4513_v17  ;;  %v4521_v10 = vsub.f32 %v7580_v37, %v4513_v17  ;;  %v4525_v42 = vsub.f32 %v4019_v39, %v4513_v17  ;;  %v4533_v32 = vsub.f32 %v4025_v41, %v4513_v17  ;;  %v7585_v12 = vld [vmem:[#allocation5_spill] sm:$0xff] }
 0x33b   :  { %v4537_v15 = vsub.f32 %v4032_v44, %v4513_v17  ;;  %v4543_v39 = vsub.f32 %v4038_v46, %v4513_v17  ;;  %v4549_v41 = vsub.f32 %v4045_v49, %v4513_v17  ;;  %v4555_v4 = vsub.f32 %v4051_v51, %v4513_v17 }
 0x33c   :  { %v1047_v45 = vmul.f32 %v4517_v30, %v4517_v30  ;;  %v1049_v11 = vmul.f32 %v4521_v10, %v4521_v10  ;;  %v1051_v63 = vmul.f32 %v4525_v42, %v4525_v42  ;;  %v1053_v9 = vmul.f32 %v4533_v32, %v4533_v32 }
 0x33d   :  { %7581 = vst [vmem:[#allocation6_spill] sm:$0xff] %v4543_v39  ;;  %v1055_v44 = vmul.f32 %v4537_v15, %v4537_v15  ;;  %v1057_v46 = vmul.f32 %v4543_v39, %v4543_v39  ;;  %v4561_v8 = vsub.f32 %v4058_v54, %v4513_v17  ;;  %v1059_v49 = vmul.f32 %v4549_v41, %v4549_v41 }
 0x33e   :  { %v1243_v26 = vadd.f32 %v1049_v11, %v1047_v45  ;;  %7582 = vst [vmem:[#allocation8_spill] sm:$0xff] %v4549_v41  ;;  %v4567_v37 = vsub.f32 %v7585_v12, %v4513_v17  ;;  %v7586_v45 = vld [vmem:[#allocation7_spill] sm:$0xff]  ;;  %v4575_v11 = vsub.f32 %v4064_v56, %v4513_v17  ;;  %v1061_v54 = vmul.f32 %v4555_v4, %v4555_v4 }
 0x33f   :  { %7583 = vst [vmem:[#allocation89_spill] sm:$0xff] %v4555_v4  ;;  %v4571_v51 = vsub.f32 %v7586_v45, %v4513_v17  ;;  %v4591_v56 = vsub.f32 %v4077_v61, %v4513_v17  ;;  %v4605_v45 = vsub.f32 %v4084_v0, %v4513_v17 }
 0x340   :  { %v1244_v48 = vadd.f32 %v1243_v26, %v1051_v63  ;;  %7584 = vst [vmem:[#allocation90_spill] sm:$0xff] %v4561_v8  ;;  %v4581_v26 = vsub.f32 %v4071_v59, %v4513_v17  ;;  %v1046_v59 = vmul.f32 %v4567_v37, %v4567_v37 }
 0x341   :  { %7587 = vst [vmem:[#allocation5_spill] sm:$0xff] %v4575_v11 }
 0x342   :  { %v1245_v25 = vadd.f32 %v1244_v48, %v1053_v9  ;;  %7588 = vst [vmem:[#allocation7_spill] sm:$0xff] %v4581_v26  ;;  %v1063_v9 = vmul.f32 %v4561_v8, %v4561_v8  ;;  %v1067_v61 = vmul.f32 %v4581_v26, %v4581_v26  ;;  %v7595_v8 = vld [vmem:[#allocation12_spill] sm:$0xff] }
 0x343   :  { %v4623_v26 = vsub.f32 %v7595_v8, %v4513_v17 }
 0x344   :  { %v1246_v22 = vadd.f32 %v1245_v25, %v1055_v44  ;;  %v7589_v44 = vld [vmem:[#allocation9_spill] sm:$0xff] }
 0x345   :  { %v4587_v25 = vsub.f32 %v7589_v44, %v4513_v17  ;;  %7590 = vst [vmem:[#allocation9_spill] sm:$0xff] %v4591_v56  ;;  %v1069_v44 = vmul.f32 %v4591_v56, %v4591_v56 }
 0x346   :  { %v1247_v3 = vadd.f32 %v1246_v22, %v1057_v46  ;;  %v1065_v46 = vmul.f32 %v4575_v11, %v4575_v11  ;;  %7596 = vst [vmem:[#allocation12_spill] sm:$0xff] %v4623_v26 }
 0x347   :  { %v1050_v0 = vmul.f32 %v4587_v25, %v4587_v25 }
 0x348   :  { %v1248_v63 = vadd.f32 %v1247_v3, %v1059_v49  ;;  %v1048_v49 = vmul.f32 %v4571_v51, %v4571_v51  ;;  %v7591_v3 = vld [vmem:[#allocation10_spill] sm:$0xff] }
 0x349   :  { %v4601_v12 = vsub.f32 %v7591_v3, %v4513_v17  ;;  %7592 = vst [vmem:[#allocation10_spill] sm:$0xff] %v4605_v45 }
 0x34a   :  { %v1249_v48 = vadd.f32 %v1248_v63, %v1061_v54  ;;  %v7593_v63 = vld [vmem:[#allocation11_spill] sm:$0xff]  ;;  %v1174_v11 = vadd.f32 %v1048_v49, %v1046_v59  ;;  %v7601_v59 = vld [vmem:[#allocation24_spill] sm:$0xff] }
 0x34b   :  { %v1052_v56 = vmul.f32 %v4601_v12, %v4601_v12  ;;  %v4639_v8 = vsub.f32 %v7601_v59, %v4513_v17 }
 0x34c   :  { %v1250_v22 = vadd.f32 %v1249_v48, %v1063_v9  ;;  %v4611_v9 = vsub.f32 %v7593_v63, %v4513_v17  ;;  %v4615_v48 = vsub.f32 %v4090_v2, %v4513_v17  ;;  %v1071_v2 = vmul.f32 %v4605_v45, %v4605_v45 }
 0x34d   :  { %7602 = vst [vmem:[#allocation24_spill] sm:$0xff] %v4639_v8 }
 0x34e   :  { %v1251_v54 = vadd.f32 %v1250_v22, %v1065_v46  ;;  %7594 = vst [vmem:[#allocation11_spill] sm:$0xff] %v4615_v48  ;;  %v7597_v46 = vld [vmem:[#allocation22_spill] sm:$0xff]  ;;  %v1073_v49 = vmul.f32 %v4615_v48, %v4615_v48  ;;  %v1054_v45 = vmul.f32 %v4611_v9, %v4611_v9  ;;  %v1056_v48 = vmul.f32 %v4623_v26, %v4623_v26 }
 0x34f   :  { %v4627_v22 = vsub.f32 %v7597_v46, %v4513_v17 }
 0x350   :  { %v1252_v3 = vadd.f32 %v1251_v54, %v1067_v61  ;;  %v1175_v61 = vadd.f32 %v1174_v11, %v1050_v0  ;;  %v7599_v54 = vld [vmem:[#allocation13_spill] sm:$0xff]  ;;  %v7605_v11 = vld [vmem:[#allocation26_spill] sm:$0xff] }
 0x351   :  { %7598 = vst [vmem:[#allocation22_spill] sm:$0xff] %v4627_v22  ;;  %v4635_v4 = vsub.f32 %v7599_v54, %v4513_v17  ;;  %v4651_v0 = vsub.f32 %v7605_v11, %v4513_v17  ;;  %v1075_v54 = vmul.f32 %v4627_v22, %v4627_v22 }
 0x352   :  { %v1253_v63 = vadd.f32 %v1252_v3, %v1069_v44  ;;  %v1176_v44 = vadd.f32 %v1175_v61, %v1052_v56  ;;  %v7603_v3 = vld [vmem:[#allocation14_spill] sm:$0xff]  ;;  %v7609_v56 = vld [vmem:[#allocation28_spill] sm:$0xff] }
 0x353   :  { %7600 = vst [vmem:[#allocation13_spill] sm:$0xff] %v4635_v4  ;;  %v4647_v41 = vsub.f32 %v7603_v3, %v4513_v17  ;;  %v4663_v61 = vsub.f32 %v7609_v56, %v4513_v17  ;;  %v1077_v3 = vmul.f32 %v4639_v8, %v4639_v8  ;;  %v1058_v22 = vmul.f32 %v4635_v4, %v4635_v4 }
 0x354   :  { %v1254_v46 = vadd.f32 %v1253_v63, %v1071_v2  ;;  %7606 = vst [vmem:[#allocation26_spill] sm:$0xff] %v4651_v0  ;;  %v1177_v2 = vadd.f32 %v1176_v44, %v1054_v45  ;;  %v7607_v63 = vld [vmem:[#allocation15_spill] sm:$0xff]  ;;  %v7613_v45 = vld [vmem:[#allocation30_spill] sm:$0xff] }
 0x355   :  { %7604 = vst [vmem:[#allocation14_spill] sm:$0xff] %v4647_v41  ;;  %v4659_v39 = vsub.f32 %v7607_v63, %v4513_v17  ;;  %v4675_v44 = vsub.f32 %v7613_v45, %v4513_v17  ;;  %v1079_v63 = vmul.f32 %v4651_v0, %v4651_v0  ;;  %v1060_v8 = vmul.f32 %v4647_v41, %v4647_v41 }
 0x356   :  { %v1255_v59 = vadd.f32 %v1254_v46, %v1073_v49  ;;  %7610 = vst [vmem:[#allocation28_spill] sm:$0xff] %v4663_v61  ;;  %v1178_v49 = vadd.f32 %v1177_v2, %v1056_v48  ;;  %v7611_v46 = vld [vmem:[#allocation16_spill] sm:$0xff] }
 0x357   :  { %7608 = vst [vmem:[#allocation15_spill] sm:$0xff] %v4659_v39  ;;  %v4671_v26 = vsub.f32 %v7611_v46, %v4513_v17  ;;  %v7617_v48 = vld [vmem:[#allocation32_spill] sm:$0xff]  ;;  %v1081_v46 = vmul.f32 %v4663_v61, %v4663_v61  ;;  %v1062_v0 = vmul.f32 %v4659_v39, %v4659_v39 }
 0x358   :  { %v1256_v11 = vadd.f32 %v1255_v59, %v1075_v54  ;;  %7614 = vst [vmem:[#allocation30_spill] sm:$0xff] %v4675_v44  ;;  %v1179_v54 = vadd.f32 %v1178_v49, %v1058_v22  ;;  %v7615_v59 = vld [vmem:[#allocation17_spill] sm:$0xff]  ;;  %v4687_v2 = vsub.f32 %v7617_v48, %v4513_v17  ;;  %v7621_v22 = vld [vmem:[#allocation34_spill] sm:$0xff] }
 0x359   :  { %7612 = vst [vmem:[#allocation16_spill] sm:$0xff] %v4671_v26  ;;  %v4683_v4 = vsub.f32 %v7615_v59, %v4513_v17  ;;  %v4699_v49 = vsub.f32 %v7621_v22, %v4513_v17  ;;  %v1083_v59 = vmul.f32 %v4675_v44, %v4675_v44  ;;  %v1064_v61 = vmul.f32 %v4671_v26, %v4671_v26 }
 0x35a   :  { %v1257_v56 = vadd.f32 %v1256_v11, %v1077_v3  ;;  %7618 = vst [vmem:[#allocation32_spill] sm:$0xff] %v4687_v2  ;;  %v1180_v3 = vadd.f32 %v1179_v54, %v1060_v8  ;;  %v7619_v11 = vld [vmem:[#allocation18_spill] sm:$0xff]  ;;  %v7625_v8 = vld [vmem:[#allocation36_spill] sm:$0xff] }
 0x35b   :  { %7616 = vst [vmem:[#allocation17_spill] sm:$0xff] %v4683_v4  ;;  %v4695_v41 = vsub.f32 %v7619_v11, %v4513_v17  ;;  %v4711_v54 = vsub.f32 %v7625_v8, %v4513_v17  ;;  %v1085_v11 = vmul.f32 %v4687_v2, %v4687_v2  ;;  %v1066_v44 = vmul.f32 %v4683_v4, %v4683_v4 }
 0x35c   :  { %v1258_v45 = vadd.f32 %v1257_v56, %v1079_v63  ;;  %7622 = vst [vmem:[#allocation34_spill] sm:$0xff] %v4699_v49  ;;  %v1181_v63 = vadd.f32 %v1180_v3, %v1062_v0  ;;  %v7623_v56 = vld [vmem:[#allocation19_spill] sm:$0xff]  ;;  %v7629_v0 = vld [vmem:[#allocation38_spill] sm:$0xff] }
 0x35d   :  { %7620 = vst [vmem:[#allocation18_spill] sm:$0xff] %v4695_v41  ;;  %v4707_v39 = vsub.f32 %v7623_v56, %v4513_v17  ;;  %v4723_v3 = vsub.f32 %v7629_v0, %v4513_v17  ;;  %v1087_v56 = vmul.f32 %v4699_v49, %v4699_v49  ;;  %v1068_v2 = vmul.f32 %v4695_v41, %v4695_v41 }
 0x35e   :  { %v1259_v48 = vadd.f32 %v1258_v45, %v1081_v46  ;;  %7626 = vst [vmem:[#allocation36_spill] sm:$0xff] %v4711_v54  ;;  %v1182_v46 = vadd.f32 %v1181_v63, %v1064_v61  ;;  %v7627_v45 = vld [vmem:[#allocation20_spill] sm:$0xff] }
 0x35f   :  { %7624 = vst [vmem:[#allocation19_spill] sm:$0xff] %v4707_v39  ;;  %v4719_v26 = vsub.f32 %v7627_v45, %v4513_v17  ;;  %v7633_v61 = vld [vmem:[#allocation40_spill] sm:$0xff]  ;;  %v1089_v45 = vmul.f32 %v4711_v54, %v4711_v54  ;;  %v1070_v49 = vmul.f32 %v4707_v39, %v4707_v39 }
 0x360   :  { %v1260_v22 = vadd.f32 %v1259_v48, %v1083_v59  ;;  %7630 = vst [vmem:[#allocation38_spill] sm:$0xff] %v4723_v3  ;;  %v1183_v59 = vadd.f32 %v1182_v46, %v1066_v44  ;;  %v7631_v48 = vld [vmem:[#allocation21_spill] sm:$0xff]  ;;  %v4735_v63 = vsub.f32 %v7633_v61, %v4513_v17  ;;  %v7637_v44 = vld [vmem:[#allocation42_spill] sm:$0xff] }
 0x361   :  { %7628 = vst [vmem:[#allocation20_spill] sm:$0xff] %v4719_v26  ;;  %v4731_v4 = vsub.f32 %v7631_v48, %v4513_v17  ;;  %v4747_v46 = vsub.f32 %v7637_v44, %v4513_v17  ;;  %v1091_v48 = vmul.f32 %v4723_v3, %v4723_v3  ;;  %v1072_v54 = vmul.f32 %v4719_v26, %v4719_v26 }
 0x362   :  { %v1261_v8 = vadd.f32 %v1260_v22, %v1085_v11  ;;  %7634 = vst [vmem:[#allocation40_spill] sm:$0xff] %v4735_v63  ;;  %v1184_v11 = vadd.f32 %v1183_v59, %v1068_v2  ;;  %v7635_v22 = vld [vmem:[#allocation23_spill] sm:$0xff]  ;;  %v7641_v2 = vld [vmem:[#allocation44_spill] sm:$0xff] }
 0x363   :  { %7632 = vst [vmem:[#allocation21_spill] sm:$0xff] %v4731_v4  ;;  %v4743_v41 = vsub.f32 %v7635_v22, %v4513_v17  ;;  %v4759_v59 = vsub.f32 %v7641_v2, %v4513_v17  ;;  %v1093_v22 = vmul.f32 %v4735_v63, %v4735_v63  ;;  %v1074_v3 = vmul.f32 %v4731_v4, %v4731_v4 }
 0x364   :  { %v1262_v0 = vadd.f32 %v1261_v8, %v1087_v56  ;;  %7638 = vst [vmem:[#allocation42_spill] sm:$0xff] %v4747_v46  ;;  %v1185_v56 = vadd.f32 %v1184_v11, %v1070_v49  ;;  %v7639_v8 = vld [vmem:[#allocation25_spill] sm:$0xff]  ;;  %v7645_v49 = vld [vmem:[#allocation46_spill] sm:$0xff] }
 0x365   :  { %7636 = vst [vmem:[#allocation23_spill] sm:$0xff] %v4743_v41  ;;  %v4755_v39 = vsub.f32 %v7639_v8, %v4513_v17  ;;  %v4771_v11 = vsub.f32 %v7645_v49, %v4513_v17  ;;  %v1095_v8 = vmul.f32 %v4747_v46, %v4747_v46  ;;  %v1076_v63 = vmul.f32 %v4743_v41, %v4743_v41 }
 0x366   :  { %v1263_v61 = vadd.f32 %v1262_v0, %v1089_v45  ;;  %7642 = vst [vmem:[#allocation44_spill] sm:$0xff] %v4759_v59  ;;  %v1186_v45 = vadd.f32 %v1185_v56, %v1072_v54  ;;  %v7643_v0 = vld [vmem:[#allocation27_spill] sm:$0xff]  ;;  %v7649_v54 = vld [vmem:[#allocation48_spill] sm:$0xff] }
 0x367   :  { %7640 = vst [vmem:[#allocation25_spill] sm:$0xff] %v4755_v39  ;;  %v4767_v26 = vsub.f32 %v7643_v0, %v4513_v17  ;;  %v4783_v56 = vsub.f32 %v7649_v54, %v4513_v17  ;;  %v1097_v0 = vmul.f32 %v4759_v59, %v4759_v59  ;;  %v1078_v46 = vmul.f32 %v4755_v39, %v4755_v39 }
 0x368   :  { %v1264_v44 = vadd.f32 %v1263_v61, %v1091_v48  ;;  %7646 = vst [vmem:[#allocation46_spill] sm:$0xff] %v4771_v11  ;;  %v1187_v48 = vadd.f32 %v1186_v45, %v1074_v3  ;;  %v7647_v61 = vld [vmem:[#allocation29_spill] sm:$0xff]  ;;  %v7653_v3 = vld [vmem:[#allocation50_spill] sm:$0xff] }
 0x369   :  { %7644 = vst [vmem:[#allocation27_spill] sm:$0xff] %v4767_v26  ;;  %v4779_v4 = vsub.f32 %v7647_v61, %v4513_v17  ;;  %v4795_v45 = vsub.f32 %v7653_v3, %v4513_v17  ;;  %v1099_v61 = vmul.f32 %v4771_v11, %v4771_v11  ;;  %v1080_v59 = vmul.f32 %v4767_v26, %v4767_v26 }
 0x36a   :  { %v1265_v2 = vadd.f32 %v1264_v44, %v1093_v22  ;;  %7650 = vst [vmem:[#allocation48_spill] sm:$0xff] %v4783_v56  ;;  %v1188_v22 = vadd.f32 %v1187_v48, %v1076_v63  ;;  %v7651_v44 = vld [vmem:[#allocation31_spill] sm:$0xff]  ;;  %v7657_v63 = vld [vmem:[#allocation52_spill] sm:$0xff] }
 0x36b   :  { %7648 = vst [vmem:[#allocation29_spill] sm:$0xff] %v4779_v4  ;;  %v4791_v41 = vsub.f32 %v7651_v44, %v4513_v17  ;;  %v4807_v48 = vsub.f32 %v7657_v63, %v4513_v17  ;;  %v1101_v44 = vmul.f32 %v4783_v56, %v4783_v56  ;;  %v1082_v11 = vmul.f32 %v4779_v4, %v4779_v4 }
 0x36c   :  { %v1266_v49 = vadd.f32 %v1265_v2, %v1095_v8  ;;  %7654 = vst [vmem:[#allocation50_spill] sm:$0xff] %v4795_v45  ;;  %v1189_v8 = vadd.f32 %v1188_v22, %v1078_v46  ;;  %v7655_v2 = vld [vmem:[#allocation33_spill] sm:$0xff]  ;;  %v7660_v46 = vld [vmem:[#allocation54_spill] sm:$0xff] }
 0x36d   :  { %7652 = vst [vmem:[#allocation31_spill] sm:$0xff] %v4791_v41  ;;  %v4803_v39 = vsub.f32 %v7655_v2, %v4513_v17  ;;  %v4819_v22 = vsub.f32 %v7660_v46, %v4513_v17  ;;  %v1103_v2 = vmul.f32 %v4795_v45, %v4795_v45  ;;  %v1084_v56 = vmul.f32 %v4791_v41, %v4791_v41 }
 0x36e   :  { %v1267_v54 = vadd.f32 %v1266_v49, %v1097_v0  ;;  %7658 = vst [vmem:[#allocation52_spill] sm:$0xff] %v4807_v48  ;;  %v1190_v0 = vadd.f32 %v1189_v8, %v1080_v59  ;;  %v7659_v49 = vld [vmem:[#allocation35_spill] sm:$0xff]  ;;  %v7663_v59 = vld [vmem:[#allocation56_spill] sm:$0xff] }
 0x36f   :  { %7656 = vst [vmem:[#allocation33_spill] sm:$0xff] %v4803_v39  ;;  %v4815_v26 = vsub.f32 %v7659_v49, %v4513_v17  ;;  %v4831_v8 = vsub.f32 %v7663_v59, %v4513_v17  ;;  %v1105_v49 = vmul.f32 %v4807_v48, %v4807_v48  ;;  %v1086_v45 = vmul.f32 %v4803_v39, %v4803_v39 }
 0x370   :  { %v1268_v3 = vadd.f32 %v1267_v54, %v1099_v61  ;;  %7661 = vst [vmem:[#allocation35_spill] sm:$0xff] %v4819_v22  ;;  %v1191_v61 = vadd.f32 %v1190_v0, %v1082_v11  ;;  %v7662_v54 = vld [vmem:[#allocation37_spill] sm:$0xff]  ;;  %v7666_v11 = vld [vmem:[#allocation58_spill] sm:$0xff] }
 0x371   :  { %v4827_v4 = vsub.f32 %v7662_v54, %v4513_v17  ;;  %7664 = vst [vmem:[#allocation54_spill] sm:$0xff] %v4831_v8  ;;  %v4843_v0 = vsub.f32 %v7666_v11, %v4513_v17  ;;  %v1107_v54 = vmul.f32 %v4819_v22, %v4819_v22  ;;  %v1088_v48 = vmul.f32 %v4815_v26, %v4815_v26 }
 0x372   :  { %v1269_v63 = vadd.f32 %v1268_v3, %v1101_v44  ;;  %v1192_v44 = vadd.f32 %v1191_v61, %v1084_v56  ;;  %v7665_v3 = vld [vmem:[#allocation39_spill] sm:$0xff]  ;;  %v4855_v56 = vsub.f32 %v7559_v38, %v4513_v17  ;;  %v1109_v61 = vmul.f32 %v4831_v8, %v4831_v8 }
 0x373   :  { %v4839_v41 = vsub.f32 %v7665_v3, %v4513_v17  ;;  %7667 = vst [vmem:[#allocation37_spill] sm:$0xff] %v4843_v0  ;;  %v1090_v11 = vmul.f32 %v4827_v4, %v4827_v4  ;;  %v1111_v38 = vmul.f32 %v4843_v0, %v4843_v0 }
 0x374   :  { %v1270_v46 = vadd.f32 %v1269_v63, %v1103_v2  ;;  %v1193_v2 = vadd.f32 %v1192_v44, %v1086_v45  ;;  %v7668_v63 = vld [vmem:[#allocation41_spill] sm:$0xff]  ;;  %7669 = vst [vmem:[#allocation56_spill] sm:$0xff] %v4855_v56  ;;  %v4867_v45 = vsub.f32 %v7561_v24, %v4513_v17  ;;  %v1113_v24 = vmul.f32 %v4855_v56, %v4855_v56 }
 0x375   :  { %v4851_v39 = vsub.f32 %v7668_v63, %v4513_v17  ;;  %v1092_v63 = vmul.f32 %v4839_v41, %v4839_v41 }
 0x376   :  { %v1271_v59 = vadd.f32 %v1270_v46, %v1105_v49  ;;  %v1194_v49 = vadd.f32 %v1193_v2, %v1088_v48  ;;  %v7670_v46 = vld [vmem:[#allocation43_spill] sm:$0xff]  ;;  %7671 = vst [vmem:[#allocation39_spill] sm:$0xff] %v4867_v45  ;;  %v4879_v48 = vsub.f32 %v7563_v18, %v4513_v17  ;;  %v1115_v18 = vmul.f32 %v4867_v45, %v4867_v45 }
 0x377   :  { %v4863_v22 = vsub.f32 %v7670_v46, %v4513_v17  ;;  %v1094_v46 = vmul.f32 %v4851_v39, %v4851_v39 }
 0x378   :  { %v1272_v3 = vadd.f32 %v1271_v59, %v1107_v54  ;;  %v1195_v54 = vadd.f32 %v1194_v49, %v1090_v11  ;;  %v7672_v59 = vld [vmem:[#allocation45_spill] sm:$0xff]  ;;  %7673 = vst [vmem:[#allocation58_spill] sm:$0xff] %v4879_v48  ;;  %v4891_v11 = vsub.f32 %v7565_v36, %v4513_v17  ;;  %v1117_v36 = vmul.f32 %v4879_v48, %v4879_v48 }
 0x379   :  { %v4875_v8 = vsub.f32 %v7672_v59, %v4513_v17  ;;  %v1096_v59 = vmul.f32 %v4863_v22, %v4863_v22 }
 0x37a   :  { %v1273_v44 = vadd.f32 %v1272_v3, %v1109_v61  ;;  %v1196_v61 = vadd.f32 %v1195_v54, %v1092_v63  ;;  %v7674_v3 = vld [vmem:[#allocation47_spill] sm:$0xff]  ;;  %7675 = vst [vmem:[#allocation41_spill] sm:$0xff] %v4891_v11  ;;  %v4903_v63 = vsub.f32 %v4277_v57, %v4513_v17  ;;  %v1119_v57 = vmul.f32 %v4891_v11, %v4891_v11 }
 0x37b   :  { %v4887_v0 = vsub.f32 %v7674_v3, %v4513_v17  ;;  %v1098_v3 = vmul.f32 %v4875_v8, %v4875_v8 }
 0x37c   :  { %v1274_v2 = vadd.f32 %v1273_v44, %v1111_v38  ;;  %v1197_v38 = vadd.f32 %v1196_v61, %v1094_v46  ;;  %v7676_v44 = vld [vmem:[#allocation49_spill] sm:$0xff]  ;;  %7677 = vst [vmem:[#allocation43_spill] sm:$0xff] %v4903_v63  ;;  %v4915_v46 = vsub.f32 %v4294_v34, %v4513_v17  ;;  %v1121_v34 = vmul.f32 %v4903_v63, %v4903_v63 }
 0x37d   :  { %v4899_v56 = vsub.f32 %v7676_v44, %v4513_v17  ;;  %v1100_v44 = vmul.f32 %v4887_v0, %v4887_v0 }
 0x37e   :  { %v1275_v49 = vadd.f32 %v1274_v2, %v1113_v24  ;;  %v1198_v24 = vadd.f32 %v1197_v38, %v1096_v59  ;;  %v7678_v2 = vld [vmem:[#allocation51_spill] sm:$0xff]  ;;  %7679 = vst [vmem:[#allocation45_spill] sm:$0xff] %v4915_v46  ;;  %v4927_v59 = vsub.f32 %v4310_v43, %v4513_v17  ;;  %v1123_v43 = vmul.f32 %v4915_v46, %v4915_v46 }
 0x37f   :  { %v4911_v45 = vsub.f32 %v7678_v2, %v4513_v17  ;;  %v1102_v2 = vmul.f32 %v4899_v56, %v4899_v56 }
 0x380   :  { %v1276_v54 = vadd.f32 %v1275_v49, %v1115_v18  ;;  %v1199_v18 = vadd.f32 %v1198_v24, %v1098_v3  ;;  %v7680_v49 = vld [vmem:[#allocation53_spill] sm:$0xff]  ;;  %7681 = vst [vmem:[#allocation47_spill] sm:$0xff] %v4927_v59  ;;  %v4939_v3 = vsub.f32 %v4326_v55, %v4513_v17  ;;  %v1125_v55 = vmul.f32 %v4927_v59, %v4927_v59 }
 0x381   :  { %v4923_v48 = vsub.f32 %v7680_v49, %v4513_v17  ;;  %v1104_v49 = vmul.f32 %v4911_v45, %v4911_v45 }
 0x382   :  { %v1277_v61 = vadd.f32 %v1276_v54, %v1117_v36  ;;  %v1200_v36 = vadd.f32 %v1199_v18, %v1100_v44  ;;  %v7682_v54 = vld [vmem:[#allocation55_spill] sm:$0xff]  ;;  %7683 = vst [vmem:[#allocation49_spill] sm:$0xff] %v4939_v3  ;;  %v4951_v44 = vsub.f32 %v4338_v1, %v4513_v17  ;;  %v1127_v1 = vmul.f32 %v4939_v3, %v4939_v3 }
 0x383   :  { %v4935_v11 = vsub.f32 %v7682_v54, %v4513_v17  ;;  %v1106_v54 = vmul.f32 %v4923_v48, %v4923_v48 }
 0x384   :  { %v1278_v38 = vadd.f32 %v1277_v61, %v1119_v57  ;;  %v1201_v57 = vadd.f32 %v1200_v36, %v1102_v2  ;;  %v7684_v61 = vld [vmem:[#allocation57_spill] sm:$0xff]  ;;  %7685 = vst [vmem:[#allocation51_spill] sm:$0xff] %v4951_v44  ;;  %v4963_v2 = vsub.f32 %v4354_v6, %v4513_v17  ;;  %v1129_v6 = vmul.f32 %v4951_v44, %v4951_v44 }
 0x385   :  { %v4947_v63 = vsub.f32 %v7684_v61, %v4513_v17  ;;  %v1108_v61 = vmul.f32 %v4935_v11, %v4935_v11 }
 0x386   :  { %v1279_v24 = vadd.f32 %v1278_v38, %v1121_v34  ;;  %v1202_v34 = vadd.f32 %v1201_v57, %v1104_v49  ;;  %v7686_v38 = vld [vmem:[#allocation59_spill] sm:$0xff]  ;;  %7687 = vst [vmem:[#allocation53_spill] sm:$0xff] %v4963_v2  ;;  %v4975_v49 = vsub.f32 %v4370_v20, %v4513_v17  ;;  %v1131_v20 = vmul.f32 %v4963_v2, %v4963_v2 }
 0x387   :  { %v4959_v46 = vsub.f32 %v7686_v38, %v4513_v17  ;;  %v1110_v38 = vmul.f32 %v4947_v63, %v4947_v63 }
 0x388   :  { %v1280_v18 = vadd.f32 %v1279_v24, %v1123_v43  ;;  %v1203_v43 = vadd.f32 %v1202_v34, %v1106_v54  ;;  %v4971_v24 = vsub.f32 %v7560_v62, %v4513_v17  ;;  %7688 = vst [vmem:[#allocation55_spill] sm:$0xff] %v4975_v49  ;;  %v4987_v62 = vsub.f32 %v4386_v52, %v4513_v17 }
 0x389   :  { %v1112_v34 = vmul.f32 %v4959_v46, %v4959_v46  ;;  %v1133_v52 = vmul.f32 %v4975_v49, %v4975_v49 }
 0x38a   :  { %v1281_v36 = vadd.f32 %v1280_v18, %v1125_v55  ;;  %v1204_v55 = vadd.f32 %v1203_v43, %v1108_v61  ;;  %v7689_v18 = vld [vmem:[#allocation63_spill] sm:$0xff]  ;;  %7690 = vst [vmem:[#allocation57_spill] sm:$0xff] %v4987_v62  ;;  %v4999_v61 = vsub.f32 %v4402_v28, %v4513_v17  ;;  %v1135_v28 = vmul.f32 %v4987_v62, %v4987_v62 }
 0x38b   :  { %v4983_v3 = vsub.f32 %v7689_v18, %v4513_v17  ;;  %v1114_v18 = vmul.f32 %v4971_v24, %v4971_v24 }
 0x38c   :  { %v1282_v57 = vadd.f32 %v1281_v36, %v1127_v1  ;;  %v1205_v1 = vadd.f32 %v1204_v55, %v1110_v38  ;;  %v7691_v36 = vld [vmem:[#allocation65_spill] sm:$0xff]  ;;  %7692 = vst [vmem:[#allocation59_spill] sm:$0xff] %v4999_v61  ;;  %v5011_v38 = vsub.f32 %v4414_v27, %v4513_v17  ;;  %v1137_v27 = vmul.f32 %v4999_v61, %v4999_v61 }
 0x38d   :  { %v4995_v44 = vsub.f32 %v7691_v36, %v4513_v17  ;;  %v1116_v36 = vmul.f32 %v4983_v3, %v4983_v3 }
 0x38e   :  { %v1283_v54 = vadd.f32 %v1282_v57, %v1129_v6  ;;  %v1206_v6 = vadd.f32 %v1205_v1, %v1112_v34  ;;  %v7693_v57 = vld [vmem:[#allocation69_spill] sm:$0xff]  ;;  %7694 = vst [vmem:[#allocation63_spill] sm:$0xff] %v5011_v38  ;;  %v5023_v34 = vsub.f32 %v4430_v31, %v4513_v17  ;;  %v1139_v31 = vmul.f32 %v5011_v38, %v5011_v38 }
 0x38f   :  { %v5007_v2 = vsub.f32 %v7693_v57, %v4513_v17  ;;  %v1118_v57 = vmul.f32 %v4995_v44, %v4995_v44 }
 0x390   :  { %v1284_v43 = vadd.f32 %v1283_v54, %v1131_v20  ;;  %v1207_v20 = vadd.f32 %v1206_v6, %v1114_v18  ;;  %v7695_v54 = vld [vmem:[#allocation71_spill] sm:$0xff]  ;;  %7696 = vst [vmem:[#allocation65_spill] sm:$0xff] %v5023_v34  ;;  %v7698_v18 = vld [vmem:[#allocation85_spill] sm:$0xff] }
 0x391   :  { %v5019_v49 = vsub.f32 %v7695_v54, %v4513_v17  ;;  %v5035_v6 = vsub.f32 %v7698_v18, %v4513_v17  ;;  %v1120_v61 = vmul.f32 %v5007_v2, %v5007_v2 }
 0x392   :  { %v1285_v55 = vadd.f32 %v1284_v43, %v1133_v52  ;;  %v1208_v52 = vadd.f32 %v1207_v20, %v1116_v36  ;;  %v7697_v43 = vld [vmem:[#allocation73_spill] sm:$0xff]  ;;  %v5047_v36 = vsub.f32 %v4462_v47, %v4513_v17  ;;  %v1141_v20 = vmul.f32 %v5023_v34, %v5023_v34 }
 0x393   :  { %v5031_v62 = vsub.f32 %v7697_v43, %v4513_v17  ;;  %7699 = vst [vmem:[#allocation69_spill] sm:$0xff] %v5035_v6  ;;  %v1122_v18 = vmul.f32 %v5019_v49, %v5019_v49  ;;  %v1143_v47 = vmul.f32 %v5035_v6, %v5035_v6 }
 0x394   :  { %v1286_v1 = vadd.f32 %v1285_v55, %v1135_v28  ;;  %v1209_v28 = vadd.f32 %v1208_v52, %v1118_v57  ;;  %v7700_v55 = vld [vmem:[#allocation74_spill] sm:$0xff]  ;;  %7701 = vst [vmem:[#allocation71_spill] sm:$0xff] %v5047_v36  ;;  %v5059_v57 = vsub.f32 %v7575_v7, %v4513_v17  ;;  %v1145_v7 = vmul.f32 %v5047_v36, %v5047_v36 }
 0x395   :  { %v5043_v59 = vsub.f32 %v7700_v55, %v4513_v17  ;;  %v1124_v55 = vmul.f32 %v5031_v62, %v5031_v62 }
 0x396   :  { %v1287_v54 = vadd.f32 %v1286_v1, %v1137_v27  ;;  %v1210_v27 = vadd.f32 %v1209_v28, %v1120_v61  ;;  %v7702_v1 = vld [vmem:[#allocation76_spill] sm:$0xff]  ;;  %7703 = vst [vmem:[#allocation73_spill] sm:$0xff] %v5059_v57  ;;  %v5071_v61 = vsub.f32 %v4282_v19, %v4513_v17  ;;  %v1147_v19 = vmul.f32 %v5059_v57, %v5059_v57 }
 0x397   :  { %v5055_v38 = vsub.f32 %v7702_v1, %v4513_v17  ;;  %v1126_v1 = vmul.f32 %v5043_v59, %v5043_v59 }
 0x398   :  { %v1288_v43 = vadd.f32 %v1287_v54, %v1139_v31  ;;  %v1211_v31 = vadd.f32 %v1210_v27, %v1122_v18  ;;  %v7704_v54 = vld [vmem:[#allocation78_spill] sm:$0xff]  ;;  %7705 = vst [vmem:[#allocation85_spill] sm:$0xff] %v5071_v61  ;;  %v5083_v18 = vsub.f32 %v4300_v40, %v4513_v17  ;;  %v1149_v40 = vmul.f32 %v5071_v61, %v5071_v61 }
 0x399   :  { %v5067_v34 = vsub.f32 %v7704_v54, %v4513_v17  ;;  %v1128_v54 = vmul.f32 %v5055_v38, %v5055_v38 }
 0x39a   :  { %v1289_v52 = vadd.f32 %v1288_v43, %v1141_v20  ;;  %v1212_v20 = vadd.f32 %v1211_v31, %v1124_v55  ;;  %v7706_v43 = vld [vmem:[#allocation80_spill] sm:$0xff]  ;;  %7707 = vst [vmem:[#allocation74_spill] sm:$0xff] %v5083_v18  ;;  %v5095_v55 = vsub.f32 %v4318_v53, %v4513_v17  ;;  %v1151_v53 = vmul.f32 %v5083_v18, %v5083_v18 }
 0x39b   :  { %v5079_v6 = vsub.f32 %v7706_v43, %v4513_v17  ;;  %v1130_v43 = vmul.f32 %v5067_v34, %v5067_v34 }
 0x39c   :  { %v1290_v28 = vadd.f32 %v1289_v52, %v1143_v47  ;;  %v1213_v47 = vadd.f32 %v1212_v20, %v1126_v1  ;;  %v7708_v52 = vld [vmem:[#allocation82_spill] sm:$0xff]  ;;  %7709 = vst [vmem:[#allocation76_spill] sm:$0xff] %v5095_v55  ;;  %v5107_v1 = vsub.f32 %v4340_v58, %v4513_v17  ;;  %v1153_v58 = vmul.f32 %v5095_v55, %v5095_v55 }
 0x39d   :  { %v5091_v36 = vsub.f32 %v7708_v52, %v4513_v17  ;;  %v1132_v52 = vmul.f32 %v5079_v6, %v5079_v6 }
 0x39e   :  { %v1291_v27 = vadd.f32 %v1290_v28, %v1145_v7  ;;  %v1214_v7 = vadd.f32 %v1213_v47, %v1128_v54  ;;  %v7710_v28 = vld [vmem:[#allocation83_spill] sm:$0xff]  ;;  %7711 = vst [vmem:[#allocation78_spill] sm:$0xff] %v5107_v1  ;;  %v5119_v54 = vsub.f32 %v4358_v14, %v4513_v17  ;;  %v1155_v14 = vmul.f32 %v5107_v1, %v5107_v1 }
 0x39f   :  { %v5103_v57 = vsub.f32 %v7710_v28, %v4513_v17  ;;  %v1134_v28 = vmul.f32 %v5091_v36, %v5091_v36 }
 0x3a0   :  { %v1292_v31 = vadd.f32 %v1291_v27, %v1147_v19  ;;  %v1215_v19 = vadd.f32 %v1214_v7, %v1130_v43  ;;  %v7712_v27 = vld [vmem:[#allocation60_spill] sm:$0xff]  ;;  %7713 = vst [vmem:[#allocation80_spill] sm:$0xff] %v5119_v54  ;;  %v5131_v43 = vsub.f32 %v4376_v29, %v4513_v17  ;;  %v1157_v29 = vmul.f32 %v5119_v54, %v5119_v54 }
 0x3a1   :  { %v5115_v61 = vsub.f32 %v7712_v27, %v4513_v17  ;;  %v1136_v27 = vmul.f32 %v5103_v57, %v5103_v57 }
 0x3a2   :  { %v1293_v20 = vadd.f32 %v1292_v31, %v1149_v40  ;;  %v1216_v40 = vadd.f32 %v1215_v19, %v1132_v52  ;;  %v7714_v31 = vld [vmem:[#allocation62_spill] sm:$0xff]  ;;  %7715 = vst [vmem:[#allocation82_spill] sm:$0xff] %v5131_v43  ;;  %v5143_v52 = vsub.f32 %v4394_v21, %v4513_v17  ;;  %v1159_v21 = vmul.f32 %v5131_v43, %v5131_v43 }
 0x3a3   :  { %v5127_v18 = vsub.f32 %v7714_v31, %v4513_v17  ;;  %v1138_v31 = vmul.f32 %v5115_v61, %v5115_v61 }
 0x3a4   :  { %v1294_v47 = vadd.f32 %v1293_v20, %v1151_v53  ;;  %v1217_v53 = vadd.f32 %v1216_v40, %v1134_v28  ;;  %v7716_v20 = vld [vmem:[#allocation66_spill] sm:$0xff]  ;;  %7717 = vst [vmem:[#allocation83_spill] sm:$0xff] %v5143_v52  ;;  %v5155_v28 = vsub.f32 %v4416_v5, %v4513_v17  ;;  %v1161_v5 = vmul.f32 %v5143_v52, %v5143_v52 }
 0x3a5   :  { %v5139_v55 = vsub.f32 %v7716_v20, %v4513_v17  ;;  %v1140_v20 = vmul.f32 %v5127_v18, %v5127_v18 }
 0x3a6   :  { %v1295_v7 = vadd.f32 %v1294_v47, %v1153_v58  ;;  %v1218_v58 = vadd.f32 %v1217_v53, %v1136_v27  ;;  %v5151_v47 = vsub.f32 %v4459_v16, %v4513_v17  ;;  %7718 = vst [vmem:[#allocation60_spill] sm:$0xff] %v5155_v28  ;;  %v5167_v16 = vsub.f32 %v4434_v33, %v4513_v17 }
 0x3a7   :  { %v1142_v53 = vmul.f32 %v5139_v55, %v5139_v55  ;;  %v1163_v33 = vmul.f32 %v5155_v28, %v5155_v28 }
 0x3a8   :  { %v1296_v19 = vadd.f32 %v1295_v7, %v1155_v14  ;;  %v1219_v14 = vadd.f32 %v1218_v58, %v1138_v31  ;;  %v7719_v7 = vld [vmem:[#allocation68_spill] sm:$0xff]  ;;  %7720 = vst [vmem:[#allocation62_spill] sm:$0xff] %v5167_v16  ;;  %v5179_v31 = vsub.f32 %v4452_v23, %v4513_v17  ;;  %v1165_v23 = vmul.f32 %v5167_v16, %v5167_v16 }
 0x3a9   :  { %v5163_v54 = vsub.f32 %v7719_v7, %v4513_v17  ;;  %v1144_v7 = vmul.f32 %v5151_v47, %v5151_v47 }
 0x3aa   :  { %v1297_v40 = vadd.f32 %v1296_v19, %v1157_v29  ;;  %v1220_v29 = vadd.f32 %v1219_v14, %v1140_v20  ;;  %v7721_v19 = vld [vmem:[#allocation70_spill] sm:$0xff]  ;;  %7723 = vst [vmem:[#allocation68_spill] sm:$0xff] %v5179_v31  ;;  %v7725_v20 = vld [vmem:[#allocation67_spill] sm:$0xff] }
 0x3ab   :  { %v5175_v43 = vsub.f32 %v7721_v19, %v4513_v17  ;;  %v5191_v14 = vsub.f32 %v7725_v20, %v4513_v17  ;;  %v1146_v28 = vmul.f32 %v5163_v54, %v5163_v54 }
 0x3ac   :  { %v1298_v27 = vadd.f32 %v1297_v40, %v1159_v21  ;;  %v1221_v21 = vadd.f32 %v1220_v29, %v1142_v53  ;;  %v7724_v40 = vld [vmem:[#allocation72_spill] sm:$0xff]  ;;  %v5203_v53 = vsub.f32 %v4484_v50, %v4513_v17  ;;  %v1167_v29 = vmul.f32 %v5179_v31, %v5179_v31 }
 0x3ad   :  { %7722 = vst [vmem:[#allocation66_spill] sm:$0xff] %v5175_v43  ;;  %v5187_v52 = vsub.f32 %v7724_v40, %v4513_v17  ;;  %v1148_v20 = vmul.f32 %v5175_v43, %v5175_v43  ;;  %v1169_v50 = vmul.f32 %v5191_v14, %v5191_v14  ;;  %v7734_v43 = vld [vmem:[#allocation81_spill] sm:$0xff] }
 0x3ae   :  { %v1299_v58 = vadd.f32 %v1298_v27, %v1161_v5  ;;  %7726 = vst [vmem:[#allocation70_spill] sm:$0xff] %v5191_v14  ;;  %v1222_v5 = vadd.f32 %v1221_v21, %v1144_v7  ;;  %v7727_v27 = vld [vmem:[#allocation75_spill] sm:$0xff]  ;;  %v5215_v7 = vsub.f32 %v4498_v35, %v4513_v17  ;;  %v5231_v14 = vsub.f32 %v7734_v43, %v4513_v17  ;;  %v7738_v43 = vld [vmem:[#allocation61_spill] sm:$0xff] }
 0x3af   :  { %v5199_v1 = vsub.f32 %v7727_v27, %v4513_v17  ;;  %7729 = vst [vmem:[#allocation67_spill] sm:$0xff] %v5203_v53  ;;  %v1150_v27 = vmul.f32 %v5187_v52, %v5187_v52 }
 0x3b0   :  { %v1300_v19 = vadd.f32 %v1299_v58, %v1163_v33  ;;  %v1223_v33 = vadd.f32 %v1222_v5, %v1146_v28  ;;  %v7730_v58 = vld [vmem:[#allocation77_spill] sm:$0xff]  ;;  %7731 = vst [vmem:[#allocation75_spill] sm:$0xff] %v5215_v7  ;;  %v1171_v28 = vmul.f32 %v5203_v53, %v5203_v53 }
 0x3b1   :  { %7728 = vst [vmem:[#allocation72_spill] sm:$0xff] %v5199_v1  ;;  %v5211_v16 = vsub.f32 %v7730_v58, %v4513_v17  ;;  %v1152_v35 = vmul.f32 %v5199_v1, %v5199_v1 }
 0x3b2   :  { %v1301_v40 = vadd.f32 %v1300_v19, %v1165_v23  ;;  %v1224_v23 = vadd.f32 %v1223_v33, %v1148_v20  ;;  %v7732_v19 = vld [vmem:[#allocation79_spill] sm:$0xff] }
 0x3b3   :  { %v5223_v31 = vsub.f32 %v7732_v19, %v4513_v17  ;;  %7735 = vst [vmem:[#allocation79_spill] sm:$0xff] %v5231_v14  ;;  %v1154_v20 = vmul.f32 %v5211_v16, %v5211_v16  ;;  %v7736_v19 = vld [vmem:[#allocation84_spill] sm:$0xff] }
 0x3b4   :  { %v1302_v21 = vadd.f32 %v1301_v40, %v1167_v29  ;;  %v1225_v58 = vadd.f32 %v1224_v23, %v1150_v27  ;;  %v1173_v29 = vmul.f32 %v5215_v7, %v5215_v7  ;;  %v5239_v53 = vsub.f32 %v7736_v19, %v4513_v17 }
 0x3b5   :  { %7733 = vst [vmem:[#allocation77_spill] sm:$0xff] %v5223_v31  ;;  %v5245_v23 = vsub.f32 %v7738_v43, %v4513_v17 }
 0x3b6   :  { %v1303_v5 = vadd.f32 %v1302_v21, %v1169_v50  ;;  %v1226_v33 = vadd.f32 %v1225_v58, %v1152_v35  ;;  %7737 = vst [vmem:[#allocation81_spill] sm:$0xff] %v5239_v53  ;;  %v1156_v21 = vmul.f32 %v5223_v31, %v5223_v31  ;;  %v7740_v35 = vld [vmem:[#allocation64_spill] sm:$0xff] }
 0x3b7   :  { %7739 = vst [vmem:[#allocation84_spill] sm:$0xff] %v5245_v23  ;;  %v5251_v58 = vsub.f32 %v7740_v35, %v4513_v17  ;;  %v1162_v7 = vmul.f32 %v5245_v23, %v5245_v23  ;;  %v7829_v23 = vld [vmem:[#allocation56_spill] sm:$0xff] }
 0x3b8   :  { %v1304_v40 = vadd.f32 %v1303_v5, %v1171_v28  ;;  %v1227_v27 = vadd.f32 %v1226_v33, %v1154_v20  ;;  %v1158_v28 = vmul.f32 %v5231_v14, %v5231_v14  ;;  %v7742_v20 = vld [vmem:[#allocation86_spill] sm:$0xff] }
 0x3b9   :  { %7741 = vst [vmem:[#allocation61_spill] sm:$0xff] %v5251_v58  ;;  %v5257_v33 = vsub.f32 %v7742_v20, %v4513_v17 }
 0x3ba   :  { %v1305_v50 = vadd.f32 %v1304_v40, %v1173_v29  ;;  %v1228_v5 = vadd.f32 %v1227_v27, %v1156_v21  ;;  %v1160_v29 = vmul.f32 %v5239_v53, %v5239_v53  ;;  %v7744_v21 = vld [vmem:[#allocation87_spill] sm:$0xff] }
 0x3bb   :  { %7743 = vst [vmem:[#allocation64_spill] sm:$0xff] %v5257_v33  ;;  %v5263_v27 = vsub.f32 %v7744_v21, %v4513_v17  ;;  %v1166_v53 = vmul.f32 %v5257_v33, %v5257_v33 }
 0x3bc   :  { %v1306_v1 = vrot.slane %v1305_v50, 4  ;;  %v1229_v40 = vadd.f32 %v1228_v5, %v1158_v28  ;;  %v7746_v28 = vld [vmem:[#allocation88_spill] sm:$0xff] }
 0x3bd   :  { %7745 = vst [vmem:[#allocation86_spill] sm:$0xff] %v5263_v27  ;;  %v5269_v5 = vsub.f32 %v7746_v28, %v4513_v17 }
 0x3be   :  { %v1307_v19 = vadd.f32 %v1306_v1, %v1305_v50  ;;  %v1230_v31 = vadd.f32 %v1229_v40, %v1160_v29  ;;  %v1164_v1 = vmul.f32 %v5251_v58, %v5251_v58  ;;  %v5275_v29 = vsub.f32 %v4500_v13, %v4513_v17  ;;  %v7799_v58 = vld [vmem:[#allocation30_spill] sm:$0xff] }
 0x3bf   :  { %7747 = vst [vmem:[#allocation87_spill] sm:$0xff] %v5269_v5 }
 0x3c0   :  { %v1308_v43 = vrot.slane %v1307_v19, 2  ;;  %v1231_v50 = vadd.f32 %v1230_v31, %v1162_v7  ;;  %7748 = vst [vmem:[#allocation88_spill] sm:$0xff] %v5275_v29  ;;  %v1170_v7 = vmul.f32 %v5269_v5, %v5269_v5  ;;  %v7797_v5 = vld [vmem:[#allocation29_spill] sm:$0xff] }
 0x3c2   :  { %v1309_v35 = vadd.f32 %v1308_v43, %v1307_v19  ;;  %v1232_v14 = vadd.f32 %v1231_v50, %v1164_v1  ;;  %v1168_v19 = vmul.f32 %v5263_v27, %v5263_v27  ;;  %v1172_v1 = vmul.f32 %v5275_v29, %v5275_v29  ;;  %v7795_v29 = vld [vmem:[#allocation28_spill] sm:$0xff] }
 0x3c4   :  { %v1310_v20 = vrot.slane %v1309_v35, 1  ;;  %v1233_v43 = vadd.f32 %v1232_v14, %v1166_v53  ;;  %v3692_v53 = vld [vmem:[%s7230_s4 + $0x38] sm:$0xff] }
 0x3c5   :  { %1984 = vmatpush.bf16.msrb.mxu2 %v3692_v53  ;;  %v3695_v53 = vld [vmem:[%s7230_s4 + $0x50] sm:$0xff] }
 0x3c6   :  { %v1311_v40 = vadd.f32 %v1310_v20, %v1309_v35  ;;  %v1234_v21 = vadd.f32 %v1233_v43, %v1168_v19  ;;  %v3691_v19 = vld [vmem:[%s7230_s4 + $0x30] sm:$0xff] }
 0x3c8   :  { %v1313_v31 = vmul.f32 %v1311_v40, %v4505_v60  ;;  %v1235_v50 = vadd.f32 %v1234_v21, %v1170_v7  ;;  %v3700_v40 = vld [vmem:[%s7230_s4 + $0x78] sm:$0xff]  ;;  %v3690_v7 = vld [vmem:[%s7230_s4 + $0x28] sm:$0xff] }
 0x3c9   :  { %2033 = vmatpush.bf16.msrb.mxu3 %v3700_v40  ;;  %1985 = vmatpush.bf16.msrb.mxu2 %v3691_v19  ;;  %v3698_v21 = vld [vmem:[%s7230_s4 + $0x68] sm:$0xff] }
 0x3ca   :  { %1321 = vrot.lane.b32.xlu2 %v1313_v31, %s3839_s0  ;;  %v1236_v28 = vadd.f32 %v1235_v50, %v1172_v1 }
 0x3cc   :  { %v1237_v13 = vrot.slane %v1236_v28, 4 }
 0x3cd   :  { %1986 = vmatpush.bf16.msrb.mxu2 %v3690_v7 }
 0x3ce   :  { %v1238_v17 = vadd.f32 %v1237_v13, %v1236_v28  ;;  %v3689_v13 = vld [vmem:[%s7230_s4 + $0x20] sm:$0xff] }
 0x3d0   :  { %v1239_v35 = vrot.slane %v1238_v17, 2 }
 0x3d1   :  { %1987 = vmatpush.bf16.msrb.mxu2 %v3689_v13 }
 0x3d2   :  { %v1240_v20 = vadd.f32 %v1239_v35, %v1238_v17  ;;  %v3688_v35 = vld [vmem:[%s7230_s4 + $0x18] sm:$0xff] }
 0x3d4   :  { %v1241_v33 = vrot.slane %v1240_v20, 1 }
 0x3d5   :  { %1988 = vmatpush.bf16.msrb.mxu2 %v3688_v35 }
 0x3d6   :  { %v1242_v27 = vadd.f32 %v1241_v33, %v1240_v20  ;;  %v3696_v20 = vld [vmem:[%s7230_s4 + $0x58] sm:$0xff] }
 0x3d8   :  { %v1312_v14 = vmul.f32 %v1242_v27, %v4505_v60  ;;  %v3699_v60 = vld [vmem:[%s7230_s4 + $0x70] sm:$0xff] }
 0x3d9   :  { %2034 = vmatpush.bf16.msrb.mxu3 %v3699_v60 }
 0x3da   :  { %1315 = vrot.lane.b32.xlu1 %v1312_v14, %s3839_s0 }
 0x3dd   :  { %2035 = vmatpush.bf16.msrb.mxu3 %v3698_v21 }
 0x424   :  { %v1322_v1 = vpop.permute.xlu2 %1321 }
 0x44c   :  { %v1316_v33 = vpop.permute.xlu1 %1315 }
 0x44d   :  { %v1318_v27 = vadd.f32 %v1316_v33, %v1312_v14  ;;  %v3687_v14 = vld [vmem:[%s7230_s4 + $0x10] sm:$0xff] }
 0x44e   :  { %1989 = vmatpush.bf16.msrb.mxu2 %v3687_v14 }
 0x44f   :  { %v1319_v43 = vadd.f32 %v1318_v27, %v1313_v31  ;;  %v3697_v31 = vld [vmem:[%s7230_s4 + $0x60] sm:$0xff] }
 0x450   :  { %2036 = vmatpush.bf16.msrb.mxu3 %v3697_v31 }
 0x451   :  { %v1324_v50 = vadd.f32 %v1322_v1, %v1319_v43 }
 0x453   :  { %v1325_v28 = vmul.f32 0.25, %v1324_v50 }
 0x454   :  { %2037 = vmatpush.bf16.msrb.mxu3 %v3696_v20 }
 0x455   :  { %v1327_v17 = vadd.f32 0.001, %v1325_v28  ;;  %v1326_v28 = vld [vmem:[%s7228_s2] sm:$0x3] }
 0x457   :  { %3798 = vrsqrt.f32 %v1327_v17  ;;  %vm1334_vm3 = vweird.f32 %v1327_v17 }
 0x458   :  { %2038 = vmatpush.bf16.msrb.mxu3 %v3695_v53 }
 0x45d   :  { %v3799_v40 = vpop.eup %3798 }
 0x45e   :  { %v1329_v19 = vmul.f32 %v3799_v40, %v1327_v17  ;;  %vm1335_vm2 = vweird.f32 %v3799_v40  ;;  %v1482_v17 = vld [vmem:[%s7229_s3] sm:$0x3] }
 0x45f   :  { %vm1336_vm4 = vmor %vm1334_vm3, %vm1335_vm2  ;;  %v5336_v14 = vperm.slane %v1482_v17, 0  ;;  %v5338_v53 = vperm.slane %v1482_v17, 1 }
 0x460   :  { %v1330_v60 = vmul.f32 %v3799_v40, %v1329_v19 }
 0x461   :  { %7749 = vst [vmem:[#allocation91_spill] sm:$0xff] %v5336_v14 }
 0x462   :  { %v1331_v33 = vmul.f32 0.5, %v1330_v60  ;;  %7750 = vst [vmem:[#allocation92_spill] sm:$0xff] %v5338_v53 }
 0x464   :  { %v1332_v27 = vsub.f32 1.5, %v1331_v33 }
 0x466   :  { %v1333_v43 = vmul.f32 %v3799_v40, %v1332_v27 }
 0x468   :  { %v1337_v7 = vsel %vm1336_vm4, %v3799_v40, %v1333_v43  ;;  %v7761_v43 = vld [vmem:[#allocation12_spill] sm:$0xff] }
 0x469   :  { %1339 = vrot.lane.b32.xlu2 %v1337_v7, %s3839_s0  ;;  %s3842_s0 = smov [#allocation2]  }
 0x46a   :  { %s3026_s1 = sshll.u32 %s3842_s0, 4  ;;  %s3027_s1 = int_to_ptr.vmem [resolvable:$true] %s3026_s1 }
 0x4c3   :  { %v1340_v21 = vpop.permute.xlu2 %1339 }
 0x4c4   :  { %v1342_v1 = vsel %vm318_vm0, %v1337_v7, %v1340_v21  ;;  %v7763_v7 = vld [vmem:[#allocation6_spill] sm:$0xff]  ;;  %v7765_v21 = vld [vmem:[#allocation13_spill] sm:$0xff] }
 0x4c5   :  { %v1344_v50 = vrot.slane %v1342_v1, 7 }
 0x4c7   :  { %v1346_v13 = vsel %vm1345_vm5, %v1342_v1, %v1344_v50  ;;  %v7767_v1 = vld [vmem:[#allocation8_spill] sm:$0xff]  ;;  %v7769_v50 = vld [vmem:[#allocation14_spill] sm:$0xff] }
 0x4c8   :  { %v1348_v31 = vmul.f32 %v1346_v13, %v1326_v28  ;;  %v7771_v28 = vld [vmem:[#allocation89_spill] sm:$0xff] }
 0x4ca   :  { %v5329_v35 = vperm.slane %v1348_v31, 0  ;;  %v5331_v20 = vperm.slane %v1348_v31, 1  ;;  %v7773_v31 = vld [vmem:[#allocation15_spill] sm:$0xff] }
 0x4cc   :  { %v5342_v40 = vmul.f32 %v5329_v35, %v4567_v37  ;;  %v5346_v19 = vmul.f32 %v5331_v20, %v4517_v30  ;;  %v5350_v60 = vmul.f32 %v5329_v35, %v4571_v51  ;;  %v5354_v33 = vmul.f32 %v5331_v20, %v4521_v10 }
 0x4cd   :  { %v5358_v27 = vmul.f32 %v5329_v35, %v4587_v25  ;;  %v5362_v37 = vmul.f32 %v5331_v20, %v4525_v42  ;;  %v5366_v30 = vmul.f32 %v5329_v35, %v4601_v12  ;;  %v5370_v51 = vmul.f32 %v5331_v20, %v4533_v32 }
 0x4ce   :  { %7751 = vst [vmem:[#allocation93_spill] sm:$0xff] %v5342_v40  ;;  %v5374_v10 = vmul.f32 %v5329_v35, %v4611_v9  ;;  %v5378_v25 = vmul.f32 %v5331_v20, %v4537_v15  ;;  %v5382_v42 = vmul.f32 %v5329_v35, %v7761_v43  ;;  %v5386_v12 = vmul.f32 %v5331_v20, %v7763_v7  ;;  %v7774_v43 = vld [vmem:[#allocation90_spill] sm:$0xff]  ;;  %v7793_v40 = vld [vmem:[#allocation27_spill] sm:$0xff] }
 0x4cf   :  { %7752 = vst [vmem:[#allocation94_spill] sm:$0xff] %v5346_v19  ;;  %v5390_v32 = vmul.f32 %v5329_v35, %v7765_v21  ;;  %v5394_v9 = vmul.f32 %v5331_v20, %v7767_v1  ;;  %v5398_v15 = vmul.f32 %v5329_v35, %v7769_v50  ;;  %v5402_v13 = vmul.f32 %v5331_v20, %v7771_v28  ;;  %v7775_v21 = vld [vmem:[#allocation16_spill] sm:$0xff]  ;;  %v7791_v19 = vld [vmem:[#allocation26_spill] sm:$0xff] }
 0x4d0   :  { %7753 = vst [vmem:[#allocation95_spill] sm:$0xff] %v5350_v60  ;;  %v5406_v17 = vmul.f32 %v5329_v35, %v7773_v31  ;;  %v5410_v7 = vmul.f32 %v5331_v20, %v7774_v43  ;;  %v5414_v1 = vmul.f32 %v5329_v35, %v7775_v21  ;;  %v7789_v60 = vld [vmem:[#allocation25_spill] sm:$0xff] }
 0x4d1   :  { %7754 = vst [vmem:[#allocation96_spill] sm:$0xff] %v5354_v33  ;;  %v7788_v33 = vld [vmem:[#allocation24_spill] sm:$0xff] }
 0x4d2   :  { %7755 = vst [vmem:[#allocation97_spill] sm:$0xff] %v5358_v27  ;;  %v7787_v27 = vld [vmem:[#allocation23_spill] sm:$0xff] }
 0x4d3   :  { %7756 = vst [vmem:[#allocation98_spill] sm:$0xff] %v5362_v37  ;;  %v7786_v37 = vld [vmem:[#allocation22_spill] sm:$0xff] }
 0x4d4   :  { %7757 = vst [vmem:[#allocation99_spill] sm:$0xff] %v5366_v30  ;;  %v7785_v30 = vld [vmem:[#allocation21_spill] sm:$0xff] }
 0x4d5   :  { %7758 = vst [vmem:[#allocation100_spill] sm:$0xff] %v5370_v51  ;;  %v7784_v51 = vld [vmem:[#allocation11_spill] sm:$0xff] }
 0x4d6   :  { %7759 = vst [vmem:[#allocation101_spill] sm:$0xff] %v5374_v10  ;;  %v7783_v10 = vld [vmem:[#allocation20_spill] sm:$0xff] }
 0x4d7   :  { %7760 = vst [vmem:[#allocation102_spill] sm:$0xff] %v5378_v25  ;;  %v7782_v25 = vld [vmem:[#allocation10_spill] sm:$0xff] }
 0x4d8   :  { %7762 = vst [vmem:[#allocation12_spill] sm:$0xff] %v5382_v42  ;;  %v7781_v42 = vld [vmem:[#allocation19_spill] sm:$0xff] }
 0x4d9   :  { %7764 = vst [vmem:[#allocation6_spill] sm:$0xff] %v5386_v12  ;;  %v7780_v12 = vld [vmem:[#allocation9_spill] sm:$0xff] }
 0x4da   :  { %7766 = vst [vmem:[#allocation13_spill] sm:$0xff] %v5390_v32  ;;  %v7779_v32 = vld [vmem:[#allocation18_spill] sm:$0xff]  ;;  %v5434_v21 = vmul.f32 %v5331_v20, %v7780_v12  ;;  %v5454_v12 = vmul.f32 %v5329_v35, %v7785_v30  ;;  %v5474_v30 = vmul.f32 %v5331_v20, %v7791_v19 }
 0x4db   :  { %7768 = vst [vmem:[#allocation8_spill] sm:$0xff] %v5394_v9  ;;  %v7776_v9 = vld [vmem:[#allocation5_spill] sm:$0xff]  ;;  %v5430_v43 = vmul.f32 %v5329_v35, %v7779_v32  ;;  %v5450_v32 = vmul.f32 %v5331_v20, %v7784_v51  ;;  %v5470_v51 = vmul.f32 %v5329_v35, %v7789_v60  ;;  %v5490_v60 = vmul.f32 %v5331_v20, %v7799_v58 }
 0x4dc   :  { %7770 = vst [vmem:[#allocation14_spill] sm:$0xff] %v5398_v15  ;;  %v5418_v50 = vmul.f32 %v5331_v20, %v7776_v9  ;;  %v7777_v15 = vld [vmem:[#allocation17_spill] sm:$0xff]  ;;  %v5438_v9 = vmul.f32 %v5329_v35, %v7781_v42  ;;  %v5458_v42 = vmul.f32 %v5331_v20, %v7786_v37  ;;  %v5478_v37 = vmul.f32 %v5329_v35, %v7793_v40 }
 0x4dd   :  { %7772 = vst [vmem:[#allocation89_spill] sm:$0xff] %v5402_v13  ;;  %v5422_v28 = vmul.f32 %v5329_v35, %v7777_v15  ;;  %v7778_v13 = vld [vmem:[#allocation7_spill] sm:$0xff]  ;;  %v5442_v15 = vmul.f32 %v5331_v20, %v7782_v25  ;;  %v5462_v25 = vmul.f32 %v5329_v35, %v7787_v27  ;;  %v5482_v27 = vmul.f32 %v5331_v20, %v7795_v29 }
 0x4de   :  { %v5426_v31 = vmul.f32 %v5331_v20, %v7778_v13  ;;  %v5446_v13 = vmul.f32 %v5329_v35, %v7783_v10  ;;  %v5466_v10 = vmul.f32 %v5331_v20, %v7788_v33  ;;  %7790 = vst [vmem:[#allocation15_spill] sm:$0xff] %v5470_v51  ;;  %v5486_v33 = vmul.f32 %v5329_v35, %v7797_v5  ;;  %v7801_v51 = vld [vmem:[#allocation31_spill] sm:$0xff] }
 0x4df   :  { %7792 = vst [vmem:[#allocation90_spill] sm:$0xff] %v5474_v30  ;;  %v5494_v19 = vmul.f32 %v5329_v35, %v7801_v51  ;;  %v7803_v30 = vld [vmem:[#allocation32_spill] sm:$0xff]  ;;  %v5510_v58 = vmul.f32 %v5329_v35, %v4815_v26 }
 0x4e0   :  { %7794 = vst [vmem:[#allocation16_spill] sm:$0xff] %v5478_v37  ;;  %v5498_v40 = vmul.f32 %v5331_v20, %v7803_v30  ;;  %v7805_v37 = vld [vmem:[#allocation33_spill] sm:$0xff]  ;;  %v5518_v30 = vmul.f32 %v5329_v35, %v4827_v4 }
 0x4e1   :  { %7796 = vst [vmem:[#allocation5_spill] sm:$0xff] %v5482_v27  ;;  %v5502_v29 = vmul.f32 %v5329_v35, %v7805_v37  ;;  %v7807_v27 = vld [vmem:[#allocation34_spill] sm:$0xff] }
 0x4e2   :  { %7798 = vst [vmem:[#allocation17_spill] sm:$0xff] %v5486_v33  ;;  %v5506_v5 = vmul.f32 %v5331_v20, %v7807_v27  ;;  %v5526_v27 = vmul.f32 %v5329_v35, %v4839_v41  ;;  %v7827_v33 = vld [vmem:[#allocation37_spill] sm:$0xff] }
 0x4e3   :  { %7800 = vst [vmem:[#allocation7_spill] sm:$0xff] %v5490_v60  ;;  %v7810_v60 = vld [vmem:[#allocation36_spill] sm:$0xff] }
 0x4e4   :  { %7802 = vst [vmem:[#allocation18_spill] sm:$0xff] %v5494_v19  ;;  %v5514_v51 = vmul.f32 %v5331_v20, %v7810_v60  ;;  %v5534_v60 = vmul.f32 %v5329_v35, %v4851_v39  ;;  %v7825_v19 = vld [vmem:[#allocation54_spill] sm:$0xff] }
 0x4e5   :  { %7804 = vst [vmem:[#allocation9_spill] sm:$0xff] %v5498_v40  ;;  %v7813_v40 = vld [vmem:[#allocation38_spill] sm:$0xff] }
 0x4e6   :  { %7806 = vst [vmem:[#allocation19_spill] sm:$0xff] %v5502_v29  ;;  %v5522_v37 = vmul.f32 %v5331_v20, %v7813_v40  ;;  %v5542_v40 = vmul.f32 %v5329_v35, %v4863_v22  ;;  %v7824_v29 = vld [vmem:[#allocation35_spill] sm:$0xff] }
 0x4e7   :  { %7808 = vst [vmem:[#allocation10_spill] sm:$0xff] %v5506_v5  ;;  %v7816_v5 = vld [vmem:[#allocation40_spill] sm:$0xff] }
 0x4e8   :  { %7809 = vst [vmem:[#allocation20_spill] sm:$0xff] %v5510_v58  ;;  %v5530_v26 = vmul.f32 %v5331_v20, %v7816_v5  ;;  %v5550_v5 = vmul.f32 %v5329_v35, %v4875_v8  ;;  %v7823_v58 = vld [vmem:[#allocation52_spill] sm:$0xff] }
 0x4e9   :  { %7811 = vst [vmem:[#allocation11_spill] sm:$0xff] %v5514_v51  ;;  %v7818_v51 = vld [vmem:[#allocation42_spill] sm:$0xff] }
 0x4ea   :  { %7812 = vst [vmem:[#allocation21_spill] sm:$0xff] %v5518_v30  ;;  %v5538_v4 = vmul.f32 %v5331_v20, %v7818_v51  ;;  %v5558_v51 = vmul.f32 %v5329_v35, %v4887_v0  ;;  %v7822_v30 = vld [vmem:[#allocation50_spill] sm:$0xff]  ;;  %v5578_v0 = vmul.f32 %v5331_v20, %v7823_v58  ;;  %v5598_v58 = vmul.f32 %v5329_v35, %v4947_v63 }
 0x4eb   :  { %7814 = vst [vmem:[#allocation22_spill] sm:$0xff] %v5522_v37  ;;  %v7819_v37 = vld [vmem:[#allocation44_spill] sm:$0xff]  ;;  %v5570_v8 = vmul.f32 %v5331_v20, %v7822_v30  ;;  %v5590_v30 = vmul.f32 %v5329_v35, %v4935_v11  ;;  %v5610_v11 = vmul.f32 %v5331_v20, %v7829_v23  ;;  %v5630_v23 = vmul.f32 %v5329_v35, %v4995_v44 }
 0x4ec   :  { %7815 = vst [vmem:[#allocation23_spill] sm:$0xff] %v5526_v27  ;;  %v5546_v41 = vmul.f32 %v5331_v20, %v7819_v37  ;;  %v7821_v27 = vld [vmem:[#allocation48_spill] sm:$0xff]  ;;  %v5566_v37 = vmul.f32 %v5329_v35, %v4899_v56  ;;  %v5586_v56 = vmul.f32 %v5331_v20, %v7824_v29  ;;  %v5606_v29 = vmul.f32 %v5329_v35, %v4959_v46 }
 0x4ed   :  { %7817 = vst [vmem:[#allocation24_spill] sm:$0xff] %v5530_v26  ;;  %v7820_v26 = vld [vmem:[#allocation46_spill] sm:$0xff]  ;;  %v5562_v22 = vmul.f32 %v5331_v20, %v7821_v27  ;;  %v5582_v27 = vmul.f32 %v5329_v35, %v4923_v48  ;;  %v5602_v48 = vmul.f32 %v5331_v20, %v7827_v33  ;;  %v5622_v33 = vmul.f32 %v5329_v35, %v4983_v3 }
 0x4ee   :  { %v5554_v39 = vmul.f32 %v5331_v20, %v7820_v26  ;;  %v5574_v26 = vmul.f32 %v5329_v35, %v4911_v45  ;;  %v5594_v45 = vmul.f32 %v5331_v20, %v7825_v19  ;;  %7830 = vst [vmem:[#allocation27_spill] sm:$0xff] %v5610_v11  ;;  %v5614_v19 = vmul.f32 %v5329_v35, %v4971_v24  ;;  %v7838_v11 = vld [vmem:[#allocation41_spill] sm:$0xff] }
 0x4ef   :  { %7828 = vst [vmem:[#allocation26_spill] sm:$0xff] %v5602_v48  ;;  %v7835_v48 = vld [vmem:[#allocation58_spill] sm:$0xff]  ;;  %v5634_v24 = vmul.f32 %v5331_v20, %v7838_v11  ;;  %v5654_v11 = vmul.f32 %v5329_v35, %v5031_v62 }
 0x4f0   :  { %7826 = vst [vmem:[#allocation25_spill] sm:$0xff] %v5594_v45  ;;  %v7832_v45 = vld [vmem:[#allocation39_spill] sm:$0xff]  ;;  %v5626_v46 = vmul.f32 %v5331_v20, %v7835_v48  ;;  %v5646_v48 = vmul.f32 %v5329_v35, %v5019_v49 }
 0x4f1   :  { %7831 = vst [vmem:[#allocation28_spill] sm:$0xff] %v5614_v19  ;;  %v5618_v63 = vmul.f32 %v5331_v20, %v7832_v45  ;;  %v5638_v45 = vmul.f32 %v5329_v35, %v5007_v2  ;;  %v7857_v19 = vld [vmem:[#allocation69_spill] sm:$0xff] }
 0x4f2   :  { %7834 = vst [vmem:[#allocation30_spill] sm:$0xff] %v5622_v33  ;;  %v7856_v33 = vld [vmem:[#allocation65_spill] sm:$0xff] }
 0x4f3   :  { %7833 = vst [vmem:[#allocation29_spill] sm:$0xff] %v5618_v63  ;;  %v7841_v63 = vld [vmem:[#allocation43_spill] sm:$0xff] }
 0x4f4   :  { %7836 = vst [vmem:[#allocation31_spill] sm:$0xff] %v5626_v46  ;;  %v5642_v3 = vmul.f32 %v5331_v20, %v7841_v63  ;;  %v7844_v46 = vld [vmem:[#allocation45_spill] sm:$0xff]  ;;  %v5662_v63 = vmul.f32 %v5329_v35, %v5043_v59 }
 0x4f5   :  { %7837 = vst [vmem:[#allocation32_spill] sm:$0xff] %v5630_v23  ;;  %v5650_v44 = vmul.f32 %v5331_v20, %v7844_v46  ;;  %v5670_v46 = vmul.f32 %v5329_v35, %v5055_v38  ;;  %v7855_v23 = vld [vmem:[#allocation63_spill] sm:$0xff] }
 0x4f6   :  { %7839 = vst [vmem:[#allocation33_spill] sm:$0xff] %v5634_v24  ;;  %v7847_v24 = vld [vmem:[#allocation47_spill] sm:$0xff] }
 0x4f7   :  { %7840 = vst [vmem:[#allocation34_spill] sm:$0xff] %v5638_v45  ;;  %v5658_v2 = vmul.f32 %v5331_v20, %v7847_v24  ;;  %v5678_v24 = vmul.f32 %v5329_v35, %v5067_v34  ;;  %v7854_v45 = vld [vmem:[#allocation59_spill] sm:$0xff] }
 0x4f8   :  { %7842 = vst [vmem:[#allocation36_spill] sm:$0xff] %v5642_v3  ;;  %v7849_v3 = vld [vmem:[#allocation49_spill] sm:$0xff] }
 0x4f9   :  { %7843 = vst [vmem:[#allocation38_spill] sm:$0xff] %v5646_v48  ;;  %v5666_v49 = vmul.f32 %v5331_v20, %v7849_v3  ;;  %v5686_v3 = vmul.f32 %v5329_v35, %v5079_v6  ;;  %v7853_v48 = vld [vmem:[#allocation57_spill] sm:$0xff]  ;;  %v5706_v6 = vmul.f32 %v5331_v20, %v7854_v45  ;;  %v5726_v45 = vmul.f32 %v5329_v35, %v5139_v55 }
 0x4fa   :  { %7845 = vst [vmem:[#allocation40_spill] sm:$0xff] %v5650_v44  ;;  %v7850_v44 = vld [vmem:[#allocation51_spill] sm:$0xff]  ;;  %v5698_v34 = vmul.f32 %v5331_v20, %v7853_v48  ;;  %v5718_v48 = vmul.f32 %v5329_v35, %v5127_v18  ;;  %v5738_v18 = vadd.f32 %v5338_v53, %v5410_v7  ;;  %v5746_v55 = vadd.f32 %v5338_v53, %v5418_v50 }
 0x4fb   :  { %7846 = vst [vmem:[#allocation42_spill] sm:$0xff] %v5654_v11  ;;  %v5674_v62 = vmul.f32 %v5331_v20, %v7850_v44  ;;  %v7852_v11 = vld [vmem:[#allocation55_spill] sm:$0xff]  ;;  %v5694_v44 = vmul.f32 %v5329_v35, %v5091_v36  ;;  %v5714_v36 = vmul.f32 %v5331_v20, %v7855_v23  ;;  %v5734_v23 = vadd.f32 %v5336_v14, %v5406_v17 }
 0x4fc   :  { %7848 = vst [vmem:[#allocation44_spill] sm:$0xff] %v5658_v2  ;;  %v7851_v2 = vld [vmem:[#allocation53_spill] sm:$0xff]  ;;  %v5690_v38 = vmul.f32 %v5331_v20, %v7852_v11  ;;  %v5710_v11 = vmul.f32 %v5329_v35, %v5115_v61  ;;  %v5730_v61 = vmul.f32 %v5331_v20, %v7857_v19  ;;  %v5750_v19 = vadd.f32 %v5336_v14, %v5422_v28 }
 0x4fd   :  { %v5682_v59 = vmul.f32 %v5331_v20, %v7851_v2  ;;  %v5702_v2 = vmul.f32 %v5329_v35, %v5103_v57  ;;  %v5722_v57 = vmul.f32 %v5331_v20, %v7856_v33  ;;  %7858 = vst [vmem:[#allocation46_spill] sm:$0xff] %v5734_v23  ;;  %v5742_v33 = vadd.f32 %v5336_v14, %v5414_v1 }
 0x4fe   :  { %7859 = vst [vmem:[#allocation48_spill] sm:$0xff] %v5738_v18  ;;  %v5754_v17 = vadd.f32 %v5338_v53, %v5426_v31  ;;  %v5758_v7 = vadd.f32 %v5336_v14, %v5430_v43  ;;  %v5762_v1 = vadd.f32 %v5338_v53, %v5434_v21  ;;  %v5766_v50 = vadd.f32 %v5336_v14, %v5438_v9 }
 0x4ff   :  { %7860 = vst [vmem:[#allocation50_spill] sm:$0xff] %v5742_v33  ;;  %v5770_v28 = vadd.f32 %v5338_v53, %v5442_v15  ;;  %v5774_v31 = vadd.f32 %v5336_v14, %v5446_v13  ;;  %v5778_v43 = vadd.f32 %v5338_v53, %v5450_v32  ;;  %v5782_v21 = vadd.f32 %v5336_v14, %v5454_v12  ;;  %v7875_v33 = vld [vmem:[#allocation73_spill] sm:$0xff] }
 0x500   :  { %7861 = vst [vmem:[#allocation52_spill] sm:$0xff] %v5746_v55  ;;  %v5786_v9 = vadd.f32 %v5338_v53, %v5458_v42  ;;  %v5790_v15 = vadd.f32 %v5336_v14, %v5462_v25  ;;  %v5794_v13 = vadd.f32 %v5338_v53, %v5466_v10  ;;  %v5798_v32 = vmul.f32 %v5329_v35, %v5151_v47  ;;  %v7874_v55 = vld [vmem:[#allocation71_spill] sm:$0xff] }
 0x501   :  { %7862 = vst [vmem:[#allocation35_spill] sm:$0xff] %v5750_v19  ;;  %v5802_v12 = vmul.f32 %v5331_v20, %v7874_v55  ;;  %v5806_v42 = vmul.f32 %v5329_v35, %v5163_v54  ;;  %v5810_v25 = vmul.f32 %v5331_v20, %v7875_v33  ;;  %v5822_v55 = vmul.f32 %v5329_v35, %v5187_v52 }
 0x502   :  { %7863 = vst [vmem:[#allocation54_spill] sm:$0xff] %v5754_v17 }
 0x503   :  { %7864 = vst [vmem:[#allocation37_spill] sm:$0xff] %v5758_v7  ;;  %v7889_v7 = vld [vmem:[#allocation82_spill] sm:$0xff] }
 0x504   :  { %7865 = vst [vmem:[#allocation56_spill] sm:$0xff] %v5762_v1  ;;  %v7888_v1 = vld [vmem:[#allocation79_spill] sm:$0xff] }
 0x505   :  { %7866 = vst [vmem:[#allocation39_spill] sm:$0xff] %v5766_v50  ;;  %v7886_v50 = vld [vmem:[#allocation80_spill] sm:$0xff] }
 0x506   :  { %7867 = vst [vmem:[#allocation58_spill] sm:$0xff] %v5770_v28  ;;  %v7884_v28 = vld [vmem:[#allocation77_spill] sm:$0xff] }
 0x507   :  { %7868 = vst [vmem:[#allocation41_spill] sm:$0xff] %v5774_v31  ;;  %v7882_v31 = vld [vmem:[#allocation78_spill] sm:$0xff] }
 0x508   :  { %7869 = vst [vmem:[#allocation43_spill] sm:$0xff] %v5778_v43  ;;  %v7880_v43 = vld [vmem:[#allocation76_spill] sm:$0xff]  ;;  %v5842_v52 = vmul.f32 %v5331_v20, %v7882_v31  ;;  %v5862_v31 = vadd.f32 %v5336_v14, %v5534_v60  ;;  %v5882_v60 = vadd.f32 %v5338_v53, %v5554_v39  ;;  %v5902_v39 = vadd.f32 %v5336_v14, %v5574_v26 }
 0x509   :  { %7870 = vst [vmem:[#allocation45_spill] sm:$0xff] %v5782_v21  ;;  %v7879_v21 = vld [vmem:[#allocation72_spill] sm:$0xff] }
 0x50a   :  { %7871 = vst [vmem:[#allocation47_spill] sm:$0xff] %v5786_v9  ;;  %v7878_v9 = vld [vmem:[#allocation74_spill] sm:$0xff]  ;;  %v5830_v33 = vmul.f32 %v5329_v35, %v7879_v21  ;;  %v5850_v21 = vmul.f32 %v5331_v20, %v7886_v50  ;;  %v5870_v50 = vadd.f32 %v5336_v14, %v5542_v40  ;;  %v5890_v40 = vadd.f32 %v5338_v53, %v5562_v22 }
 0x50b   :  { %7872 = vst [vmem:[#allocation49_spill] sm:$0xff] %v5790_v15  ;;  %v7876_v15 = vld [vmem:[#allocation66_spill] sm:$0xff]  ;;  %v5826_v54 = vmul.f32 %v5331_v20, %v7878_v9  ;;  %v5846_v9 = vmul.f32 %v5329_v35, %v7884_v28  ;;  %v5866_v28 = vadd.f32 %v5338_v53, %v5538_v4  ;;  %v5886_v4 = vadd.f32 %v5336_v14, %v5558_v51 }
 0x50c   :  { %7873 = vst [vmem:[#allocation51_spill] sm:$0xff] %v5794_v13  ;;  %v5814_v10 = vmul.f32 %v5329_v35, %v7876_v15  ;;  %v7877_v13 = vld [vmem:[#allocation85_spill] sm:$0xff]  ;;  %v5834_v15 = vmul.f32 %v5331_v20, %v7880_v43  ;;  %v5854_v43 = vmul.f32 %v5329_v35, %v7888_v1  ;;  %v5874_v1 = vadd.f32 %v5338_v53, %v5546_v41 }
 0x50d   :  { %v5818_v47 = vmul.f32 %v5331_v20, %v7877_v13  ;;  %v5838_v13 = vmul.f32 %v5329_v35, %v5211_v16  ;;  %7883 = vst [vmem:[#allocation55_spill] sm:$0xff] %v5842_v52  ;;  %v5858_v16 = vmul.f32 %v5331_v20, %v7889_v7  ;;  %v5878_v7 = vadd.f32 %v5336_v14, %v5550_v5  ;;  %v7906_v52 = vld [vmem:[#allocation81_spill] sm:$0xff] }
 0x50e   :  { %7885 = vst [vmem:[#allocation57_spill] sm:$0xff] %v5846_v9  ;;  %v5894_v41 = vadd.f32 %v5336_v14, %v5566_v37  ;;  %v5898_v5 = vadd.f32 %v5338_v53, %v5570_v8  ;;  %v5906_v51 = vadd.f32 %v5338_v53, %v5578_v0  ;;  %v5910_v22 = vadd.f32 %v5336_v14, %v5582_v27  ;;  %v7907_v9 = vld [vmem:[#allocation83_spill] sm:$0xff]  ;;  %v7908_v27 = vld [vmem:[#allocation84_spill] sm:$0xff] }
 0x50f   :  { %7881 = vst [vmem:[#allocation53_spill] sm:$0xff] %v5838_v13  ;;  %v5914_v37 = vadd.f32 %v5338_v53, %v5586_v56  ;;  %v5918_v8 = vadd.f32 %v5336_v14, %v5590_v30  ;;  %v1468_v0 = vmul.f32 %v5329_v35, %v7906_v52  ;;  %v1469_v13 = vmul.f32 %v5331_v20, %v7907_v9 }
 0x510   :  { %7887 = vst [vmem:[#allocation59_spill] sm:$0xff] %v5850_v21  ;;  %v7904_v21 = vld [vmem:[#allocation25_spill] sm:$0xff] }
 0x511   :  { %7890 = vst [vmem:[#allocation63_spill] sm:$0xff] %v5866_v28  ;;  %v5922_v26 = vadd.f32 %v5338_v53, %v7904_v21  ;;  %v7912_v21 = vld [vmem:[#allocation64_spill] sm:$0xff] }
 0x512   :  { %7891 = vst [vmem:[#allocation65_spill] sm:$0xff] %v5870_v50  ;;  %v7909_v50 = vld [vmem:[#allocation60_spill] sm:$0xff] }
 0x513   :  { %7892 = vst [vmem:[#allocation69_spill] sm:$0xff] %v5874_v1  ;;  %v1470_v1 = vmul.f32 %v5329_v35, %v7908_v27  ;;  %v1471_v56 = vmul.f32 %v5331_v20, %v7909_v50 }
 0x514   :  { %7893 = vst [vmem:[#allocation71_spill] sm:$0xff] %v5878_v7  ;;  %v7920_v7 = vld [vmem:[#allocation93_spill] sm:$0xff] }
 0x515   :  { %7894 = vst [vmem:[#allocation73_spill] sm:$0xff] %v5882_v60  ;;  %v7919_v60 = vld [vmem:[#allocation75_spill] sm:$0xff] }
 0x516   :  { %7895 = vst [vmem:[#allocation66_spill] sm:$0xff] %v5886_v4  ;;  %v7918_v4 = vld [vmem:[#allocation88_spill] sm:$0xff] }
 0x517   :  { %7896 = vst [vmem:[#allocation85_spill] sm:$0xff] %v5890_v40  ;;  %v7917_v40 = vld [vmem:[#allocation67_spill] sm:$0xff] }
 0x518   :  { %7897 = vst [vmem:[#allocation74_spill] sm:$0xff] %v5894_v41  ;;  %v7916_v41 = vld [vmem:[#allocation87_spill] sm:$0xff] }
 0x519   :  { %7898 = vst [vmem:[#allocation72_spill] sm:$0xff] %v5898_v5  ;;  %v7915_v5 = vld [vmem:[#allocation70_spill] sm:$0xff]  ;;  %v1478_v50 = vmul.f32 %v5329_v35, %v7916_v41  ;;  %v5962_v41 = vadd.f32 %v5336_v14, %v5662_v63  ;;  %v5982_v63 = vadd.f32 %v5338_v53, %v5682_v59  ;;  %v6002_v59 = vadd.f32 %v5336_v14, %v5702_v2 }
 0x51a   :  { %7899 = vst [vmem:[#allocation76_spill] sm:$0xff] %v5902_v39  ;;  %v7914_v39 = vld [vmem:[#allocation86_spill] sm:$0xff]  ;;  %v1477_v27 = vmul.f32 %v5331_v20, %v7915_v5  ;;  %v6022_v2 = vadd.f32 %v5338_v53, %v5722_v57  ;;  %v7933_v5 = vld [vmem:[#allocation97_spill] sm:$0xff] }
 0x51b   :  { %7900 = vst [vmem:[#allocation78_spill] sm:$0xff] %v5906_v51  ;;  %v7913_v51 = vld [vmem:[#allocation68_spill] sm:$0xff]  ;;  %v1476_v9 = vmul.f32 %v5329_v35, %v7914_v39  ;;  %v7921_v39 = vld [vmem:[#allocation94_spill] sm:$0xff]  ;;  %v3686_v57 = vld [vmem:[%s7230_s4 + $0x8] sm:$0xff] }
 0x51c   :  { %7901 = vst [vmem:[#allocation77_spill] sm:$0xff] %v5910_v22  ;;  %v1475_v52 = vmul.f32 %v5331_v20, %v7913_v51  ;;  %v5954_v51 = vadd.f32 %v5336_v14, %v7920_v7  ;;  %v5958_v28 = vadd.f32 %v5338_v53, %v7921_v39  ;;  %v5978_v7 = vadd.f32 %v5336_v14, %v5678_v24  ;;  %v7934_v39 = vld [vmem:[#allocation98_spill] sm:$0xff]  ;;  %v8016_v18 = vld [vmem:[#allocation73_spill] sm:$0xff] }
 0x51d   :  { %7902 = vst [vmem:[#allocation80_spill] sm:$0xff] %v5914_v37  ;;  %v7910_v37 = vld [vmem:[#allocation61_spill] sm:$0xff]  ;;  %v5998_v24 = vadd.f32 %v5338_v53, %v5698_v34  ;;  %v6018_v34 = vadd.f32 %v5336_v14, %v5718_v48  ;;  %v6038_v48 = vadd.f32 %v5338_v53, %v7934_v39  ;;  %1990 = vmatpush.bf16.msrb.mxu2 %v3686_v57  ;;  %v3693_v57 = vld [vmem:[%s7230_s4 + $0x40] sm:$0xff] }
 0x51e   :  { %7903 = vst [vmem:[#allocation79_spill] sm:$0xff] %v5918_v8  ;;  %v1472_v30 = vmul.f32 %v5329_v35, %v7910_v37  ;;  %v7911_v8 = vld [vmem:[#allocation62_spill] sm:$0xff]  ;;  %v1479_v37 = vmul.f32 %v5331_v20, %v7917_v40  ;;  %v5966_v40 = vadd.f32 %v5338_v53, %v5666_v49  ;;  %v5986_v49 = vadd.f32 %v5336_v14, %v5686_v3 }
 0x51f   :  { %7905 = vst [vmem:[#allocation82_spill] sm:$0xff] %v5922_v26  ;;  %v1473_v22 = vmul.f32 %v5331_v20, %v7911_v8  ;;  %v1474_v26 = vmul.f32 %v5329_v35, %v7912_v21  ;;  %v1480_v8 = vmul.f32 %v5329_v35, %v7918_v4  ;;  %v1481_v21 = vmul.f32 %v5331_v20, %v7919_v60  ;;  %v7931_v60 = vld [vmem:[#allocation95_spill] sm:$0xff]  ;;  %v7932_v4 = vld [vmem:[#allocation96_spill] sm:$0xff] }
 0x520   :  { %v5970_v35 = vadd.f32 %v5336_v14, %v5670_v46  ;;  %v5974_v20 = vadd.f32 %v5338_v53, %v5674_v62  ;;  %v5990_v46 = vadd.f32 %v5338_v53, %v5690_v38  ;;  %v5994_v62 = vadd.f32 %v5336_v14, %v5694_v44  ;;  %7924 = vst [vmem:[#allocation83_spill] sm:$0xff] %v5998_v24 }
 0x521   :  { %7925 = vst [vmem:[#allocation84_spill] sm:$0xff] %v6002_v59  ;;  %v6006_v3 = vadd.f32 %v5338_v53, %v5706_v6  ;;  %v6010_v38 = vadd.f32 %v5336_v14, %v5710_v11  ;;  %v6014_v44 = vadd.f32 %v5338_v53, %v5714_v36  ;;  %v6026_v6 = vadd.f32 %v5336_v14, %v7931_v60  ;;  %v3694_v60 = vld [vmem:[%s7230_s4 + $0x48] sm:$0xff]  ;;  %v7944_v59 = vld [vmem:[#allocation12_spill] sm:$0xff] }
 0x522   :  { %7922 = vst [vmem:[#allocation25_spill] sm:$0xff] %v5990_v46  ;;  %v6030_v11 = vadd.f32 %v5338_v53, %v7932_v4  ;;  %v6034_v36 = vadd.f32 %v5336_v14, %v7933_v5  ;;  %v6064_v24 = vadd.f32 %v5336_v14, %v7944_v59  ;;  %v7952_v46 = vld [vmem:[#allocation14_spill] sm:$0xff]  ;;  %2039 = vmatpush.bf16.msrb.mxu3 %v3694_v60 }
 0x523   :  { %7923 = vst [vmem:[#allocation81_spill] sm:$0xff] %v5994_v62  ;;  %v7946_v62 = vld [vmem:[#allocation6_spill] sm:$0xff]  ;;  %v6083_v59 = vadd.f32 %v5336_v14, %v7952_v46  ;;  %v6102_v46 = vadd.f32 %v5336_v14, %v5854_v43  ;;  %v6115_v60 = vadd.f32 %v5336_v14, %v1470_v1  ;;  %v6124_v43 = vadd.f32 %v5338_v53, %v1473_v22 }
 0x524   :  { %7926 = vst [vmem:[#allocation60_spill] sm:$0xff] %v6006_v3  ;;  %v6136_v1 = vadd.f32 %v5338_v53, %v1477_v27  ;;  %v6145_v22 = vadd.f32 %v5336_v14, %v1480_v8  ;;  %v7975_v27 = vld [vmem:[#allocation5_spill] sm:$0xff] }
 0x525   :  { %7927 = vst [vmem:[#allocation61_spill] sm:$0xff] %v6010_v38  ;;  %v7942_v38 = vld [vmem:[#allocation102_spill] sm:$0xff] }
 0x526   :  { %7928 = vst [vmem:[#allocation62_spill] sm:$0xff] %v6014_v44  ;;  %v7940_v44 = vld [vmem:[#allocation101_spill] sm:$0xff]  ;;  %v6060_v3 = vadd.f32 %v5338_v53, %v7942_v38  ;;  %v3685_v38 = vld [vmem:[%s7230_s4] sm:$0xff]  ;;  %2040 = vmatpush.bf16.msrb.mxu3 %v3693_v57 }
 0x527   :  { %7929 = vst [vmem:[#allocation64_spill] sm:$0xff] %v6018_v34  ;;  %v7938_v34 = vld [vmem:[#allocation100_spill] sm:$0xff]  ;;  %v6056_v39 = vadd.f32 %v5336_v14, %v7940_v44  ;;  %1991 = vmatpush.bf16.msrb.mxu2 %v3685_v38  ;;  %v6156_v38 = vadd.f32 %v5338_v53, %v7975_v27  ;;  %v7979_v57 = vld [vmem:[#allocation9_spill] sm:$0xff] }
 0x528   :  { %7930 = vst [vmem:[#allocation68_spill] sm:$0xff] %v6022_v2  ;;  %v7936_v2 = vld [vmem:[#allocation99_spill] sm:$0xff]  ;;  %v6052_v5 = vadd.f32 %v5338_v53, %v7938_v34 }
 0x529   :  { %7935 = vst [vmem:[#allocation86_spill] sm:$0xff] %v6038_v48  ;;  %v6048_v4 = vadd.f32 %v5336_v14, %v7936_v2  ;;  %v6068_v2 = vadd.f32 %v5338_v53, %v7946_v62  ;;  %v8027_v19 = vld [vmem:[#allocation25_spill] sm:$0xff] }
 0x52a   :  { %7939 = vst [vmem:[#allocation87_spill] sm:$0xff] %v6052_v5  ;;  %v7950_v5 = vld [vmem:[#allocation8_spill] sm:$0xff]  ;;  %v8032_v48 = vld [vmem:[#allocation81_spill] sm:$0xff] }
 0x52b   :  { %7937 = vst [vmem:[#allocation70_spill] sm:$0xff] %v6048_v4  ;;  %v7948_v4 = vld [vmem:[#allocation13_spill] sm:$0xff]  ;;  %v6076_v44 = vadd.f32 %v5338_v53, %v7950_v5 }
 0x52c   :  { %7941 = vst [vmem:[#allocation67_spill] sm:$0xff] %v6056_v39  ;;  %v6072_v34 = vadd.f32 %v5336_v14, %v7948_v4  ;;  %v8018_v39 = vld [vmem:[#allocation85_spill] sm:$0xff] }
 0x52d   :  { %7943 = vst [vmem:[#allocation88_spill] sm:$0xff] %v6060_v3  ;;  %v8017_v3 = vld [vmem:[#allocation66_spill] sm:$0xff] }
 0x52e   :  { %7945 = vst [vmem:[#allocation75_spill] sm:$0xff] %v6064_v24  ;;  %v7954_v24 = vld [vmem:[#allocation89_spill] sm:$0xff] }
 0x52f   :  { %7947 = vst [vmem:[#allocation93_spill] sm:$0xff] %v6068_v2  ;;  %v6087_v62 = vadd.f32 %v5338_v53, %v7954_v24  ;;  %v7956_v2 = vld [vmem:[#allocation15_spill] sm:$0xff]  ;;  %v6106_v24 = vadd.f32 %v5338_v53, %v5858_v16  ;;  %v6127_v16 = vadd.f32 %v5336_v14, %v1474_v26  ;;  %v6148_v26 = vadd.f32 %v5338_v53, %v1481_v21 }
 0x530   :  { %7949 = vst [vmem:[#allocation94_spill] sm:$0xff] %v6072_v34  ;;  %v6091_v4 = vadd.f32 %v5336_v14, %v7956_v2  ;;  %v7957_v34 = vld [vmem:[#allocation90_spill] sm:$0xff]  ;;  %v6109_v2 = vadd.f32 %v5336_v14, %v1468_v0  ;;  %v6130_v0 = vadd.f32 %v5338_v53, %v1475_v52  ;;  %v7974_v52 = vld [vmem:[#allocation16_spill] sm:$0xff] }
 0x531   :  { %7951 = vst [vmem:[#allocation95_spill] sm:$0xff] %v6076_v44  ;;  %v6095_v5 = vadd.f32 %v5338_v53, %v7957_v34  ;;  %v6118_v34 = vadd.f32 %v5338_v53, %v1471_v56  ;;  %v6139_v56 = vadd.f32 %v5336_v14, %v1478_v50  ;;  %v7976_v50 = vld [vmem:[#allocation17_spill] sm:$0xff] }
 0x532   :  { %7953 = vst [vmem:[#allocation96_spill] sm:$0xff] %v6083_v59  ;;  %v6121_v59 = vadd.f32 %v5336_v14, %v1472_v30  ;;  %v6142_v30 = vadd.f32 %v5338_v53, %v1479_v37  ;;  %v6160_v44 = vadd.f32 %v5336_v14, %v7976_v50  ;;  %v7977_v37 = vld [vmem:[#allocation7_spill] sm:$0xff] }
 0x533   :  { %7955 = vst [vmem:[#allocation97_spill] sm:$0xff] %v6087_v62  ;;  %v6112_v62 = vadd.f32 %v5338_v53, %v1469_v13  ;;  %v6133_v13 = vadd.f32 %v5336_v14, %v1476_v9  ;;  %v6152_v9 = vadd.f32 %v5336_v14, %v7974_v52  ;;  %v6164_v8 = vadd.f32 %v5338_v53, %v7977_v37 }
 0x534   :  { %7958 = vst [vmem:[#allocation98_spill] sm:$0xff] %v6102_v46  ;;  %v6172_v52 = vadd.f32 %v5338_v53, %v7979_v57 }
 0x535   :  { %7959 = vst [vmem:[#allocation99_spill] sm:$0xff] %v6106_v24  ;;  %v1648_v24 = vmax.f32 %v6091_v4, 0.0  ;;  %v1650_v46 = vmax.f32 %v6152_v9, 0.0  ;;  %v8030_v4 = vmax.f32 %v5958_v28, 0.0 }
 0x536   :  { %7960 = vst [vmem:[#allocation100_spill] sm:$0xff] %v6109_v2  ;;  %v7981_v2 = vld [vmem:[#allocation10_spill] sm:$0xff] }
 0x537   :  { %7961 = vst [vmem:[#allocation101_spill] sm:$0xff] %v6112_v62  ;;  %v7978_v62 = vld [vmem:[#allocation18_spill] sm:$0xff]  ;;  %v6180_v50 = vadd.f32 %v5338_v53, %v7981_v2  ;;  %v6200_v2 = vadd.f32 %v5336_v14, %v5598_v58 }
 0x538   :  { %7962 = vst [vmem:[#allocation102_spill] sm:$0xff] %v6115_v60  ;;  %v6168_v21 = vadd.f32 %v5336_v14, %v7978_v62 }
 0x539   :  { %7963 = vst [vmem:[#allocation12_spill] sm:$0xff] %v6118_v34  ;;  %v7999_v34 = vld [vmem:[#allocation36_spill] sm:$0xff]  ;;  %v1680_v9 = vmax.f32 %v6200_v2, 0.0 }
 0x53a   :  { %7964 = vst [vmem:[#allocation6_spill] sm:$0xff] %v6121_v59  ;;  %v7998_v59 = vld [vmem:[#allocation34_spill] sm:$0xff]  ;;  %v1654_v28 = vmax.f32 %v6168_v21, 0.0 }
 0x53b   :  { %7965 = vst [vmem:[#allocation13_spill] sm:$0xff] %v6124_v43  ;;  %v7997_v43 = vld [vmem:[#allocation33_spill] sm:$0xff] }
 0x53c   :  { %7966 = vst [vmem:[#allocation8_spill] sm:$0xff] %v6127_v16  ;;  %v7996_v16 = vld [vmem:[#allocation32_spill] sm:$0xff] }
 0x53d   :  { %7967 = vst [vmem:[#allocation14_spill] sm:$0xff] %v6130_v0  ;;  %v7994_v0 = vld [vmem:[#allocation30_spill] sm:$0xff] }
 0x53e   :  { %7968 = vst [vmem:[#allocation89_spill] sm:$0xff] %v6133_v13  ;;  %v7990_v13 = vld [vmem:[#allocation26_spill] sm:$0xff] }
 0x53f   :  { %7969 = vst [vmem:[#allocation15_spill] sm:$0xff] %v6136_v1  ;;  %v7988_v1 = vld [vmem:[#allocation22_spill] sm:$0xff] }
 0x540   :  { %7970 = vst [vmem:[#allocation90_spill] sm:$0xff] %v6139_v56  ;;  %v7986_v56 = vld [vmem:[#allocation21_spill] sm:$0xff] }
 0x541   :  { %7971 = vst [vmem:[#allocation103_spill] sm:$0xff] %v6142_v30  ;;  %v7984_v30 = vld [vmem:[#allocation11_spill] sm:$0xff]  ;;  %v6192_v57 = vadd.f32 %v5336_v14, %v7986_v56 }
 0x542   :  { %7972 = vst [vmem:[#allocation104_spill] sm:$0xff] %v6145_v22  ;;  %v7982_v22 = vld [vmem:[#allocation20_spill] sm:$0xff]  ;;  %v6188_v62 = vadd.f32 %v5338_v53, %v7984_v30  ;;  %v6208_v30 = vadd.f32 %v5336_v14, %v5606_v29 }
 0x543   :  { %7973 = vst [vmem:[#allocation105_spill] sm:$0xff] %v6148_v26  ;;  %v7980_v26 = vld [vmem:[#allocation19_spill] sm:$0xff]  ;;  %v6184_v37 = vadd.f32 %v5336_v14, %v7982_v22  ;;  %v6204_v22 = vadd.f32 %v5338_v53, %v7990_v13  ;;  %v6224_v13 = vadd.f32 %v5336_v14, %v7994_v0  ;;  %v6244_v0 = vadd.f32 %v5338_v53, %v7999_v34 }
 0x544   :  { %v6176_v27 = vadd.f32 %v5336_v14, %v7980_v26  ;;  %7985 = vst [vmem:[#allocation5_spill] sm:$0xff] %v6188_v62  ;;  %v6196_v26 = vadd.f32 %v5338_v53, %v7988_v1  ;;  %v7991_v62 = vld [vmem:[#allocation27_spill] sm:$0xff]  ;;  %v6264_v34 = vadd.f32 %v5336_v14, %v5806_v42  ;;  %v6284_v42 = vadd.f32 %v5338_v53, %v5826_v54 }
 0x545   :  { %7983 = vst [vmem:[#allocation16_spill] sm:$0xff] %v6184_v37  ;;  %v6212_v56 = vadd.f32 %v5338_v53, %v7991_v62  ;;  %v7995_v37 = vld [vmem:[#allocation31_spill] sm:$0xff]  ;;  %v6232_v62 = vadd.f32 %v5336_v14, %v7996_v16  ;;  %v6252_v16 = vadd.f32 %v5338_v53, %v5730_v61  ;;  %v6272_v61 = vadd.f32 %v5336_v14, %v5814_v10 }
 0x546   :  { %7987 = vst [vmem:[#allocation17_spill] sm:$0xff] %v6192_v57  ;;  %v7992_v57 = vld [vmem:[#allocation28_spill] sm:$0xff]  ;;  %v6228_v29 = vadd.f32 %v5338_v53, %v7995_v37  ;;  %v6248_v37 = vadd.f32 %v5336_v14, %v5726_v45  ;;  %v6268_v45 = vadd.f32 %v5338_v53, %v5810_v25  ;;  %v6288_v25 = vadd.f32 %v5336_v14, %v5830_v33 }
 0x547   :  { %7989 = vst [vmem:[#allocation7_spill] sm:$0xff] %v6196_v26  ;;  %v6216_v1 = vadd.f32 %v5336_v14, %v7992_v57  ;;  %v7993_v26 = vld [vmem:[#allocation29_spill] sm:$0xff]  ;;  %v6236_v57 = vadd.f32 %v5338_v53, %v7997_v43  ;;  %v6256_v43 = vadd.f32 %v5336_v14, %v5798_v32  ;;  %v6276_v32 = vadd.f32 %v5338_v53, %v5818_v47 }
 0x548   :  { %v6220_v58 = vadd.f32 %v5338_v53, %v7993_v26  ;;  %v6240_v26 = vadd.f32 %v5336_v14, %v7998_v59  ;;  %v6260_v59 = vadd.f32 %v5338_v53, %v5802_v12  ;;  %v6280_v12 = vadd.f32 %v5336_v14, %v5822_v55  ;;  %8001 = vst [vmem:[#allocation9_spill] sm:$0xff] %v6284_v42 }
 0x549   :  { %8002 = vst [vmem:[#allocation19_spill] sm:$0xff] %v6288_v25  ;;  %v6292_v10 = vadd.f32 %v5338_v53, %v5834_v15  ;;  %v1649_v55 = vmax.f32 %v6095_v5, 0.0  ;;  %v1651_v54 = vmax.f32 %v6156_v38, 0.0  ;;  %v1681_v38 = vmax.f32 %v6204_v22, 0.0  ;;  %v8033_v25 = vld [vmem:[#allocation83_spill] sm:$0xff] }
 0x54a   :  { %8000 = vst [vmem:[#allocation18_spill] sm:$0xff] %v6280_v12  ;;  %v8019_v12 = vld [vmem:[#allocation74_spill] sm:$0xff]  ;;  %v1682_v42 = vmax.f32 %v6208_v30, 0.0  ;;  %v1683_v33 = vmax.f32 %v6212_v56, 0.0  ;;  %v1684_v14 = vmax.f32 %v6216_v1, 0.0  ;;  %v1685_v15 = vmax.f32 %v6220_v58, 0.0 }
 0x54b   :  { %8003 = vst [vmem:[#allocation10_spill] sm:$0xff] %v6292_v10  ;;  %v1686_v60 = vmax.f32 %v6224_v13, 0.0  ;;  %v1687_v47 = vmax.f32 %v6228_v29, 0.0  ;;  %v1714_v2 = vmax.f32 %v6256_v43, 0.0  ;;  %v1715_v22 = vmax.f32 %v6260_v59, 0.0  ;;  %v8061_v56 = vld [vmem:[#allocation15_spill] sm:$0xff] }
 0x54c   :  { %v1712_v1 = vmax.f32 %v6248_v37, 0.0  ;;  %v1713_v58 = vmax.f32 %v6252_v16, 0.0  ;;  %v8028_v16 = vmax.f32 %v5954_v51, 0.0  ;;  %v8029_v13 = vmax.f32 %v6026_v6, 0.0 }
 0x54d   :  { %v1778_v53 = vmax.f32 %v1682_v42, %v1714_v2  ;;  %v1779_v37 = vmax.f32 %v1683_v33, %v1715_v22  ;;  %v1745_v5 = vmax.f32 %v8030_v4, %v1649_v55  ;;  %v8031_v43 = vmax.f32 %v6030_v11, 0.0  ;;  %v8035_v55 = vld [vmem:[#allocation87_spill] sm:$0xff] }
 0x54e   :  { %v1744_v23 = vmax.f32 %v8028_v16, %v1648_v24  ;;  %v1746_v29 = vmax.f32 %v8029_v13, %v1650_v46  ;;  %v1776_v17 = vmax.f32 %v1680_v9, %v1712_v1  ;;  %v1777_v59 = vmax.f32 %v1681_v38, %v1713_v58  ;;  %v8034_v9 = vld [vmem:[#allocation70_spill] sm:$0xff]  ;;  %v8040_v13 = vld [vmem:[#allocation64_spill] sm:$0xff] }
 0x54f   :  { %v1747_v10 = vmax.f32 %v8031_v43, %v1651_v54  ;;  %v1716_v42 = vmax.f32 %v6264_v34, 0.0  ;;  %v1717_v51 = vmax.f32 %v6268_v45, 0.0  ;;  %v1622_v2 = vmax.f32 %v8034_v9, 0.0  ;;  %v8037_v45 = vld [vmem:[#allocation60_spill] sm:$0xff]  ;;  %v8062_v1 = vld [vmem:[#allocation90_spill] sm:$0xff] }
 0x550   :  { %v1810_v33 = vmax.f32 %v1746_v29, %v1778_v53  ;;  %v1808_v24 = vmax.f32 %v1744_v23, %v1776_v17  ;;  %v1809_v6 = vmax.f32 %v1745_v5, %v1777_v59  ;;  %v1718_v11 = vmax.f32 %v6272_v61, 0.0  ;;  %v8036_v53 = vld [vmem:[#allocation84_spill] sm:$0xff]  ;;  %v8038_v17 = vld [vmem:[#allocation61_spill] sm:$0xff]  ;;  %v8039_v5 = vld [vmem:[#allocation62_spill] sm:$0xff] }
 0x551   :  { %v1811_v46 = vmax.f32 %v1747_v10, %v1779_v37  ;;  %v1623_v54 = vmax.f32 %v8035_v55, 0.0  ;;  %v1655_v22 = vmax.f32 %v6172_v52, 0.0  ;;  %v1719_v34 = vmax.f32 %v6276_v32, 0.0  ;;  %v8044_v37 = vld [vmem:[#allocation18_spill] sm:$0xff]  ;;  %v8050_v23 = vld [vmem:[#allocation99_spill] sm:$0xff] }
 0x552   :  { %v1840_v4 = vpack.c.bf16 %v1810_v33, %v1808_v24  ;;  %v8042_v43 = vmax.f32 %v6160_v44, 0.0  ;;  %v8043_v52 = vmax.f32 %v6034_v36, 0.0  ;;  %v1780_v32 = vmax.f32 %v1684_v14, %v1716_v42  ;;  %v8045_v33 = vld [vmem:[#allocation9_spill] sm:$0xff]  ;;  %v8047_v55 = vld [vmem:[#allocation86_spill] sm:$0xff]  ;;  %v8052_v42 = vld [vmem:[#allocation12_spill] sm:$0xff] }
 0x553   :  { %v1841_v38 = vpack.c.bf16 %v1811_v46, %v1809_v6  ;;  %v1720_v16 = vmax.f32 %v8044_v37, 0.0  ;;  %v1721_v24 = vmax.f32 %v8045_v33, 0.0  ;;  %v1750_v6 = vmax.f32 %v1622_v2, %v1654_v28  ;;  %v8049_v10 = vld [vmem:[#allocation98_spill] sm:$0xff]  ;;  %v8054_v2 = vld [vmem:[#allocation13_spill] sm:$0xff]  ;;  %v8055_v28 = vld [vmem:[#allocation8_spill] sm:$0xff] }
 0x554   :  { %1992 = vmatmul.bf16.vlgmr.msrb.gmra.mxu2 %v1840_v4  ;;  %v1748_v59 = vmax.f32 %v8043_v52, %v8042_v43  ;;  %v1782_v46 = vmax.f32 %v1686_v60, %v1718_v11  ;;  %v8046_v9 = vmax.f32 %v6164_v8, 0.0  ;;  %v8048_v58 = vmax.f32 %v8047_v55, 0.0  ;;  %v8051_v43 = vld [vmem:[#allocation102_spill] sm:$0xff]  ;;  %v8076_v8 = vld [vmem:[#allocation88_spill] sm:$0xff] }
 0x555   :  { %2041 = vmatmul.bf16.vlgmr.msrb.gmra.mxu3 %v1841_v38  ;;  %v1751_v61 = vmax.f32 %v1623_v54, %v1655_v22  ;;  %v1781_v4 = vmax.f32 %v1685_v15, %v1717_v51  ;;  %v1783_v38 = vmax.f32 %v1687_v47, %v1719_v34  ;;  %v1728_v44 = vmax.f32 %v8049_v10, 0.0  ;;  %v8053_v37 = vld [vmem:[#allocation6_spill] sm:$0xff]  ;;  %v8057_v15 = vld [vmem:[#allocation16_spill] sm:$0xff]  ;;  %v8058_v51 = vld [vmem:[#allocation19_spill] sm:$0xff] }
 0x556   :  { %v1749_v21 = vmax.f32 %v8048_v58, %v8046_v9  ;;  %v1729_v36 = vmax.f32 %v8050_v23, 0.0  ;;  %v1732_v14 = vmax.f32 %v8051_v43, 0.0  ;;  %v1733_v52 = vmax.f32 %v8052_v42, 0.0  ;;  %v8056_v58 = vld [vmem:[#allocation75_spill] sm:$0xff]  ;;  %v8059_v34 = vld [vmem:[#allocation14_spill] sm:$0xff]  ;;  %v8060_v10 = vld [vmem:[#allocation89_spill] sm:$0xff] }
 0x557   :  { %v1734_v33 = vmax.f32 %v8053_v37, 0.0  ;;  %v1735_v60 = vmax.f32 %v8054_v2, 0.0  ;;  %v1812_v11 = vmax.f32 %v1748_v59, %v1780_v32  ;;  %v1814_v55 = vmax.f32 %v1750_v6, %v1782_v46  ;;  %v8064_v59 = vld [vmem:[#allocation67_spill] sm:$0xff]  ;;  %v8069_v23 = vld [vmem:[#allocation104_spill] sm:$0xff] }
 0x558   :  { %v1626_v54 = vmax.f32 %v8056_v58, 0.0  ;;  %v1658_v47 = vmax.f32 %v8057_v15, 0.0  ;;  %v1722_v22 = vmax.f32 %v8058_v51, 0.0  ;;  %v1738_v9 = vmax.f32 %v8060_v10, 0.0  ;;  %v8068_v15 = vld [vmem:[#allocation103_spill] sm:$0xff] }
 0x559   :  { %v1813_v43 = vmax.f32 %v1749_v21, %v1781_v4  ;;  %v1815_v42 = vmax.f32 %v1751_v61, %v1783_v38  ;;  %v8063_v30 = vmax.f32 %v6176_v27, 0.0  ;;  %v8065_v32 = vmax.f32 %v8064_v59, 0.0  ;;  %v8070_v21 = vld [vmem:[#allocation93_spill] sm:$0xff] }
 0x55a   :  { %v8066_v46 = vmax.f32 %v6232_v62, 0.0  ;;  %v1627_v61 = vmax.f32 %v8070_v21, 0.0  ;;  %v8071_v4 = vld [vmem:[#allocation5_spill] sm:$0xff]  ;;  %v1842_v37 = vpack.c.bf16 %v1814_v55, %v1812_v11  ;;  %v6424_v2 = vmax.f32 %v1626_v54, %v1658_v47  ;;  %v8079_v55 = vld [vmem:[#allocation100_spill] sm:$0xff]  ;;  %v8081_v47 = vld [vmem:[#allocation46_spill] sm:$0xff] }
 0x55b   :  { %v6414_v6 = vmax.f32 %v8065_v32, %v8063_v30  ;;  %v1659_v38 = vmax.f32 %v8071_v4, 0.0  ;;  %v8072_v27 = vmax.f32 %v6240_v26, 0.0  ;;  %v8073_v30 = vld [vmem:[#allocation50_spill] sm:$0xff]  ;;  %v1843_v62 = vpack.c.bf16 %v1815_v42, %v1813_v43  ;;  %v8078_v21 = vld [vmem:[#allocation65_spill] sm:$0xff] }
 0x55c   :  { %v6418_v58 = vmax.f32 %v8066_v46, %v1720_v16  ;;  %v1634_v32 = vmax.f32 %v8073_v30, 0.0  ;;  %v8074_v16 = vld [vmem:[#allocation10_spill] sm:$0xff]  ;;  %v8075_v51 = vmax.f32 %v6180_v50, 0.0  ;;  %v8077_v10 = vmax.f32 %v8076_v8, 0.0  ;;  %v8085_v30 = vld [vmem:[#allocation52_spill] sm:$0xff] }
 0x55d   :  { %v6428_v59 = vmax.f32 %v8072_v27, %v1722_v22  ;;  %v1723_v46 = vmax.f32 %v8074_v16, 0.0  ;;  %v1666_v4 = vmax.f32 %v8078_v21, 0.0  ;;  %v1730_v26 = vmax.f32 %v8079_v55, 0.0 }
 0x55e   :  { %8067 = vst [vmem:[#allocation20_spill] sm:$0xff] %v6418_v58  ;;  %v6436_v29 = vmax.f32 %v8077_v10, %v8075_v51  ;;  %v8080_v54 = vmax.f32 %v5862_v31, 0.0  ;;  %v8082_v22 = vmax.f32 %v8081_v47, 0.0  ;;  %v8083_v42 = vmax.f32 %v5962_v41, 0.0  ;;  %v8087_v31 = vld [vmem:[#allocation69_spill] sm:$0xff] }
 0x55f   :  { %v6448_v50 = vmax.f32 %v1627_v61, %v1659_v38  ;;  %v8084_v8 = vmax.f32 %v6236_v57, 0.0  ;;  %v1762_v10 = vmax.f32 %v1634_v32, %v1666_v4  ;;  %v1635_v16 = vmax.f32 %v8085_v30, 0.0  ;;  %v8088_v47 = vld [vmem:[#allocation101_spill] sm:$0xff]  ;;  %v8090_v61 = vld [vmem:[#allocation63_spill] sm:$0xff]  ;;  %v8092_v57 = vld [vmem:[#allocation48_spill] sm:$0xff] }
 0x560   :  { %v1760_v43 = vmax.f32 %v8082_v22, %v8080_v54  ;;  %v1792_v27 = vmax.f32 %v8083_v42, %v1728_v44  ;;  %v8086_v21 = vmax.f32 %v5970_v35, 0.0  ;;  %v1667_v58 = vmax.f32 %v8087_v31, 0.0  ;;  %v8095_v42 = vld [vmem:[#allocation71_spill] sm:$0xff]  ;;  %v8101_v31 = vld [vmem:[#allocation37_spill] sm:$0xff] }
 0x561   :  { %v6452_v51 = vmax.f32 %v8084_v8, %v1721_v24  ;;  %v1731_v54 = vmax.f32 %v8088_v47, 0.0  ;;  %v8089_v41 = vmax.f32 %v6244_v0, 0.0  ;;  %v8091_v38 = vmax.f32 %v8090_v61, 0.0  ;;  %v8103_v61 = vld [vmem:[#allocation105_spill] sm:$0xff] }
 0x562   :  { %v1794_v55 = vmax.f32 %v8086_v21, %v1730_v26  ;;  %v1824_v11 = vmax.f32 %v1760_v43, %v1792_v27  ;;  %v8093_v24 = vmax.f32 %v8092_v57, 0.0  ;;  %v8094_v32 = vmax.f32 %v5966_v40, 0.0  ;;  %v8097_v26 = vld [vmem:[#allocation35_spill] sm:$0xff] }
 0x563   :  { %v6461_v44 = vmax.f32 %v8089_v41, %v1723_v46  ;;  %v8096_v35 = vmax.f32 %v8095_v42, 0.0  ;;  %v8098_v43 = vmax.f32 %v8097_v26, 0.0  ;;  %v1763_v30 = vmax.f32 %v1635_v16, %v1667_v58  ;;  %v8110_v42 = vld [vmem:[#allocation56_spill] sm:$0xff] }
 0x564   :  { %v1761_v22 = vmax.f32 %v8093_v24, %v8091_v38  ;;  %v1793_v4 = vmax.f32 %v8094_v32, %v1729_v36  ;;  %v1826_v8 = vmax.f32 %v1762_v10, %v1794_v55  ;;  %v8099_v21 = vmax.f32 %v5974_v20, 0.0  ;;  %1997 = vmatmul.bf16.gmra.mxu2 %v1842_v37 }
 0x565   :  { %v1764_v27 = vmax.f32 %v8098_v43, %v8096_v35  ;;  %v8100_v46 = vmax.f32 %v8017_v3, 0.0  ;;  %v8102_v47 = vmax.f32 %v8101_v31, 0.0  ;;  %v1743_v38 = vmax.f32 %v8103_v61, 0.0  ;;  %2046 = vmatmul.bf16.gmra.mxu3 %v1843_v62  ;;  %v8107_v3 = vld [vmem:[#allocation54_spill] sm:$0xff]  ;;  %v8115_v35 = vld [vmem:[#allocation39_spill] sm:$0xff] }
 0x566   :  { %v1795_v0 = vmax.f32 %v8099_v21, %v1731_v54  ;;  %v1825_v40 = vmax.f32 %v1761_v22, %v1793_v4  ;;  %v8104_v36 = vmax.f32 %v5978_v7, 0.0  ;;  %v8105_v24 = vmax.f32 %v5986_v49, 0.0 }
 0x567   :  { %v1766_v41 = vmax.f32 %v8102_v47, %v8100_v46  ;;  %v6484_v58 = vpack.c.bf16 %v1826_v8, %v1824_v11  ;;  %v8106_v16 = vmax.f32 %v8016_v18, 0.0  ;;  %v8108_v55 = vmax.f32 %v8107_v3, 0.0  ;;  %v8117_v8 = vld [vmem:[#allocation76_spill] sm:$0xff] }
 0x568   :  { %v1796_v57 = vmax.f32 %v8104_v36, %v1732_v14  ;;  %v1798_v10 = vmax.f32 %v8105_v24, %v1734_v33  ;;  %v1827_v20 = vmax.f32 %v1763_v30, %v1795_v0  ;;  %v8109_v32 = vmax.f32 %v8018_v39, 0.0  ;;  %v8119_v30 = vld [vmem:[#allocation41_spill] sm:$0xff]  ;;  %v8128_v24 = vld [vmem:[#allocation78_spill] sm:$0xff] }
 0x569   :  { %v1765_v54 = vmax.f32 %v8108_v55, %v8106_v16  ;;  %v8111_v37 = vmax.f32 %v8110_v42, 0.0  ;;  %v8112_v7 = vmax.f32 %v5982_v63, 0.0  ;;  %v8113_v49 = vmax.f32 %v8027_v19, 0.0 }
 0x56a   :  { %v1828_v22 = vmax.f32 %v1764_v27, %v1796_v57  ;;  %v1830_v4 = vmax.f32 %v1766_v41, %v1798_v10  ;;  %v6498_v11 = vpack.c.bf16 %v1827_v20, %v1825_v40  ;;  %v8114_v18 = vmax.f32 %v8019_v12, 0.0  ;;  %v8124_v41 = vld [vmem:[#allocation72_spill] sm:$0xff]  ;;  %v8126_v40 = vld [vmem:[#allocation58_spill] sm:$0xff]  ;;  %v8130_v20 = vld [vmem:[#allocation43_spill] sm:$0xff] }
 0x56b   :  { %v1767_v62 = vmax.f32 %v8111_v37, %v8109_v32  ;;  %v1797_v14 = vmax.f32 %v8112_v7, %v1733_v52  ;;  %v1799_v33 = vmax.f32 %v8113_v49, %v1735_v60  ;;  %v8116_v26 = vmax.f32 %v8115_v35, 0.0  ;;  %v8136_v37 = vld [vmem:[#allocation77_spill] sm:$0xff]  ;;  %v8140_v49 = vld [vmem:[#allocation79_spill] sm:$0xff] }
 0x56c   :  { %v8118_v39 = vmax.f32 %v8117_v8, 0.0  ;;  %v8120_v21 = vmax.f32 %v8119_v30, 0.0  ;;  %v8121_v27 = vmax.f32 %v8055_v28, 0.0  ;;  %v8122_v63 = vmax.f32 %v8032_v48, 0.0 }
 0x56d   :  { %v1768_v43 = vmax.f32 %v8116_v26, %v8114_v18  ;;  %v6512_v46 = vpack.c.bf16 %v1830_v4, %v1828_v22  ;;  %v1829_v19 = vmax.f32 %v1765_v54, %v1797_v14  ;;  %v1831_v60 = vmax.f32 %v1767_v62, %v1799_v33  ;;  %v8138_v22 = vld [vmem:[#allocation45_spill] sm:$0xff] }
 0x56e   :  { %v1770_v0 = vmax.f32 %v8120_v21, %v8118_v39  ;;  %v1800_v52 = vmax.f32 %v8122_v63, %v8121_v27  ;;  %v8123_v31 = vmax.f32 %v8036_v53, 0.0  ;;  %v8125_v61 = vmax.f32 %v8124_v41, 0.0  ;;  %v8148_v21 = vld [vmem:[#allocation80_spill] sm:$0xff]  ;;  %v8150_v27 = vld [vmem:[#allocation47_spill] sm:$0xff] }
 0x56f   :  { %v8127_v36 = vmax.f32 %v8126_v40, 0.0  ;;  %v8129_v10 = vmax.f32 %v8128_v24, 0.0  ;;  %v8131_v28 = vmax.f32 %v8130_v20, 0.0  ;;  %v8132_v48 = vmax.f32 %v8059_v34, 0.0  ;;  %v8142_v34 = vld [vmem:[#allocation49_spill] sm:$0xff] }
 0x570   :  { %v1802_v12 = vmax.f32 %v8123_v31, %v1738_v9  ;;  %v1832_v47 = vmax.f32 %v1768_v43, %v1800_v52  ;;  %v8133_v3 = vmax.f32 %v8033_v25, 0.0  ;;  %v6528_v54 = vpack.c.bf16 %v1831_v60, %v1829_v19  ;;  %v8152_v19 = vld [vmem:[#allocation82_spill] sm:$0xff]  ;;  %v8154_v31 = vld [vmem:[#allocation51_spill] sm:$0xff] }
 0x571   :  { %v1769_v57 = vmax.f32 %v8127_v36, %v8125_v61  ;;  %v1771_v16 = vmax.f32 %v8131_v28, %v8129_v10  ;;  %v8134_v9 = vmax.f32 %v8061_v56, 0.0  ;;  %v8135_v32 = vmax.f32 %v8037_v45, 0.0  ;;  %v8160_v28 = vld [vmem:[#allocation23_spill] sm:$0xff] }
 0x572   :  { %v1801_v55 = vmax.f32 %v8133_v3, %v8132_v48  ;;  %v1834_v53 = vmax.f32 %v1770_v0, %v1802_v12  ;;  %v8137_v62 = vmax.f32 %v8136_v37, 0.0  ;;  %v8139_v4 = vmax.f32 %v8138_v22, 0.0 }
 0x573   :  { %v1803_v42 = vmax.f32 %v8135_v32, %v8134_v9  ;;  %v8141_v33 = vmax.f32 %v8140_v49, 0.0  ;;  %v8143_v18 = vmax.f32 %v8142_v34, 0.0  ;;  %v8144_v35 = vmax.f32 %v8062_v1, 0.0  ;;  %v8164_v9 = vld [vmem:[#allocation92_spill] sm:$0xff]  ;;  %v8171_v49 = vld [vmem:[#allocation59_spill] sm:$0xff] }
 0x574   :  { %v1772_v7 = vmax.f32 %v8139_v4, %v8137_v62  ;;  %v1833_v14 = vmax.f32 %v1769_v57, %v1801_v55  ;;  %v8145_v26 = vmax.f32 %v8038_v17, 0.0  ;;  %v8146_v56 = vmax.f32 %v8069_v23, 0.0  ;;  %v8162_v55 = vld [vmem:[#allocation38_spill] sm:$0xff]  ;;  %v8169_v62 = vld [vmem:[#allocation57_spill] sm:$0xff]  ;;  %v8172_v34 = vld [vmem:[#allocation20_spill] sm:$0xff] }
 0x575   :  { %v1774_v25 = vmax.f32 %v8143_v18, %v8141_v33  ;;  %v8147_v45 = vmax.f32 %v8040_v13, 0.0  ;;  %v6550_v39 = vpack.c.bf16 %v1834_v53, %v1832_v47  ;;  %v1835_v30 = vmax.f32 %v1771_v16, %v1803_v42  ;;  %v8158_v47 = vld [vmem:[#allocation68_spill] sm:$0xff]  ;;  %v8161_v16 = vld [vmem:[#allocation91_spill] sm:$0xff]  ;;  %v8168_v42 = vld [vmem:[#allocation53_spill] sm:$0xff] }
 0x576   :  { %v1804_v43 = vmax.f32 %v8145_v26, %v8144_v35  ;;  %v8149_v0 = vmax.f32 %v8148_v21, 0.0  ;;  %v8151_v63 = vmax.f32 %v8150_v27, 0.0  ;;  %v8153_v60 = vmax.f32 %v8152_v19, 0.0  ;;  %v8174_v26 = vld [vmem:[#allocation94_spill] sm:$0xff]  ;;  %v8177_v21 = vld [vmem:[#allocation7_spill] sm:$0xff] }
 0x577   :  { %v1806_v8 = vmax.f32 %v8147_v45, %v8146_v56  ;;  %v8155_v1 = vmax.f32 %v8154_v31, 0.0  ;;  %v8156_v23 = vmax.f32 %v8068_v15, 0.0  ;;  %v8157_v13 = vmax.f32 %v8039_v5, 0.0  ;;  %v8175_v56 = vld [vmem:[#allocation95_spill] sm:$0xff]  ;;  %v8178_v31 = vld [vmem:[#allocation96_spill] sm:$0xff] }
 0x578   :  { %v1773_v52 = vmax.f32 %v8151_v63, %v8149_v0  ;;  %v1836_v17 = vmax.f32 %v1772_v7, %v1804_v43  ;;  %v8159_v40 = vmax.f32 %v8158_v47, 0.0  ;;  %v1818_v57 = vmax.f32 %v6424_v2, %v6428_v59  ;;  %v8165_v2 = vld [vmem:[#allocation42_spill] sm:$0xff]  ;;  %v8170_v7 = vld [vmem:[#allocation55_spill] sm:$0xff] }
 0x579   :  { %v1775_v12 = vmax.f32 %v8155_v1, %v8153_v60  ;;  %v1838_v41 = vmax.f32 %v1774_v25, %v1806_v8  ;;  %v1805_v61 = vmax.f32 %v8157_v13, %v8156_v23  ;;  %v1817_v24 = vmax.f32 %v6436_v29, %v6452_v51  ;;  %v8166_v29 = vld [vmem:[#allocation44_spill] sm:$0xff]  ;;  %v8176_v8 = vld [vmem:[#allocation17_spill] sm:$0xff] }
 0x57a   :  { %v1807_v36 = vmax.f32 %v8159_v40, %v1743_v38  ;;  %v1819_v10 = vmax.f32 %v6448_v50, %v6461_v44  ;;  %v1853_v20 = vpack.c.bf16 %v1835_v30, %v1833_v14  ;;  %v1534_v48 = vadd.f32 %v8161_v16, %v8160_v28  ;;  %v8163_v38 = vld [vmem:[#allocation40_spill] sm:$0xff] }
 0x57b   :  { %v1854_v15 = vpack.c.bf16 %v1838_v41, %v1836_v17  ;;  %v1837_v3 = vmax.f32 %v1773_v52, %v1805_v61  ;;  %v1564_v53 = vadd.f32 %v8161_v16, %v8162_v55  ;;  %v1565_v32 = vadd.f32 %v8164_v9, %v8163_v38  ;;  %v8167_v50 = vld [vmem:[#allocation24_spill] sm:$0xff]  ;;  %v8179_v41 = vld [vmem:[#allocation97_spill] sm:$0xff] }
 0x57c   :  { %v1839_v5 = vmax.f32 %v1775_v12, %v1807_v36  ;;  %v1566_v59 = vadd.f32 %v8161_v16, %v8165_v2  ;;  %v1567_v51 = vadd.f32 %v8164_v9, %v8166_v29  ;;  %v1535_v44 = vadd.f32 %v8164_v9, %v8167_v50 }
 0x57d   :  { %v1596_v37 = vadd.f32 %v8161_v16, %v8168_v42  ;;  %v1598_v22 = vadd.f32 %v8161_v16, %v8169_v62  ;;  %v1597_v14 = vadd.f32 %v8164_v9, %v8170_v7  ;;  %v1599_v33 = vadd.f32 %v8164_v9, %v8171_v49 }
 0x57e   :  { %v1855_v4 = vpack.c.bf16 %v1839_v5, %v1837_v3  ;;  %v8173_v18 = vmax.f32 %v6414_v6, %v8172_v34  ;;  %v1845_v35 = vpack.c.bf16 %v1819_v10, %v1817_v24  ;;  %v1628_v43 = vmax.f32 %v8174_v26, 0.0 }
 0x57f   :  { %v1629_v45 = vmax.f32 %v8175_v56, 0.0  ;;  %v1660_v30 = vmax.f32 %v8176_v8, 0.0  ;;  %v1661_v0 = vmax.f32 %v8177_v21, 0.0  ;;  %v1692_v27 = vmax.f32 %v1564_v53, 0.0  ;;  %v3716_v56 = vld [vmem:[%s7233_s7 + $0x74] sm:$0xf0] }
 0x580   :  { %v1844_v25 = vpack.c.bf16 %v1818_v57, %v8173_v18  ;;  %v1693_v63 = vmax.f32 %v1565_v32, 0.0  ;;  %v1694_v52 = vmax.f32 %v1566_v59, 0.0  ;;  %v1695_v19 = vmax.f32 %v1567_v51, 0.0  ;;  %2051 = vmatmul.bf16.gmra.mxu3 %v1845_v35 }
 0x581   :  { %v1724_v60 = vmax.f32 %v1596_v37, 0.0  ;;  %v1630_v1 = vmax.f32 %v8178_v31, 0.0  ;;  %v1662_v6 = vmax.f32 %v1534_v48, 0.0  ;;  %v1726_v12 = vmax.f32 %v1598_v22, 0.0 }
 0x582   :  { %2002 = vmatmul.bf16.gmra.mxu2 %v1844_v25  ;;  %v1725_v17 = vmax.f32 %v1597_v14, 0.0  ;;  %v1631_v23 = vmax.f32 %v8179_v41, 0.0  ;;  %v1663_v13 = vmax.f32 %v1535_v44, 0.0  ;;  %v1727_v61 = vmax.f32 %v1599_v33, 0.0 }
 0x583   :  { %v1756_v47 = vmax.f32 %v1628_v43, %v1660_v30  ;;  %v1758_v40 = vmax.f32 %v1630_v1, %v1662_v6  ;;  %v1788_v36 = vmax.f32 %v1692_v27, %v1724_v60  ;;  %v1790_v57 = vmax.f32 %v1694_v52, %v1726_v12  ;;  %v3383_v43 = vld [vmem:[%s7233_s7 + $0x70] sm:$0xf]  ;;  %v3732_v30 = vld [vmem:[%s7233_s7 + $0xf4] sm:$0xf0] }
 0x584   :  { %v1757_v24 = vmax.f32 %v1629_v45, %v1661_v0  ;;  %v1759_v10 = vmax.f32 %v1631_v23, %v1663_v13  ;;  %v1789_v28 = vmax.f32 %v1693_v63, %v1725_v17  ;;  %v1791_v16 = vmax.f32 %v1695_v19, %v1727_v61  ;;  %v3447_v45 = vld [vmem:[%s7233_s7 + $0xf0] sm:$0xf] }
 0x585   :  { %v1820_v3 = vmax.f32 %v1756_v47, %v1788_v36  ;;  %v1822_v5 = vmax.f32 %v1758_v40, %v1790_v57  ;;  %v3384_v8 = vor.u32 %v3716_v56, %v3383_v43  ;;  %v3448_v21 = vor.u32 %v3732_v30, %v3447_v45 }
 0x586   :  { %v1821_v55 = vmax.f32 %v1757_v24, %v1789_v28  ;;  %v1823_v53 = vmax.f32 %v1759_v10, %v1791_v16  ;;  %v3840_v57 = vmov 128.0  }
 0x587   :  { %v1846_v38 = vpack.c.bf16 %v1822_v5, %v1820_v3  ;;  %2633 = vmatpush.bf16.msra.mxu2 %v3384_v8  ;;  %2646 = vmatpush.bf16.msra.mxu3 %v3448_v21  ;;  %3800 = vrcp.f32 %v3840_v57 }
 0x588   :  { %v1847_v48 = vpack.c.bf16 %v1823_v53, %v1821_v55 }
 0x58d   :  { %v3801_v55 = vpop.eup %3800 }
 0x58e   :  { %vm2110_vm6 = vweird.f32 %v3801_v55 }
 0x590   :  { %2056 = vmatmul.bf16.gmra.mxu3 %v1847_v48 }
 0x592   :  { %2007 = vmatmul.bf16.gmra.mxu2 %v1846_v38 }
 0x5a0   :  { %2061 = vmatmul.bf16.gmra.mxu3 %v6498_v11 }
 0x5a2   :  { %2012 = vmatmul.bf16.gmra.mxu2 %v6484_v58 }
 0x5b0   :  { %2066 = vmatmul.bf16.gmra.mxu3 %v6528_v54 }
 0x5b2   :  { %2017 = vmatmul.bf16.gmra.mxu2 %v6512_v46 }
 0x5c0   :  { %2071 = vmatmul.bf16.gmra.mxu3 %v1853_v20 }
 0x5c2   :  { %2022 = vmatmul.bf16.gmra.mxu2 %v6550_v39 }
 0x5d0   :  { %2076 = vmatmul.bf16.gmra.mxu3 %v1855_v4 }
 0x5d2   :  { %2027 = vmatmul.bf16.gmra.mxu2 %v1854_v15 }
 0x5d7   :  { %v1993_v9 = vpop.f32.mrf.mxu2 }
 0x5d8   :  { %v2042_v32 = vpop.f32.mrf.mxu3 }
 0x5d9   :  { %v6606_v2 = vadd.f32 %v2042_v32, %v1993_v9  ;;  %v2106_v32 = vmul.f32 128.0, %v3801_v55 }
 0x5df   :  { %v1995_v59 = vpop.f32.mrf.mxu2 }
 0x5e0   :  { %v2044_v29 = vpop.f32.mrf.mxu3 }
 0x5e1   :  { %v6608_v51 = vadd.f32 %v2044_v29, %v1995_v59 }
 0x5e3   :  { %v2084_v11 = vadd.f32 %v6608_v51, %v6606_v2 }
 0x5e7   :  { %v1998_v58 = vpop.f32.mrf.mxu2 }
 0x5e8   :  { %v2047_v50 = vpop.f32.mrf.mxu3 }
 0x5e9   :  { %v6612_v46 = vadd.f32 %v2047_v50, %v1998_v58 }
 0x5eb   :  { %v2085_v54 = vadd.f32 %v2084_v11, %v6612_v46 }
 0x5ef   :  { %v2000_v39 = vpop.f32.mrf.mxu2 }
 0x5f0   :  { %v2049_v20 = vpop.f32.mrf.mxu3 }
 0x5f1   :  { %v6615_v15 = vadd.f32 %v2049_v20, %v2000_v39 }
 0x5f3   :  { %v2086_v44 = vadd.f32 %v2085_v54, %v6615_v15  ;;  %v2107_v54 = vsub.f32 1.0, %v2106_v32 }
 0x603   :  { %v2052_v37 = vpop.f32.mrf.mxu3 }
 0x605   :  { %v2003_v42 = vpop.f32.mrf.mxu2 }
 0x606   :  { %v6618_v62 = vadd.f32 %v2052_v37, %v2003_v42 }
 0x608   :  { %v2087_v22 = vadd.f32 %v2086_v44, %v6618_v62  ;;  %v2108_v44 = vmul.f32 %v3801_v55, %v2107_v54 }
 0x60b   :  { %v2054_v7 = vpop.f32.mrf.mxu3 }
 0x60d   :  { %v2005_v4 = vpop.f32.mrf.mxu2 }
 0x60e   :  { %v2055_v31 = vadd.f32 %v2054_v7, %v2005_v4 }
 0x610   :  { %v2088_v6 = vadd.f32 %v2087_v22, %v2055_v31  ;;  %v2109_v22 = vadd.f32 %v3801_v55, %v2108_v44 }
 0x613   :  { %v2057_v49 = vpop.f32.mrf.mxu3 }
 0x615   :  { %v2008_v14 = vpop.f32.mrf.mxu2 }
 0x616   :  { %v2058_v1 = vadd.f32 %v2057_v49, %v2008_v14  ;;  %v6633_v14 = vsel %vm2110_vm6, %v3801_v55, %v2109_v22  ;;  %v3359_v22 = vld [vmem:[%s7233_s7 + $0x40] sm:$0xf] }
 0x618   :  { %v2089_v23 = vadd.f32 %v2088_v6, %v2058_v1 }
 0x61b   :  { %v2059_v34 = vpop.f32.mrf.mxu3 }
 0x61d   :  { %v2010_v33 = vpop.f32.mrf.mxu2 }
 0x61e   :  { %v2060_v12 = vadd.f32 %v2059_v34, %v2010_v33 }
 0x620   :  { %v2090_v61 = vadd.f32 %v2089_v23, %v2060_v12 }
 0x623   :  { %v2062_v25 = vpop.f32.mrf.mxu3 }
 0x625   :  { %v2013_v18 = vpop.f32.mrf.mxu2 }
 0x626   :  { %v2063_v13 = vadd.f32 %v2062_v25, %v2013_v18 }
 0x628   :  { %v2091_v40 = vadd.f32 %v2090_v61, %v2063_v13 }
 0x62b   :  { %v2064_v26 = vpop.f32.mrf.mxu3 }
 0x62d   :  { %v2015_v35 = vpop.f32.mrf.mxu2 }
 0x62e   :  { %v2065_v47 = vadd.f32 %v2064_v26, %v2015_v35 }
 0x630   :  { %v2092_v24 = vadd.f32 %v2091_v40, %v2065_v47 }
 0x633   :  { %v2067_v27 = vpop.f32.mrf.mxu3 }
 0x635   :  { %v2018_v0 = vpop.f32.mrf.mxu2 }
 0x636   :  { %v2068_v36 = vadd.f32 %v2067_v27, %v2018_v0 }
 0x638   :  { %v2093_v3 = vadd.f32 %v2092_v24, %v2068_v36 }
 0x63b   :  { %v2069_v52 = vpop.f32.mrf.mxu3 }
 0x63d   :  { %v2020_v63 = vpop.f32.mrf.mxu2 }
 0x63e   :  { %v2070_v10 = vadd.f32 %v2069_v52, %v2020_v63 }
 0x640   :  { %v2094_v53 = vadd.f32 %v2093_v3, %v2070_v10 }
 0x643   :  { %v2072_v60 = vpop.f32.mrf.mxu3 }
 0x645   :  { %v2023_v19 = vpop.f32.mrf.mxu2 }
 0x646   :  { %v2073_v5 = vadd.f32 %v2072_v60, %v2023_v19 }
 0x648   :  { %v2095_v48 = vadd.f32 %v2094_v53, %v2073_v5 }
 0x64b   :  { %v2074_v41 = vpop.f32.mrf.mxu3 }
 0x64d   :  { %v2025_v17 = vpop.f32.mrf.mxu2 }
 0x64e   :  { %v2075_v38 = vadd.f32 %v2074_v41, %v2025_v17 }
 0x650   :  { %v2096_v59 = vadd.f32 %v2095_v48, %v2075_v38 }
 0x653   :  { %v2077_v16 = vpop.f32.mrf.mxu3 }
 0x655   :  { %v2028_v28 = vpop.f32.mrf.mxu2 }
 0x656   :  { %v2078_v9 = vadd.f32 %v2077_v16, %v2028_v28  ;;  %v3714_v28 = vld [vmem:[%s7233_s7 + $0x64] sm:$0xf0]  ;;  %v3439_v16 = vld [vmem:[%s7233_s7 + $0xe0] sm:$0xf] }
 0x658   :  { %v2097_v50 = vadd.f32 %v2096_v59, %v2078_v9 }
 0x65b   :  { %v2079_v58 = vpop.f32.mrf.mxu3 }
 0x65d   :  { %v2030_v29 = vpop.f32.mrf.mxu2 }
 0x65e   :  { %v2080_v11 = vadd.f32 %v2079_v58, %v2030_v29  ;;  %v3367_v58 = vld [vmem:[%s7233_s7 + $0x50] sm:$0xf] }
 0x660   :  { %v2098_v39 = vadd.f32 %v2097_v50, %v2080_v11  ;;  %v3431_v50 = vld [vmem:[%s7233_s7 + $0xd0] sm:$0xf] }
 0x662   :  { %v2099_v20 = vrot.slane %v2098_v39, 4 }
 0x664   :  { %v2100_v42 = vadd.f32 %v2099_v20, %v2098_v39 }
 0x666   :  { %v2101_v37 = vrot.slane %v2100_v42, 2 }
 0x668   :  { %v2102_v4 = vadd.f32 %v2101_v37, %v2100_v42 }
 0x66a   :  { %v2103_v7 = vrot.slane %v2102_v4, 1 }
 0x66c   :  { %v2104_v49 = vadd.f32 %v2103_v7, %v2102_v4  ;;  %v3710_v4 = vld [vmem:[%s7233_s7 + $0x44] sm:$0xf0]  ;;  %v3423_v7 = vld [vmem:[%s7233_s7 + $0xc0] sm:$0xf] }
 0x66e   :  { %v2112_v33 = vmul.f32 %v6633_v14, %v2104_v49  ;;  %v3360_v49 = vor.u32 %v3710_v4, %v3359_v22  ;;  %v3762_v4 = vld [vmem:[%s7233_s7 + $0x1e4] sm:$0xf0] }
 0x670   :  { %v6637_v34 = vsub.f32 %v6606_v2, %v2112_v33  ;;  %v6640_v18 = vsub.f32 %v6608_v51, %v2112_v33  ;;  %v6643_v25 = vsub.f32 %v6612_v46, %v2112_v33  ;;  %v6646_v35 = vsub.f32 %v6615_v15, %v2112_v33 }
 0x671   :  { %v6649_v26 = vsub.f32 %v6618_v62, %v2112_v33  ;;  %v6657_v45 = vsub.f32 %v2055_v31, %v2112_v33  ;;  %v6661_v8 = vsub.f32 %v2058_v1, %v2112_v33  ;;  %v6665_v21 = vsub.f32 %v2060_v12, %v2112_v33 }
 0x672   :  { %v2129_v43 = vmul.f32 %v6637_v34, %v6637_v34  ;;  %v2130_v56 = vmul.f32 %v6640_v18, %v6640_v18  ;;  %v2131_v2 = vmul.f32 %v6643_v25, %v6643_v25  ;;  %v2132_v46 = vmul.f32 %v6646_v35, %v6646_v35 }
 0x673   :  { %v2133_v62 = vmul.f32 %v6649_v26, %v6649_v26  ;;  %v2134_v0 = vmul.f32 %v6657_v45, %v6657_v45  ;;  %v6669_v63 = vsub.f32 %v2063_v13, %v2112_v33  ;;  %v2135_v52 = vmul.f32 %v6661_v8, %v6661_v8 }
 0x674   :  { %v2145_v51 = vadd.f32 %v2130_v56, %v2129_v43  ;;  %v6673_v60 = vsub.f32 %v2065_v47, %v2112_v33  ;;  %v2136_v31 = vmul.f32 %v6665_v21, %v6665_v21  ;;  %v6677_v6 = vsub.f32 %v2068_v36, %v2112_v33 }
 0x675   :  { %v2137_v12 = vmul.f32 %v6669_v63, %v6669_v63  ;;  %v6681_v41 = vsub.f32 %v2070_v10, %v2112_v33  ;;  %v6685_v61 = vsub.f32 %v2073_v5, %v2112_v33  ;;  %v6689_v57 = vsub.f32 %v2075_v38, %v2112_v33  ;;  %v3375_v10 = vld [vmem:[%s7233_s7 + $0x60] sm:$0xf]  ;;  %v3730_v5 = vld [vmem:[%s7233_s7 + $0xe4] sm:$0xf0] }
 0x676   :  { %v2146_v15 = vadd.f32 %v2145_v51, %v2131_v2  ;;  %v2138_v23 = vmul.f32 %v6673_v60, %v6673_v60  ;;  %v2139_v47 = vmul.f32 %v6677_v6, %v6677_v6  ;;  %v3376_v3 = vor.u32 %v3714_v28, %v3375_v10  ;;  %v3351_v51 = vld [vmem:[%s7233_s7 + $0x30] sm:$0xf]  ;;  %v3720_v28 = vld [vmem:[%s7233_s7 + $0x94] sm:$0xf0] }
 0x677   :  { %v2140_v36 = vmul.f32 %v6681_v41, %v6681_v41  ;;  %v6705_v55 = vsub.f32 %v2078_v9, %v2112_v33  ;;  %v2141_v53 = vmul.f32 %v6685_v61, %v6685_v61  ;;  %v3440_v48 = vor.u32 %v3730_v5, %v3439_v16  ;;  %v3712_v9 = vld [vmem:[%s7233_s7 + $0x54] sm:$0xf0]  ;;  %v3399_v10 = vld [vmem:[%s7233_s7 + $0x90] sm:$0xf] }
 0x678   :  { %v2147_v30 = vadd.f32 %v2146_v15, %v2132_v46  ;;  %2634 = vmatpush.bf16.msra.mxu2 %v3376_v3  ;;  %v6709_v32 = vsub.f32 %v2080_v11, %v2112_v33  ;;  %v2142_v59 = vmul.f32 %v6689_v57, %v6689_v57  ;;  %v3368_v54 = vor.u32 %v3712_v9, %v3367_v58  ;;  %v3728_v11 = vld [vmem:[%s7233_s7 + $0xd4] sm:$0xf0]  ;;  %v3726_v33 = vld [vmem:[%s7233_s7 + $0xc4] sm:$0xf0] }
 0x679   :  { %2647 = vmatpush.bf16.msra.mxu3 %v3440_v48  ;;  %v2143_v39 = vmul.f32 %v6705_v55, %v6705_v55  ;;  %v3432_v44 = vor.u32 %v3728_v11, %v3431_v50  ;;  %v3424_v56 = vor.u32 %v3726_v33, %v3423_v7  ;;  %v3708_v46 = vld [vmem:[%s7233_s7 + $0x34] sm:$0xf0]  ;;  %v3400_v3 = vor.u32 %v3720_v28, %v3399_v10  ;;  %v3391_v48 = vld [vmem:[%s7233_s7 + $0x80] sm:$0xf]  ;;  %v3575_v11 = vld [vmem:[%s7233_s7 + $0x1f0] sm:$0xf] }
 0x67a   :  { %v2148_v27 = vadd.f32 %v2147_v30, %v2133_v62  ;;  %v2144_v42 = vmul.f32 %v6709_v32, %v6709_v32  ;;  %v3352_v15 = vor.u32 %v3708_v46, %v3351_v51  ;;  %v3415_v62 = vld [vmem:[%s7233_s7 + $0xb0] sm:$0xf]  ;;  %v3724_v30 = vld [vmem:[%s7233_s7 + $0xb4] sm:$0xf0]  ;;  %v3487_v46 = vld [vmem:[%s7233_s7 + $0x140] sm:$0xf] }
 0x67b   :  { %v3748_v58 = vld [vmem:[%s7233_s7 + $0x174] sm:$0xf0]  ;;  %v3495_v7 = vld [vmem:[%s7233_s7 + $0x150] sm:$0xf]  ;;  %v3738_v10 = vld [vmem:[%s7233_s7 + $0x124] sm:$0xf0] }
 0x67c   :  { %v2149_v19 = vadd.f32 %v2148_v27, %v2134_v0  ;;  %2635 = vmatpush.bf16.msra.mxu2 %v3368_v54  ;;  %v3416_v27 = vor.u32 %v3724_v30, %v3415_v62  ;;  %v3551_v30 = vld [vmem:[%s7233_s7 + $0x1c0] sm:$0xf] }
 0x67d   :  { %2648 = vmatpush.bf16.msra.mxu3 %v3432_v44  ;;  %v3503_v44 = vld [vmem:[%s7233_s7 + $0x160] sm:$0xf] }
 0x67e   :  { %v2150_v1 = vadd.f32 %v2149_v19, %v2135_v52  ;;  %v3343_v19 = vld [vmem:[%s7233_s7 + $0x20] sm:$0xf] }
 0x67f   :  { %v3535_v28 = vld [vmem:[%s7233_s7 + $0x1a0] sm:$0xf] }
 0x680   :  { %v2151_v17 = vadd.f32 %v2150_v1, %v2136_v31  ;;  %2636 = vmatpush.bf16.msra.mxu2 %v3360_v49  ;;  %v3706_v31 = vld [vmem:[%s7233_s7 + $0x24] sm:$0xf0]  ;;  %v3744_v49 = vld [vmem:[%s7233_s7 + $0x154] sm:$0xf0] }
 0x681   :  { %2649 = vmatpush.bf16.msra.mxu3 %v3424_v56  ;;  %v3344_v1 = vor.u32 %v3706_v31, %v3343_v19  ;;  %v3760_v56 = vld [vmem:[%s7233_s7 + $0x1d4] sm:$0xf0] }
 0x682   :  { %v2152_v13 = vadd.f32 %v2151_v17, %v2137_v12  ;;  %v3407_v12 = vld [vmem:[%s7233_s7 + $0xa0] sm:$0xf]  ;;  %v3722_v17 = vld [vmem:[%s7233_s7 + $0xa4] sm:$0xf0] }
 0x684   :  { %v2153_v40 = vadd.f32 %v2152_v13, %v2138_v23  ;;  %2637 = vmatpush.bf16.msra.mxu2 %v3352_v15  ;;  %v3408_v13 = vor.u32 %v3722_v17, %v3407_v12  ;;  %v3742_v15 = vld [vmem:[%s7233_s7 + $0x144] sm:$0xf0]  ;;  %v3740_v12 = vld [vmem:[%s7233_s7 + $0x134] sm:$0xf0]  ;;  %v3543_v17 = vld [vmem:[%s7233_s7 + $0x1b0] sm:$0xf] }
 0x685   :  { %2650 = vmatpush.bf16.msra.mxu3 %v3416_v27 }
 0x686   :  { %v2154_v24 = vadd.f32 %v2153_v40, %v2139_v47  ;;  %v3335_v40 = vld [vmem:[%s7233_s7 + $0x10] sm:$0xf] }
 0x688   :  { %v2155_v38 = vadd.f32 %v2154_v24, %v2140_v36  ;;  %2638 = vmatpush.bf16.msra.mxu2 %v3344_v1  ;;  %v3704_v36 = vld [vmem:[%s7233_s7 + $0x14] sm:$0xf0]  ;;  %v3479_v1 = vld [vmem:[%s7233_s7 + $0x130] sm:$0xf] }
 0x689   :  { %2651 = vmatpush.bf16.msra.mxu3 %v3408_v13  ;;  %v3336_v24 = vor.u32 %v3704_v36, %v3335_v40 }
 0x68a   :  { %v2156_v29 = vadd.f32 %v2155_v38, %v2141_v53  ;;  %v3327_v53 = vld [vmem:[%s7233_s7] sm:$0xf]  ;;  %v3702_v38 = vld [vmem:[%s7233_s7 + $0x4] sm:$0xf0] }
 0x68c   :  { %v2157_v20 = vadd.f32 %v2156_v29, %v2142_v59  ;;  %2639 = vmatpush.bf16.msra.mxu2 %v3336_v24  ;;  %v3328_v59 = vor.u32 %v3702_v38, %v3327_v53  ;;  %v3718_v29 = vld [vmem:[%s7233_s7 + $0x84] sm:$0xf0]  ;;  %v3471_v24 = vld [vmem:[%s7233_s7 + $0x120] sm:$0xf]  ;;  %v3463_v38 = vld [vmem:[%s7233_s7 + $0x110] sm:$0xf] }
 0x68d   :  { %2652 = vmatpush.bf16.msra.mxu3 %v3400_v3  ;;  %v3392_v50 = vor.u32 %v3718_v29, %v3391_v48  ;;  %v2082_v3 = vld [vmem:[%s7231_s5] sm:$0x1]  ;;  %v3472_v53 = vor.u32 %v3738_v10, %v3471_v24  ;;  %v3736_v48 = vld [vmem:[%s7233_s7 + $0x114] sm:$0xf0] }
 0x68e   :  { %v2158_v37 = vadd.f32 %v2157_v20, %v2143_v39  ;;  %v3764_v39 = vld [vmem:[%s7233_s7 + $0x1f4] sm:$0xf0] }
 0x68f   :  { %v3576_v20 = vor.u32 %v3764_v39, %v3575_v11  ;;  %v3519_v11 = vld [vmem:[%s7233_s7 + $0x180] sm:$0xf]  ;;  %v3750_v39 = vld [vmem:[%s7233_s7 + $0x184] sm:$0xf0] }
 0x690   :  { %v2159_v43 = vadd.f32 %v2158_v37, %v2144_v42  ;;  %2640 = vmatpush.bf16.msra.mxu2 %v3328_v59  ;;  %v3746_v42 = vld [vmem:[%s7233_s7 + $0x164] sm:$0xf0]  ;;  %v3567_v37 = vld [vmem:[%s7233_s7 + $0x1e0] sm:$0xf] }
 0x691   :  { %2653 = vmatpush.bf16.msra.mxu3 %v3392_v50  ;;  %v3504_v22 = vor.u32 %v3746_v42, %v3503_v44  ;;  %v3568_v33 = vor.u32 %v3762_v4, %v3567_v37  ;;  %v6892_v44 = vld [vmem:[%s7232_s6] ss:$0 sm:$0xff]  ;;  %v3464_v42 = vor.u32 %v3736_v48, %v3463_v38  ;;  %v3520_v4 = vor.u32 %v3750_v39, %v3519_v11 }
 0x692   :  { %v2160_v2 = vrot.slane %v2159_v43, 4 }
 0x694   :  { %v2161_v0 = vadd.f32 %v2160_v2, %v2159_v43  ;;  %v3559_v43 = vld [vmem:[%s7233_s7 + $0x1d0] sm:$0xf]  ;;  %v3496_v2 = vor.u32 %v3744_v49, %v3495_v7 }
 0x695   :  { %2672 = vmatpush.bf16.msrb.mxu3 %v3576_v20  ;;  %v3560_v51 = vor.u32 %v3760_v56, %v3559_v43 }
 0x696   :  { %v2162_v52 = vrot.slane %v2161_v0, 2 }
 0x698   :  { %v2163_v23 = vadd.f32 %v2162_v52, %v2161_v0  ;;  %v3758_v0 = vld [vmem:[%s7233_s7 + $0x1c4] sm:$0xf0]  ;;  %v3488_v52 = vor.u32 %v3742_v15, %v3487_v46 }
 0x699   :  { %2673 = vmatpush.bf16.msrb.mxu3 %v3568_v33  ;;  %v3552_v31 = vor.u32 %v3758_v0, %v3551_v30 }
 0x69a   :  { %v2164_v47 = vrot.slane %v2163_v23, 1 }
 0x69c   :  { %v2165_v16 = vadd.f32 %v2164_v47, %v2163_v23  ;;  %v3756_v23 = vld [vmem:[%s7233_s7 + $0x1b4] sm:$0xf0]  ;;  %v3480_v47 = vor.u32 %v3740_v12, %v3479_v1 }
 0x69d   :  { %2674 = vmatpush.bf16.msrb.mxu3 %v3560_v51  ;;  %v3544_v36 = vor.u32 %v3756_v23, %v3543_v17 }
 0x69e   :  { %v2166_v5 = vmul.f32 %v2165_v16, %v6633_v14  ;;  %v3511_v14 = vld [vmem:[%s7233_s7 + $0x170] sm:$0xf]  ;;  %v3754_v16 = vld [vmem:[%s7233_s7 + $0x1a4] sm:$0xf0] }
 0x69f   :  { %v3512_v54 = vor.u32 %v3748_v58, %v3511_v14  ;;  %v3536_v29 = vor.u32 %v3754_v16, %v3535_v28  ;;  %v3527_v14 = vld [vmem:[%s7233_s7 + $0x190] sm:$0xf]  ;;  %v3752_v58 = vld [vmem:[%s7233_s7 + $0x194] sm:$0xf0] }
 0x6a0   :  { %v2167_v9 = vadd.f32 0.001, %v2166_v5  ;;  %v3528_v37 = vor.u32 %v3752_v58, %v3527_v14 }
 0x6a1   :  { %2659 = vmatpush.bf16.msrb.mxu2 %v3512_v54  ;;  %2675 = vmatpush.bf16.msrb.mxu3 %v3552_v31  ;;  %v3734_v54 = vld [vmem:[%s7233_s7 + $0x104] sm:$0xf0] }
 0x6a2   :  { %3802 = vrsqrt.f32 %v2167_v9  ;;  %vm2174_vm8 = vweird.f32 %v2167_v9 }
 0x6a5   :  { %2660 = vmatpush.bf16.msrb.mxu2 %v3504_v22  ;;  %2676 = vmatpush.bf16.msrb.mxu3 %v3544_v36 }
 0x6a8   :  { %v3803_v62 = vpop.eup %3802 }
 0x6a9   :  { %v2169_v27 = vmul.f32 %v3803_v62, %v2167_v9  ;;  %2661 = vmatpush.bf16.msrb.mxu2 %v3496_v2  ;;  %vm2175_vm7 = vweird.f32 %v3803_v62  ;;  %v3455_v9 = vld [vmem:[%s7233_s7 + $0x100] sm:$0xf]  ;;  %2677 = vmatpush.bf16.msrb.mxu3 %v3536_v29 }
 0x6aa   :  { %vm2176_vm9 = vmor %vm2174_vm8, %vm2175_vm7  ;;  %v3456_v22 = vor.u32 %v3734_v54, %v3455_v9  ;;  %v3449_v54 = vld [vmem:[%s7233_s7 + $0xf8] sm:$0xf0] }
 0x6ab   :  { %v2170_v19 = vmul.f32 %v3803_v62, %v2169_v27 }
 0x6ad   :  { %v2171_v13 = vmul.f32 0.5, %v2170_v19  ;;  %2662 = vmatpush.bf16.msrb.mxu2 %v3488_v52  ;;  %2678 = vmatpush.bf16.msrb.mxu3 %v3528_v37 }
 0x6af   :  { %v2172_v40 = vsub.f32 1.5, %v2171_v13 }
 0x6b1   :  { %v2173_v5 = vmul.f32 %v3803_v62, %v2172_v40  ;;  %2663 = vmatpush.bf16.msrb.mxu2 %v3480_v47  ;;  %2679 = vmatpush.bf16.msrb.mxu3 %v3520_v4 }
 0x6b3   :  { %v2177_v59 = vsel %vm2176_vm9, %v3803_v62, %v2173_v5 }
 0x6b4   :  { %v2178_v50 = vmul.f32 %v2177_v59, %v2082_v3 }
 0x6b5   :  { %2664 = vmatpush.bf16.msrb.mxu2 %v3472_v53 }
 0x6b6   :  { %v2180_v20 = vperm.slane %v2178_v50, 0  ;;  %v3731_v50 = vld [vmem:[%s7233_s7 + $0xf4] sm:$0xf] }
 0x6b8   :  { %v2185_v7 = vmul.f32 %v2180_v20, %v6646_v35  ;;  %v2189_v49 = vmul.f32 %v2180_v20, %v6665_v21  ;;  %v2193_v33 = vmul.f32 %v2180_v20, %v6681_v41  ;;  %v2194_v43 = vmul.f32 %v2180_v20, %v6685_v61 }
 0x6b9   :  { %v2195_v56 = vmul.f32 %v2180_v20, %v6689_v57  ;;  %v2196_v2 = vmul.f32 %v2180_v20, %v6705_v55  ;;  %v2197_v51 = vmul.f32 %v2180_v20, %v6709_v32  ;;  %v2182_v46 = vmul.f32 %v2180_v20, %v6637_v34  ;;  %2665 = vmatpush.bf16.msrb.mxu2 %v3464_v42 }
 0x6ba   :  { %v2204_v15 = vadd.f32 %v6892_v44, %v2185_v7  ;;  %v2208_v62 = vadd.f32 %v6892_v44, %v2189_v49  ;;  %v2212_v35 = vadd.f32 %v6892_v44, %v2193_v33  ;;  %v2186_v21 = vmul.f32 %v2180_v20, %v6649_v26 }
 0x6bb   :  { %v6907_v41 = vadd.f32 %v6892_v44, %v2196_v2  ;;  %v2216_v61 = vadd.f32 %v6892_v44, %v2197_v51  ;;  %v2190_v57 = vmul.f32 %v2180_v20, %v6669_v63  ;;  %v2201_v55 = vadd.f32 %v6892_v44, %v2182_v46  ;;  %v3711_v46 = vld [vmem:[%s7233_s7 + $0x54] sm:$0xf] }
 0x6bc   :  { %v2220_v34 = vmax.f32 %v2204_v15, 0.0  ;;  %v2224_v32 = vmax.f32 %v2208_v62, 0.0  ;;  %v2228_v30 = vmax.f32 %v2212_v35, 0.0  ;;  %v2205_v0 = vadd.f32 %v6892_v44, %v2186_v21  ;;  %v3369_v15 = vld [vmem:[%s7233_s7 + $0x58] sm:$0xf0] }
 0x6bd   :  { %v2232_v27 = vmax.f32 %v2216_v61, 0.0  ;;  %v2209_v52 = vadd.f32 %v6892_v44, %v2190_v57  ;;  %v2213_v26 = vadd.f32 %v6892_v44, %v2194_v43  ;;  %v2217_v19 = vmax.f32 %v2201_v55, 0.0  ;;  %2666 = vmatpush.bf16.msrb.mxu2 %v3456_v22  ;;  %v3727_v61 = vld [vmem:[%s7233_s7 + $0xd4] sm:$0xf]  ;;  %v3433_v57 = vld [vmem:[%s7233_s7 + $0xd8] sm:$0xf0] }
 0x6be   :  { %v2236_v31 = vmax.f32 %v2220_v34, %v2224_v32  ;;  %v2221_v1 = vmax.f32 %v2205_v0, 0.0  ;;  %v2183_v12 = vmul.f32 %v2180_v20, %v6640_v18  ;;  %v2187_v63 = vmul.f32 %v2180_v20, %v6657_v45  ;;  %v3715_v45 = vld [vmem:[%s7233_s7 + $0x74] sm:$0xf]  ;;  %v3709_v55 = vld [vmem:[%s7233_s7 + $0x44] sm:$0xf] }
 0x6bf   :  { %v2240_v17 = vmax.f32 %v2228_v30, %v2232_v27  ;;  %v2225_v23 = vmax.f32 %v2209_v52, 0.0  ;;  %v2229_v13 = vmax.f32 %v2213_v26, 0.0  ;;  %v2191_v47 = vmul.f32 %v2180_v20, %v6673_v60  ;;  %v3385_v60 = vld [vmem:[%s7233_s7 + $0x78] sm:$0xf0]  ;;  %v3361_v34 = vld [vmem:[%s7233_s7 + $0x48] sm:$0xf0] }
 0x6c0   :  { %v2233_v40 = vmax.f32 %v2217_v19, %v2221_v1  ;;  %v2202_v36 = vadd.f32 %v6892_v44, %v2183_v12  ;;  %v2206_v24 = vadd.f32 %v6892_v44, %v2187_v63  ;;  %v2214_v10 = vadd.f32 %v6892_v44, %v2195_v56  ;;  %v3729_v56 = vld [vmem:[%s7233_s7 + $0xe4] sm:$0xf]  ;;  %v3425_v27 = vld [vmem:[%s7233_s7 + $0xc8] sm:$0xf0]  ;;  %v3707_v52 = vld [vmem:[%s7233_s7 + $0x34] sm:$0xf] }
 0x6c1   :  { %v6921_v28 = vmax.f32 %v2236_v31, %v2240_v17  ;;  %v2237_v16 = vmax.f32 %v2225_v23, %v2229_v13  ;;  %v2210_v18 = vadd.f32 %v6892_v44, %v2191_v47  ;;  %v2184_v3 = vmul.f32 %v2180_v20, %v6643_v25  ;;  %v3725_v0 = vld [vmem:[%s7233_s7 + $0xc4] sm:$0xf]  ;;  %v3353_v26 = vld [vmem:[%s7233_s7 + $0x38] sm:$0xf0]  ;;  %v3723_v1 = vld [vmem:[%s7233_s7 + $0xb4] sm:$0xf] }
 0x6c2   :  { %v2218_v5 = vmax.f32 %v2202_v36, 0.0  ;;  %v2222_v53 = vmax.f32 %v2206_v24, 0.0  ;;  %v2230_v38 = vmax.f32 %v2214_v10, 0.0  ;;  %v2188_v48 = vmul.f32 %v2180_v20, %v6661_v8  ;;  %v3417_v63 = vld [vmem:[%s7233_s7 + $0xb8] sm:$0xf0] }
 0x6c3   :  { %v2241_v59 = vmax.f32 %v2233_v40, %v2237_v16  ;;  %v2226_v29 = vmax.f32 %v2210_v18, 0.0  ;;  %v2192_v14 = vmul.f32 %v2180_v20, %v6677_v6  ;;  %v3388_v9 = vor.u32 %v3715_v45, %v3385_v60  ;;  %v3713_v6 = vld [vmem:[%s7233_s7 + $0x64] sm:$0xf]  ;;  %v3377_v20 = vld [vmem:[%s7233_s7 + $0x68] sm:$0xf0] }
 0x6c4   :  { %v2234_v58 = vmax.f32 %v2218_v5, %v2222_v53  ;;  %v2203_v25 = vadd.f32 %v6892_v44, %v2184_v3  ;;  %v2207_v11 = vadd.f32 %v6892_v44, %v2188_v48  ;;  %v2231_v37 = vmax.f32 %v6907_v41, 0.0  ;;  %v3705_v17 = vld [vmem:[%s7233_s7 + $0x24] sm:$0xf]  ;;  %v3345_v23 = vld [vmem:[%s7233_s7 + $0x28] sm:$0xf0] }
 0x6c5   :  { %v6941_v39 = vpack.c.bf16 %v2241_v59, %v2241_v59  ;;  %v2238_v8 = vmax.f32 %v2226_v29, %v2230_v38  ;;  %v2211_v42 = vadd.f32 %v6892_v44, %v2192_v14  ;;  %v3452_v33 = vor.u32 %v3731_v50, %v3449_v54  ;;  %v3441_v44 = vld [vmem:[%s7233_s7 + $0xe8] sm:$0xf0]  ;;  %v3721_v40 = vld [vmem:[%s7233_s7 + $0xa4] sm:$0xf]  ;;  %v3703_v10 = vld [vmem:[%s7233_s7 + $0x14] sm:$0xf] }
 0x6c6   :  { %v2219_v22 = vmax.f32 %v2203_v25, 0.0  ;;  %v2223_v4 = vmax.f32 %v2207_v11, 0.0  ;;  %v3380_v43 = vor.u32 %v3713_v6, %v3377_v20  ;;  %v3444_v21 = vor.u32 %v3729_v56, %v3441_v44  ;;  %v3409_v24 = vld [vmem:[%s7233_s7 + $0xa8] sm:$0xf0]  ;;  %v3337_v16 = vld [vmem:[%s7233_s7 + $0x18] sm:$0xf0] }
 0x6c7   :  { %2641 = vmatmul.bf16.vlgmr.msra.gmra.mxu2 %v6941_v39  ;;  %v2242_v7 = vmax.f32 %v2234_v58, %v2238_v8  ;;  %v2227_v49 = vmax.f32 %v2211_v42, 0.0  ;;  %v3372_v41 = vor.u32 %v3711_v46, %v3369_v15  ;;  %v3436_v32 = vor.u32 %v3727_v61, %v3433_v57  ;;  %v3401_v60 = vld [vmem:[%s7233_s7 + $0x98] sm:$0xf0]  ;;  %v3701_v3 = vld [vmem:[%s7233_s7 + $0x4] sm:$0xf] }
 0x6c8   :  { %2685 = vmatpush.bf16.msra.mxu2 %v3388_v9  ;;  %v2235_v2 = vmax.f32 %v2219_v22, %v2223_v4  ;;  %v3364_v30 = vor.u32 %v3709_v55, %v3361_v34  ;;  %v3428_v19 = vor.u32 %v3725_v0, %v3425_v27  ;;  %v3356_v31 = vor.u32 %v3707_v52, %v3353_v26  ;;  %v3329_v5 = vld [vmem:[%s7233_s7 + $0x8] sm:$0xf0]  ;;  %v3747_v53 = vld [vmem:[%s7233_s7 + $0x174] sm:$0xf]  ;;  %v3513_v38 = vld [vmem:[%s7233_s7 + $0x178] sm:$0xf0] }
 0x6c9   :  { %v6955_v51 = vpack.c.bf16 %v2242_v7, %v2242_v7  ;;  %v2239_v62 = vmax.f32 %v2227_v49, %v2231_v37  ;;  %v3420_v13 = vor.u32 %v3723_v1, %v3417_v63  ;;  %v3348_v47 = vor.u32 %v3705_v17, %v3345_v23  ;;  %v3717_v29 = vld [vmem:[%s7233_s7 + $0x84] sm:$0xf]  ;;  %v3393_v14 = vld [vmem:[%s7233_s7 + $0x88] sm:$0xf0]  ;;  %v3763_v9 = vld [vmem:[%s7233_s7 + $0x1f4] sm:$0xf] }
 0x6ca   :  { %v7011_v36 = vpack.c.bf16 %v6921_v28, %v6921_v28  ;;  %v3412_v18 = vor.u32 %v3721_v40, %v3409_v24  ;;  %v3340_v45 = vor.u32 %v3703_v10, %v3337_v16  ;;  %v3719_v28 = vld [vmem:[%s7233_s7 + $0x94] sm:$0xf]  ;;  %v3332_v59 = vor.u32 %v3701_v3, %v3329_v5  ;;  %v3577_v50 = vld [vmem:[%s7233_s7 + $0x1f8] sm:$0xf0]  ;;  %v3745_v54 = vld [vmem:[%s7233_s7 + $0x164] sm:$0xf] }
 0x6cb   :  { %2654 = vmatmul.bf16.vlgmr.msra.gmra.mxu3 %v6955_v51  ;;  %v2243_v35 = vmax.f32 %v2235_v2, %v2239_v62  ;;  %v3404_v48 = vor.u32 %v3719_v28, %v3401_v60  ;;  %v3516_v58 = vor.u32 %v3747_v53, %v3513_v38  ;;  %v3505_v25 = vld [vmem:[%s7233_s7 + $0x168] sm:$0xf0]  ;;  %v3396_v11 = vor.u32 %v3717_v29, %v3393_v14  ;;  %v3761_v20 = vld [vmem:[%s7233_s7 + $0x1e4] sm:$0xf]  ;;  %v3743_v37 = vld [vmem:[%s7233_s7 + $0x154] sm:$0xf] }
 0x6cc   :  { %2698 = vmatpush.bf16.msra.mxu3 %v3452_v33  ;;  %2686 = vmatpush.bf16.msra.mxu2 %v3380_v43  ;;  %v3580_v8 = vor.u32 %v3763_v9, %v3577_v50  ;;  %v3508_v6 = vor.u32 %v3745_v54, %v3505_v25  ;;  %v3569_v42 = vld [vmem:[%s7233_s7 + $0x1e8] sm:$0xf0]  ;;  %v3497_v22 = vld [vmem:[%s7233_s7 + $0x158] sm:$0xf0]  ;;  %v3759_v49 = vld [vmem:[%s7233_s7 + $0x1d4] sm:$0xf] }
 0x6cd   :  { %v6994_v12 = vpack.c.bf16 %v2243_v35, %v2243_v35  ;;  %v3572_v4 = vor.u32 %v3761_v20, %v3569_v42  ;;  %v3500_v7 = vor.u32 %v3743_v37, %v3497_v22  ;;  %v3561_v33 = vld [vmem:[%s7233_s7 + $0x1d8] sm:$0xf0]  ;;  %v3741_v43 = vld [vmem:[%s7233_s7 + $0x144] sm:$0xf]  ;;  %v3553_v46 = vld [vmem:[%s7233_s7 + $0x1c8] sm:$0xf0] }
 0x6ce   :  { %v3564_v56 = vor.u32 %v3759_v49, %v3561_v33  ;;  %v3757_v44 = vld [vmem:[%s7233_s7 + $0x1c4] sm:$0xf]  ;;  %v3739_v15 = vld [vmem:[%s7233_s7 + $0x134] sm:$0xf]  ;;  %v3473_v57 = vld [vmem:[%s7233_s7 + $0x128] sm:$0xf0] }
 0x6cf   :  { %v3556_v62 = vor.u32 %v3757_v44, %v3553_v46  ;;  %v3737_v61 = vld [vmem:[%s7233_s7 + $0x124] sm:$0xf]  ;;  %v3735_v0 = vld [vmem:[%s7233_s7 + $0x114] sm:$0xf]  ;;  %v3465_v27 = vld [vmem:[%s7233_s7 + $0x118] sm:$0xf0] }
 0x6d0   :  { %2699 = vmatpush.bf16.msra.mxu3 %v3444_v21  ;;  %2687 = vmatpush.bf16.msra.mxu2 %v3372_v41  ;;  %v3755_v21 = vld [vmem:[%s7233_s7 + $0x1b4] sm:$0xf]  ;;  %v3545_v41 = vld [vmem:[%s7233_s7 + $0x1b8] sm:$0xf0]  ;;  %v3476_v34 = vor.u32 %v3737_v61, %v3473_v57  ;;  %v3468_v26 = vor.u32 %v3735_v0, %v3465_v27  ;;  %v3733_v1 = vld [vmem:[%s7233_s7 + $0x104] sm:$0xf] }
 0x6d1   :  { %v3548_v55 = vor.u32 %v3755_v21, %v3545_v41  ;;  %v3457_v63 = vld [vmem:[%s7233_s7 + $0x108] sm:$0xf0]  ;;  %v3841_v5 = vmov 8.0  }
 0x6d2   :  { %v3460_v23 = vor.u32 %v3733_v1, %v3457_v63  ;;  %3804 = vrcp.f32 %v3841_v5  ;;  %v3772_v63 = vld [vmem:[%s7236_s10 + $0x38] sm:$0xff]  ;;  %v3777_v5 = vld [vmem:[%s7236_s10 + $0x60] sm:$0xff] }
 0x6d4   :  { %2700 = vmatpush.bf16.msra.mxu3 %v3436_v32  ;;  %2688 = vmatpush.bf16.msra.mxu2 %v3364_v30  ;;  %v3753_v32 = vld [vmem:[%s7233_s7 + $0x1a4] sm:$0xf]  ;;  %v3537_v30 = vld [vmem:[%s7233_s7 + $0x1a8] sm:$0xf0] }
 0x6d5   :  { %v3540_v52 = vor.u32 %v3753_v32, %v3537_v30 }
 0x6d7   :  { %2667 = vmatmul.bf16.vlgmr.msrb.gmra.mxu2 %v6994_v12 }
 0x6d8   :  { %2701 = vmatpush.bf16.msra.mxu3 %v3428_v19  ;;  %2689 = vmatpush.bf16.msra.mxu2 %v3356_v31  ;;  %v3751_v19 = vld [vmem:[%s7233_s7 + $0x194] sm:$0xf]  ;;  %v3529_v31 = vld [vmem:[%s7233_s7 + $0x198] sm:$0xf0] }
 0x6d9   :  { %v3532_v17 = vor.u32 %v3751_v19, %v3529_v31 }
 0x6db   :  { %2680 = vmatmul.bf16.vlgmr.msrb.gmra.mxu3 %v7011_v36 }
 0x6dc   :  { %2702 = vmatpush.bf16.msra.mxu3 %v3420_v13  ;;  %2690 = vmatpush.bf16.msra.mxu2 %v3348_v47  ;;  %v3749_v13 = vld [vmem:[%s7233_s7 + $0x184] sm:$0xf]  ;;  %v3521_v47 = vld [vmem:[%s7233_s7 + $0x188] sm:$0xf0] }
 0x6dd   :  { %v3524_v40 = vor.u32 %v3749_v13, %v3521_v47  ;;  %v3771_v47 = vld [vmem:[%s7236_s10 + $0x30] sm:$0xff] }
 0x6e0   :  { %2703 = vmatpush.bf16.msra.mxu3 %v3412_v18  ;;  %2691 = vmatpush.bf16.msra.mxu2 %v3340_v45 }
 0x6e4   :  { %2704 = vmatpush.bf16.msra.mxu3 %v3404_v48  ;;  %2692 = vmatpush.bf16.msra.mxu2 %v3332_v59  ;;  %v3805_v59 = vpop.eup %3804 }
 0x6e5   :  { %vm2756_vm10 = vweird.f32 %v3805_v59 }
 0x6e7   :  { %2693 = vmatmul.bf16.vlgmr.msra.gmra.mxu2 %v6941_v39  ;;  %v3489_v39 = vld [vmem:[%s7233_s7 + $0x148] sm:$0xf0] }
 0x6e8   :  { %2711 = vmatpush.bf16.msrb.mxu2 %v3516_v58  ;;  %2705 = vmatpush.bf16.msra.mxu3 %v3396_v11  ;;  %v3492_v2 = vor.u32 %v3741_v43, %v3489_v39 }
 0x6eb   :  { %2706 = vmatmul.bf16.vlgmr.msra.gmra.mxu3 %v6955_v51  ;;  %v3481_v51 = vld [vmem:[%s7233_s7 + $0x138] sm:$0xf0] }
 0x6ec   :  { %2724 = vmatpush.bf16.msrb.mxu3 %v3580_v8  ;;  %2712 = vmatpush.bf16.msrb.mxu2 %v3508_v6  ;;  %v3484_v35 = vor.u32 %v3739_v15, %v3481_v51 }
 0x6f0   :  { %2725 = vmatpush.bf16.msrb.mxu3 %v3572_v4  ;;  %2713 = vmatpush.bf16.msrb.mxu2 %v3500_v7 }
 0x6f4   :  { %2726 = vmatpush.bf16.msrb.mxu3 %v3564_v56  ;;  %2714 = vmatpush.bf16.msrb.mxu2 %v3492_v2 }
 0x6f8   :  { %2727 = vmatpush.bf16.msrb.mxu3 %v3556_v62  ;;  %2715 = vmatpush.bf16.msrb.mxu2 %v3484_v35 }
 0x6fc   :  { %2728 = vmatpush.bf16.msrb.mxu3 %v3548_v55  ;;  %2716 = vmatpush.bf16.msrb.mxu2 %v3476_v34 }
 0x700   :  { %2729 = vmatpush.bf16.msrb.mxu3 %v3540_v52  ;;  %2717 = vmatpush.bf16.msrb.mxu2 %v3468_v26 }
 0x704   :  { %2730 = vmatpush.bf16.msrb.mxu3 %v3532_v17  ;;  %2718 = vmatpush.bf16.msrb.mxu2 %v3460_v23  ;;  %v3780_v17 = vld [vmem:[%s7236_s10 + $0x78] sm:$0xff] }
 0x707   :  { %2719 = vmatmul.bf16.vlgmr.msrb.gmra.mxu2 %v6994_v12  ;;  %v2752_v12 = vmul.f32 8.0, %v3805_v59 }
 0x708   :  { %2731 = vmatpush.bf16.msrb.mxu3 %v3524_v40  ;;  %2952 = vmatpush.bf16.msra.mxu2 %v3772_v63  ;;  %v3779_v40 = vld [vmem:[%s7236_s10 + $0x70] sm:$0xff] }
 0x70b   :  { %2732 = vmatmul.bf16.vlgmr.msrb.gmra.mxu3 %v7011_v36  ;;  %v2753_v36 = vsub.f32 1.0, %v2752_v12  ;;  %v3767_v12 = vld [vmem:[%s7236_s10 + $0x10] sm:$0xff] }
 0x70c   :  { %2965 = vmatpush.bf16.msra.mxu3 %v3780_v17  ;;  %2953 = vmatpush.bf16.msra.mxu2 %v3771_v47 }
 0x70d   :  { %v2754_v25 = vmul.f32 %v3805_v59, %v2753_v36 }
 0x70f   :  { %v2755_v6 = vadd.f32 %v3805_v59, %v2754_v25  ;;  %v3774_v25 = vld [vmem:[%s7236_s10 + $0x48] sm:$0xff] }
 0x710   :  { %2966 = vmatpush.bf16.msra.mxu3 %v3779_v40 }
 0x711   :  { %v7141_v37 = vsel %vm2756_vm10, %v3805_v59, %v2755_v6 }
 0x74a   :  { %v2642_v24 = vpop.f32.mrf.mxu2 }
 0x74e   :  { %v2655_v10 = vpop.f32.mrf.mxu3 }
 0x74f   :  { %v2656_v45 = vadd.f32 %v2655_v10, %v2642_v24 }
 0x752   :  { %v2644_v16 = vpop.f32.mrf.mxu2 }
 0x756   :  { %v2657_v18 = vpop.f32.mrf.mxu3 }
 0x757   :  { %v3770_v18 = vld [vmem:[%s7236_s10 + $0x28] sm:$0xff] }
 0x758   :  { %2954 = vmatpush.bf16.msra.mxu2 %v3770_v18 }
 0x75a   :  { %v2668_v28 = vpop.f32.mrf.mxu2 }
 0x75b   :  { %v2669_v60 = vadd.f32 %v2668_v28, %v2656_v45  ;;  %v3778_v45 = vld [vmem:[%s7236_s10 + $0x68] sm:$0xff] }
 0x75c   :  { %2967 = vmatpush.bf16.msra.mxu3 %v3778_v45 }
 0x75e   :  { %v2681_v3 = vpop.f32.mrf.mxu3 }
 0x75f   :  { %v2682_v53 = vadd.f32 %v2681_v3, %v2669_v60  ;;  %v3769_v3 = vld [vmem:[%s7236_s10 + $0x20] sm:$0xff] }
 0x760   :  { %2955 = vmatpush.bf16.msra.mxu2 %v3769_v3  ;;  %2968 = vmatpush.bf16.msra.mxu3 %v3777_v5 }
 0x761   :  { %v2739_v38 = vrot.slane %v2682_v53, 4 }
 0x762   :  { %v2670_v48 = vpop.f32.mrf.mxu2 }
 0x763   :  { %v2740_v29 = vadd.f32 %v2739_v38, %v2682_v53  ;;  %v3768_v38 = vld [vmem:[%s7236_s10 + $0x18] sm:$0xff] }
 0x764   :  { %v3776_v48 = vld [vmem:[%s7236_s10 + $0x58] sm:$0xff]  ;;  %2956 = vmatpush.bf16.msra.mxu2 %v3768_v38 }
 0x765   :  { %v2741_v58 = vrot.slane %v2740_v29, 2  ;;  %2969 = vmatpush.bf16.msra.mxu3 %v3776_v48 }
 0x766   :  { %v2683_v14 = vpop.f32.mrf.mxu3 }
 0x767   :  { %v2742_v50 = vadd.f32 %v2741_v58, %v2740_v29  ;;  %v3775_v58 = vld [vmem:[%s7236_s10 + $0x50] sm:$0xff] }
 0x768   :  { %2957 = vmatpush.bf16.msra.mxu2 %v3767_v12 }
 0x769   :  { %v2743_v11 = vrot.slane %v2742_v50, 1  ;;  %2970 = vmatpush.bf16.msra.mxu3 %v3775_v58 }
 0x76a   :  { %v2694_v9 = vpop.f32.mrf.mxu2 }
 0x76b   :  { %v2744_v20 = vadd.f32 %v2743_v11, %v2742_v50 }
 0x76d   :  { %v2758_v22 = vmul.f32 %v7141_v37, %v2744_v20  ;;  %2971 = vmatpush.bf16.msra.mxu3 %v3774_v25  ;;  %v3765_v20 = vld [vmem:[%s7236_s10] sm:$0xff] }
 0x76e   :  { %v2707_v54 = vpop.f32.mrf.mxu3 }
 0x76f   :  { %v7144_v4 = vsub.f32 %v2682_v53, %v2758_v22  ;;  %v2708_v33 = vadd.f32 %v2707_v54, %v2694_v9  ;;  %v3766_v54 = vld [vmem:[%s7236_s10 + $0x8] sm:$0xff] }
 0x770   :  { %2958 = vmatpush.bf16.msra.mxu2 %v3766_v54 }
 0x771   :  { %v2762_v7 = vmul.f32 %v7144_v4, %v7144_v4 }
 0x772   :  { %v2696_v8 = vpop.f32.mrf.mxu2 }
 0x773   :  { %v2764_v49 = vrot.slane %v2762_v7, 4 }
 0x774   :  { %2959 = vmatpush.bf16.msra.mxu2 %v3765_v20 }
 0x775   :  { %v2765_v56 = vadd.f32 %v2764_v49, %v2762_v7  ;;  %v2737_v7 = vld [vmem:[%s7234_s8] sm:$0x3] }
 0x776   :  { %v2709_v42 = vpop.f32.mrf.mxu3 }
 0x777   :  { %v2766_v46 = vrot.slane %v2765_v56, 2  ;;  %v3773_v42 = vld [vmem:[%s7236_s10 + $0x40] sm:$0xff] }
 0x778   :  { %2972 = vmatpush.bf16.msra.mxu3 %v3773_v42 }
 0x779   :  { %v2767_v35 = vadd.f32 %v2766_v46, %v2765_v56 }
 0x77b   :  { %v2768_v57 = vrot.slane %v2767_v35, 1 }
 0x77d   :  { %v2769_v32 = vadd.f32 %v2768_v57, %v2767_v35 }
 0x77f   :  { %v2776_v27 = vmul.f32 %v2769_v32, %v7141_v37 }
 0x781   :  { %v2778_v19 = vadd.f32 0.001, %v2776_v27 }
 0x783   :  { %3806 = vrsqrt.f32 %v2778_v19  ;;  %vm2786_vm15 = vweird.f32 %v2778_v19 }
 0x789   :  { %v3807_v10 = vpop.eup %3806 }
 0x78a   :  { %v2720_v43 = vpop.f32.mrf.mxu2  ;;  %v2781_v60 = vmul.f32 %v3807_v10, %v2778_v19  ;;  %vm2787_vm12 = vweird.f32 %v3807_v10 }
 0x78b   :  { %v2721_v39 = vadd.f32 %v2720_v43, %v2708_v33  ;;  %vm2788_vm0 = vmor %vm2786_vm15, %vm2787_vm12  ;;  %v2738_v43 = vld [vmem:[%s7235_s9] sm:$0x3] }
 0x78c   :  { %v2782_v53 = vmul.f32 %v3807_v10, %v2781_v60  ;;  %v2814_v46 = vperm.slane %v2738_v43, 0 }
 0x78e   :  { %v2733_v2 = vpop.f32.mrf.mxu3  ;;  %v2783_v29 = vmul.f32 0.5, %v2782_v53 }
 0x78f   :  { %v2734_v44 = vadd.f32 %v2733_v2, %v2721_v39 }
 0x790   :  { %v2784_v36 = vsub.f32 1.5, %v2783_v29 }
 0x791   :  { %v2745_v15 = vrot.slane %v2734_v44, 4 }
 0x792   :  { %v2722_v51 = vpop.f32.mrf.mxu2  ;;  %v2785_v8 = vmul.f32 %v3807_v10, %v2784_v36 }
 0x793   :  { %v2746_v62 = vadd.f32 %v2745_v15, %v2734_v44  ;;  %v2815_v15 = vperm.slane %v2738_v43, 1 }
 0x794   :  { %v2789_v33 = vsel %vm2788_vm0, %v3807_v10, %v2785_v8 }
 0x795   :  { %v2747_v21 = vrot.slane %v2746_v62, 2 }
 0x796   :  { %v2735_v41 = vpop.f32.mrf.mxu3 }
 0x797   :  { %v2748_v61 = vadd.f32 %v2747_v21, %v2746_v62 }
 0x799   :  { %v2749_v55 = vrot.slane %v2748_v61, 1 }
 0x79b   :  { %v2750_v34 = vadd.f32 %v2749_v55, %v2748_v61 }
 0x79d   :  { %v2759_v30 = vmul.f32 %v7141_v37, %v2750_v34 }
 0x79f   :  { %v7149_v0 = vsub.f32 %v2734_v44, %v2759_v30 }
 0x7a1   :  { %v2763_v52 = vmul.f32 %v7149_v0, %v7149_v0 }
 0x7a3   :  { %v2770_v26 = vrot.slane %v2763_v52, 4 }
 0x7a5   :  { %v2771_v31 = vadd.f32 %v2770_v26, %v2763_v52 }
 0x7a7   :  { %v2772_v1 = vrot.slane %v2771_v31, 2 }
 0x7a9   :  { %v2773_v23 = vadd.f32 %v2772_v1, %v2771_v31 }
 0x7ab   :  { %v2774_v13 = vrot.slane %v2773_v23, 1 }
 0x7ad   :  { %v2775_v24 = vadd.f32 %v2774_v13, %v2773_v23 }
 0x7af   :  { %v2777_v16 = vmul.f32 %v2775_v24, %v7141_v37 }
 0x7b1   :  { %v2779_v28 = vadd.f32 0.001, %v2777_v16 }
 0x7b3   :  { %3808 = vrsqrt.f32 %v2779_v28  ;;  %vm2796_vm13 = vweird.f32 %v2779_v28 }
 0x7b9   :  { %v3809_v59 = vpop.eup %3808 }
 0x7ba   :  { %v2791_v14 = vmul.f32 %v3809_v59, %v2779_v28  ;;  %vm2797_vm11 = vweird.f32 %v3809_v59 }
 0x7bb   :  { %vm2798_vm14 = vmor %vm2796_vm13, %vm2797_vm11 }
 0x7bc   :  { %v2792_v9 = vmul.f32 %v3809_v59, %v2791_v14 }
 0x7be   :  { %v2793_v50 = vmul.f32 0.5, %v2792_v9 }
 0x7c0   :  { %v2794_v11 = vsub.f32 1.5, %v2793_v50 }
 0x7c2   :  { %v2795_v6 = vmul.f32 %v3809_v59, %v2794_v11 }
 0x7c4   :  { %v2799_v22 = vsel %vm2798_vm14, %v3809_v59, %v2795_v6  ;;  %v2978_v59 = vld [vmem:[%s7237_s11] sm:$0x1] }
 0x7c5   :  { %v2802_v49 = vrot.slane %v2799_v22, 7 }
 0x7c7   :  { %v2803_v39 = vsel %vm1345_vm5, %v2789_v33, %v2802_v49 }
 0x7c8   :  { %v2805_v56 = vmul.f32 %v2803_v39, %v2737_v7 }
 0x7ca   :  { %v2807_v2 = vperm.slane %v2805_v56, 0  ;;  %v2808_v44 = vperm.slane %v2805_v56, 1 }
 0x7cc   :  { %v2812_v51 = vmul.f32 %v2808_v44, %v7149_v0  ;;  %v2811_v62 = vmul.f32 %v2807_v2, %v7144_v4 }
 0x7ce   :  { %v2819_v35 = vadd.f32 %v2815_v15, %v2812_v51  ;;  %v2818_v21 = vadd.f32 %v2814_v46, %v2811_v62 }
 0x7d0   :  { %v2821_v41 = vmax.f32 %v2819_v35, 0.0  ;;  %v2820_v61 = vmax.f32 %v2818_v21, 0.0 }
 0x7d2   :  { %v2823_v57 = vpack.c.bf16 %v2821_v41, %v2821_v41  ;;  %v2822_v55 = vpack.c.bf16 %v2820_v61, %v2820_v61 }
 0x7d4   :  { %2960 = vmatmul.bf16.vlgmr.msra.gmra.mxu2 %v2822_v55  ;;  %2973 = vmatmul.bf16.vlgmr.msra.gmra.mxu3 %v2823_v57 }
 0x857   :  { %v2961_v34 = vpop.f32.mrf.mxu2  ;;  %v2974_v32 = vpop.f32.mrf.mxu3 }
 0x858   :  { %v2975_v30 = vadd.f32 %v2974_v32, %v2961_v34 }
 0x85a   :  { %v2981_v27 = vsel %vm2980_vm1, %v2975_v30, 0.0 }
 0x85b   :  { %v2982_v52 = vrot.slane %v2981_v27, 4 }
 0x85d   :  { %v2983_v26 = vadd.f32 %v2982_v52, %v2981_v27 }
 0x85f   :  { %v2984_v19 = vrot.slane %v2983_v26, 2  ;;  %v2963_v0 = vpop.f32.mrf.mxu2  ;;  %v2976_v31 = vpop.f32.mrf.mxu3 }
 0x861   :  { %v2985_v4 = vadd.f32 %v2984_v19, %v2983_v26 }
 0x863   :  { %v2986_v1 = vrot.slane %v2985_v4, 1 }
 0x865   :  { %v2987_v63 = vadd.f32 %v2986_v1, %v2985_v4 }
 0x867   :  { %v2988_v17 = vmul.f32 %v2987_v63, %v7141_v37 }
 0x869   :  { %v2989_v23 = vsub.f32 %v2975_v30, %v2988_v17 }
 0x86b   :  { %v2990_v13 = vmul.f32 %v2989_v23, %v2989_v23 }
 0x86d   :  { %v2991_v47 = vsel %vm2980_vm1, %v2990_v13, 0.0 }
 0x86e   :  { %v2992_v40 = vrot.slane %v2991_v47, 4 }
 0x870   :  { %v2993_v24 = vadd.f32 %v2992_v40, %v2991_v47 }
 0x872   :  { %v2994_v10 = vrot.slane %v2993_v24, 2 }
 0x874   :  { %v2995_v16 = vadd.f32 %v2994_v10, %v2993_v24 }
 0x876   :  { %v2996_v18 = vrot.slane %v2995_v16, 1 }
 0x878   :  { %v2997_v45 = vadd.f32 %v2996_v18, %v2995_v16 }
 0x87a   :  { %v2998_v28 = vmul.f32 %v2997_v45, %v7141_v37  ;;  %v3795_v37 = vld [vmem:[%s7238_s12] ss:$0 sm:$0xff] }
 0x87c   :  { %v2999_v60 = vadd.f32 0.001, %v2998_v28 }
 0x87e   :  { %3810 = vrsqrt.f32 %v2999_v60  ;;  %vm3006_vm3 = vweird.f32 %v2999_v60 }
 0x884   :  { %v3811_v3 = vpop.eup %3810 }
 0x885   :  { %v3001_v5 = vmul.f32 %v3811_v3, %v2999_v60  ;;  %vm3007_vm2 = vweird.f32 %v3811_v3 }
 0x886   :  { %vm3008_vm4 = vmor %vm3006_vm3, %vm3007_vm2 }
 0x887   :  { %v3002_v53 = vmul.f32 %v3811_v3, %v3001_v5 }
 0x889   :  { %v3003_v38 = vmul.f32 0.5, %v3002_v53 }
 0x88b   :  { %v3004_v48 = vsub.f32 1.5, %v3003_v38 }
 0x88d   :  { %v3005_v29 = vmul.f32 %v3811_v3, %v3004_v48 }
 0x88f   :  { %v3009_v14 = vsel %vm3008_vm4, %v3811_v3, %v3005_v29 }
 0x890   :  { %v3010_v12 = vmul.f32 %v3009_v14, %v2978_v59 }
 0x892   :  { %v3012_v58 = vperm.slane %v3010_v12, 0 }
 0x894   :  { %v3014_v9 = vmul.f32 %v3012_v58, %v2989_v23 }
 0x896   :  { %v3018_v36 = vadd.f32 %v3795_v37, %v3014_v9 }
 0x898   :  { %v3019_v50 = vmax.f32 %v3018_v36, 0.0 }
 0x89a   :  { %3020 = vst.msk [vmem:[#allocation2] sm:$0xff] %vm2980_vm1, %v3019_v50 }
 0x89b   :  { %3031 = dma.vmem_to_hbm [thread:$0]  %s3027_s1, 128, %s3029_s27, [#allocation3]  }
 0x89c   :  { %3836 = dma.done.wait [#allocation3], 128  }
 0x89d   :  { %3837 = vsyncadd [#allocation3], 4294967168 }
 0x89e   :  { %3036 = vsyncpa [#allocation3], 1 }

</bundles_post_ra>
